<compile_context>
chip_gen: v7x
topology: tpu7x:2x2x1
jax: 0.10.0
libtpu: 0.0.40
codegen_flags: <defaults>
</compile_context>

<pallas_src>
import functools

import jax
import jax.numpy as jnp
from jax import lax
from jax.experimental import pallas as pl
from jax.experimental.pallas import tpu as pltpu

_NEG = -1e30  # finite "minus infinity": safe for (future) fully-masked rows


def _layernorm(x, gamma, beta, eps=1e-5):
    mean = jnp.mean(x, axis=-1, keepdims=True)
    var = jnp.mean((x - mean) ** 2, axis=-1, keepdims=True)
    return (x - mean) * lax.rsqrt(var + eps) * gamma + beta


def decoder_layer_kernel(
    xq_ref,                      # (1, TS, D) f32   query-row tile of x
    xkv_ref,                     # (1, Sp, D) bf16  full (padded) sequence of x
    wq_ref, wk_ref, wv_ref,      # (D, D) bf16 each (wq pre-scaled by 1/sqrt(d_k))
    bq_ref, bk_ref, bv_ref,      # (1, D) f32 each  (bq pre-scaled)
    wout_ref,                    # (H, d_k, D) bf16
    bout_ref,                    # (1, D) f32
    ln1_g_ref, ln1_b_ref,        # (1, D) f32
    w1_ref, b1_ref,              # (D, FC) bf16, (1, FC) f32   F-streamed blocks
    w2_ref, b2_ref,              # (FC, D) bf16, (1, D) f32
    ln2_g_ref, ln2_b_ref,        # (1, D) f32
    o_ref,                       # (1, TS, D)
    k_scr, v_scr,                # (H, Sp, d_k) bf16  per-batch K/V cache
    a_scr,                       # (TS, D) f32  attention-sublayer output (post LN1)
    h2_scr,                      # (TS, D) f32  MLP accumulator
    m_scr, l_scr,                # (TS, 1) f32  online-softmax stats
    acc_scr,                     # (TS, d_k) f32 online-softmax accumulator
    *, heads):
    f32 = jnp.float32
    cdt = wq_ref.dtype
    TS = xq_ref.shape[1]
    Sp = xkv_ref.shape[1]
    D = xq_ref.shape[2]
    d_k = D // heads

    t = pl.program_id(1)
    f = pl.program_id(2)
    nf = pl.num_programs(2)

    # -------- once per batch: project K/V for the whole sequence into VMEM -----
    @pl.when((t == 0) & (f == 0))
    def _fill_kv():
        for s0 in range(0, Sp, TS):          # static loop, chunked to bound temporaries
            xc = xkv_ref[0, s0:s0 + TS, :]                                # (TS, D) bf16
            kc = jnp.dot(xc, wk_ref[...], preferred_element_type=f32) + bk_ref[0]
            vc = jnp.dot(xc, wv_ref[...], preferred_element_type=f32) + bv_ref[0]
            for h in range(heads):
                k_scr[h, s0:s0 + TS, :] = kc[:, h * d_k:(h + 1) * d_k].astype(cdt)
                v_scr[h, s0:s0 + TS, :] = vc[:, h * d_k:(h + 1) * d_k].astype(cdt)

    # -------- once per (batch, seq-tile): causal attention + residual + LN1 ----
    @pl.when(f == 0)
    def _attention():
        xq = xq_ref[0]                                                    # (TS, D) f32
        # grouped Q projection (MXU-native width); scale already folded in
        q_all = jnp.dot(xq.astype(cdt), wq_ref[...],
                        preferred_element_type=f32) + bq_ref[0]           # (TS, D) f32
        row = lax.broadcasted_iota(jnp.int32, (TS, TS), 0) + t * TS

        attn = jnp.zeros((TS, D), f32)
        for h in range(heads):
            q_h = q_all[:, h * d_k:(h + 1) * d_k].astype(cdt)             # (TS, d_k)
            m_scr[...] = jnp.full((TS, 1), _NEG, f32)
            l_scr[...] = jnp.zeros((TS, 1), f32)
            acc_scr[...] = jnp.zeros((TS, d_k), f32)

            def _kv_chunk(j, carry, q_h=q_h, h=h):
                start = pl.multiple_of(j * TS, 8)
                k_c = k_scr[h, pl.ds(start, TS), :]                       # (TS, d_k)
                v_c = v_scr[h, pl.ds(start, TS), :]
                # contract last dims of both operands: no (S, d_k) transpose
                s = lax.dot_general(q_h, k_c, (((1,), (1,)), ((), ())),
                                    preferred_element_type=f32)           # (TS, TS)
                col = lax.broadcasted_iota(jnp.int32, (TS, TS), 1) + j * TS
                s = jnp.where(row >= col, s, _NEG)
                m_prev = m_scr[...]
                m_new = jnp.maximum(m_prev, jnp.max(s, axis=-1, keepdims=True))
                alpha = jnp.exp(m_prev - m_new)
                p = jnp.exp(s - m_new)
                l_scr[...] = alpha * l_scr[...] + jnp.sum(p, axis=-1, keepdims=True)
                acc_scr[...] = alpha * acc_scr[...] + jnp.dot(
                    p.astype(cdt), v_c, preferred_element_type=f32)
                m_scr[...] = m_new
                return carry

            # causal prefix only: key chunks 0 .. t
            lax.fori_loop(0, t + 1, _kv_chunk, 0)

            ctx_h = acc_scr[...] * pl.reciprocal(l_scr[...], approx=True)  # (TS, d_k)
            # fold head-merge into the output projection: no lane-axis concat
            attn = attn + jnp.dot(ctx_h.astype(cdt), wout_ref[h],
                                  preferred_element_type=f32)              # (TS, D)

        a = attn + bout_ref[0] + xq                      # out-proj bias + residual
        a_scr[...] = _layernorm(a, ln1_g_ref[0], ln1_b_ref[0])
        h2_scr[...] = jnp.zeros((TS, D), f32)

    # -------- every step: one streamed F-chunk of the MLP, f32 accumulation ----
    a_c = a_scr[...].astype(cdt)
    h1 = jnp.dot(a_c, w1_ref[...], preferred_element_type=f32) + b1_ref[0]
    h1 = jnp.maximum(h1, 0.0)
    h2_scr[...] += jnp.dot(h1.astype(cdt), w2_ref[...], preferred_element_type=f32)

    # -------- last F-chunk: second residual + LN2 -> output tile ----------------
    @pl.when(f == nf - 1)
    def _finalize():
        lin = a_scr[...] + h2_scr[...] + b2_ref[0]
        o_ref[0] = _layernorm(lin, ln2_g_ref[0], ln2_b_ref[0]).astype(o_ref.dtype)


# --------------------------------------------------------------------------- #
# Wrapper-side helpers
# --------------------------------------------------------------------------- #
def _round_up(x, m):
    return (x + m - 1) // m * m


def _vmem_capacity_bytes():
    """Physical VMEM per core, generation-aware (v7x has 64 MiB, v5e/v6e 128)."""
    try:
        cap = getattr(pltpu.get_tpu_info(), "vmem_capacity_bytes", None)
        if cap:
            return int(cap)
    except Exception:
        pass
    kind = ""
    try:
        kind = jax.devices()[0].device_kind.lower()
    except Exception:
        pass
    return 64 * 2**20 if "v7" in kind else 128 * 2**20


def _pick_seq_tile(S, target):
    if S <= target:
        return _round_up(S, 8)
    return target                      # target is a multiple of 8 (256 / 512)


def _pick_f_chunk(F, target=512):
    if F <= target:
        return F
    for c in range(target, 127, -128):  # lane-aligned divisors only
        if F % c == 0:
            return c
    return F                            # whole-F fallback (always legal)


def _prepare_params(params, heads, compute_dtype):
    """Split QKV, fold softmax scale into q, head-major Wout, cast matmul weights."""
    D = params["wout"].shape[0]
    d_k = D // heads
    inv = 1.0 / float(d_k) ** 0.5
    wq, wk, wv = jnp.split(params["wqkv"], 3, axis=1)   # each (D, D)
    bq, bk, bv = jnp.split(params["bqkv"], 3, axis=1)   # each (1, D)
    cd = compute_dtype
    return dict(
        wq=(wq * inv).astype(cd), wk=wk.astype(cd), wv=wv.astype(cd),
        bq=(bq * inv).astype(jnp.float32), bk=bk, bv=bv,
        wout=params["wout"].reshape(heads, d_k, D).astype(cd),
        bout=params["bout"],
        ln1_g=params["ln1_g"], ln1_b=params["ln1_b"],
        w1=params["w1"].astype(cd), b1=params["b1"],
        w2=params["w2"].astype(cd), b2=params["b2"],
        ln2_g=params["ln2_g"], ln2_b=params["ln2_b"],
    )


def decoder_layer(x, params, *, heads, compute_dtype=jnp.bfloat16,
                  seq_tile=None, f_chunk=None):
    """x: (B, S, D) float32. params: dict from init_params (f32, (in,out) layout)."""
    B, S, D = x.shape
    assert D % heads == 0
    d_k = D // heads

    cap = _vmem_capacity_bytes()
    ts_target = 512 if cap >= 128 * 2**20 else 256      # smaller tiles on v7x
    TS = seq_tile if seq_tile is not None else _pick_seq_tile(S, ts_target)
    TS = min(_round_up(TS, 8), _round_up(S, 8))
    Sp = _round_up(S, TS)                                # pad S -> bounded footprint

    p = _prepare_params(params, heads, compute_dtype)
    F = p["w1"].shape[1]
    FC = f_chunk if f_chunk is not None else _pick_f_chunk(F)
    assert F % FC == 0

    xq = x
    if Sp != S:
        xq = jnp.pad(x, ((0, 0), (0, Sp - S), (0, 0)))
    xkv = xq.astype(compute_dtype)                       # bf16 KV-side operand

    kernel = functools.partial(decoder_layer_kernel, heads=heads)

    def const_spec(shape):
        n = len(shape)
        return pl.BlockSpec(shape, lambda *_, _n=n: (0,) * _n)

    in_specs = [
        pl.BlockSpec((1, TS, D), lambda b, t, f: (b, t, 0)),   # xq (query tile)
        pl.BlockSpec((1, Sp, D), lambda b, t, f: (b, 0, 0)),   # xkv (full seq, bf16)
        const_spec((D, D)), const_spec((D, D)), const_spec((D, D)),      # wq wk wv
        const_spec((1, D)), const_spec((1, D)), const_spec((1, D)),      # bq bk bv
        const_spec((heads, d_k, D)),                                     # wout
        const_spec((1, D)),                                              # bout
        const_spec((1, D)), const_spec((1, D)),                          # ln1 g,b
        pl.BlockSpec((D, FC), lambda b, t, f: (0, f)),                   # w1 block
        pl.BlockSpec((1, FC), lambda b, t, f: (0, f)),                   # b1 block
        pl.BlockSpec((FC, D), lambda b, t, f: (f, 0)),                   # w2 block
        const_spec((1, D)),                                              # b2
        const_spec((1, D)), const_spec((1, D)),                          # ln2 g,b
    ]

    grid_spec = pltpu.PrefetchScalarGridSpec(
        num_scalar_prefetch=0,
        grid=(B, Sp // TS, F // FC),
        in_specs=in_specs,
        out_specs=pl.BlockSpec((1, TS, D), lambda b, t, f: (b, t, 0)),
        scratch_shapes=[
            pltpu.VMEM((heads, Sp, d_k), compute_dtype),   # K cache
            pltpu.VMEM((heads, Sp, d_k), compute_dtype),   # V cache
            pltpu.VMEM((TS, D), jnp.float32),              # attention output (LN1)
            pltpu.VMEM((TS, D), jnp.float32),              # MLP accumulator
            pltpu.VMEM((TS, 1), jnp.float32),              # online-softmax m
            pltpu.VMEM((TS, 1), jnp.float32),              # online-softmax l
            pltpu.VMEM((TS, d_k), jnp.float32),            # online-softmax acc
        ])

    out = pl.pallas_call(
        kernel,
        out_shape=jax.ShapeDtypeStruct((B, Sp, D), x.dtype),
        grid_spec=grid_spec,
        compiler_params=pltpu.CompilerParams(
            dimension_semantics=("parallel", "arbitrary", "arbitrary"),
            vmem_limit_bytes=int(cap * 0.9)),
    )(xq, xkv, p["wq"], p["wk"], p["wv"], p["bq"], p["bk"], p["bv"],
      p["wout"], p["bout"], p["ln1_g"], p["ln1_b"],
      p["w1"], p["b1"], p["w2"], p["b2"], p["ln2_g"], p["ln2_b"])

    return out[:, :S, :] if Sp != S else out


# --------------------------------------------------------------------------- #
# Deterministic init + pure-JAX reference (mirrors the PyTorch forward, eval mode)
# --------------------------------------------------------------------------- #
def init_params(key, d_model, heads):
    """Linear weights stored as (in, out) == torch W.T; everything f32."""
    dff = 4 * d_model
    ks = jax.random.split(key, 8)

    def lin(k, fan_in, fan_out):
        bound = 1.0 / jnp.sqrt(fan_in)
        kw, kb = jax.random.split(k)
        w = jax.random.uniform(kw, (fan_in, fan_out), jnp.float32, -bound, bound)
        b = jax.random.uniform(kb, (1, fan_out), jnp.float32, -bound, bound)
        return w, b

    wqkv, bqkv = lin(ks[0], d_model, 3 * d_model)
    wout, bout = lin(ks[1], d_model, d_model)
    w1, b1 = lin(ks[2], d_model, dff)
    w2, b2 = lin(ks[3], dff, d_model)
    return dict(
        wqkv=wqkv, bqkv=bqkv, wout=wout, bout=bout,
        ln1_g=jnp.ones((1, d_model), jnp.float32),
        ln1_b=jnp.zeros((1, d_model), jnp.float32),
        w1=w1, b1=b1, w2=w2, b2=b2,
        ln2_g=jnp.ones((1, d_model), jnp.float32),
        ln2_b=jnp.zeros((1, d_model), jnp.float32),
    )


def decoder_layer_ref(x, p, *, heads):
    B, S, D = x.shape
    d_k = D // heads
    qkv = x @ p["wqkv"] + p["bqkv"][0]
    q, k, v = jnp.split(qkv, 3, axis=-1)

    def split_heads(t):
        return t.reshape(B, S, heads, d_k).transpose(0, 2, 1, 3)

    q, k, v = split_heads(q), split_heads(k), split_heads(v)
    A = jnp.einsum("bhqd,bhkd->bhqk", q, k) / jnp.sqrt(jnp.float32(d_k))
    causal = jnp.tril(jnp.ones((S, S), bool))[None, None]
    A = jnp.where(causal, A, -jnp.inf)
    A = jax.nn.softmax(A, axis=-1)
    A = jnp.einsum("bhqk,bhkd->bhqd", A, v)
    A = A.transpose(0, 2, 1, 3).reshape(B, S, D)
    A = A @ p["wout"] + p["bout"][0]
    A = A + x

    def ln(t, g, b):
        mu = t.mean(-1, keepdims=True)
        var = ((t - mu) ** 2).mean(-1, keepdims=True)
        return (t - mu) / jnp.sqrt(var + 1e-5) * g[0] + b[0]

    A = ln(A, p["ln1_g"], p["ln1_b"])
    h = jnp.maximum(A @ p["w1"] + p["b1"][0], 0.0) @ p["w2"] + p["b2"][0]
    return ln(A + h, p["ln2_g"], p["ln2_b"])


if __name__ == "__main__":
    key = jax.random.PRNGKey(0)
    k1, k2, k3, k4 = jax.random.split(key, 4)

    # Test 1: single seq tile, single MLP F-chunk.
    B, S, D, H = 2, 8, 32, 4
    x = jax.random.normal(k1, (B, S, D), jnp.float32)
    params = init_params(k2, D, H)
    out = jax.block_until_ready(decoder_layer(x, params, heads=H))
    ref = decoder_layer_ref(x, params, heads=H)
    assert out.shape == (B, S, D)
    err = float(jnp.max(jnp.abs(out - ref)))
    assert jnp.allclose(out, ref, atol=5e-2, rtol=5e-2), f"test1 max abs err {err}"

    # Test 2: multiple seq tiles (K/V cache reuse + causal chunk loop), padded
    # sequence length, and 2 streamed MLP F-chunks.
    B2, S2, D2, H2 = 2, 20, 64, 4
    x2 = jax.random.normal(k3, (B2, S2, D2), jnp.float32)
    params2 = init_params(k4, D2, H2)
    out2 = jax.block_until_ready(
        decoder_layer(x2, params2, heads=H2, seq_tile=8, f_chunk=128))
    ref2 = decoder_layer_ref(x2, params2, heads=H2)
    assert out2.shape == (B2, S2, D2)
    err2 = float(jnp.max(jnp.abs(out2 - ref2)))
    assert jnp.allclose(out2, ref2, atol=5e-2, rtol=5e-2), f"test2 max abs err {err2}"

    print("KERNEL_OK")
</pallas_src>

<mosaic_0001>
module attributes {stable_mosaic.version = 11 : i64} {
  func.func @decoder_layer_kernel(%arg0: i32, %arg1: i32, %arg2: i32, %arg3: memref<1x8x32xf32, #tpu.memory_space<vmem>>, %arg4: memref<1x8x32xbf16, #tpu.memory_space<vmem>>, %arg5: memref<32x32xbf16, #tpu.memory_space<vmem>>, %arg6: memref<32x32xbf16, #tpu.memory_space<vmem>>, %arg7: memref<32x32xbf16, #tpu.memory_space<vmem>>, %arg8: memref<1x32xf32, #tpu.memory_space<vmem>>, %arg9: memref<1x32xf32, #tpu.memory_space<vmem>>, %arg10: memref<1x32xf32, #tpu.memory_space<vmem>>, %arg11: memref<4x8x32xbf16, #tpu.memory_space<vmem>>, %arg12: memref<1x32xf32, #tpu.memory_space<vmem>>, %arg13: memref<1x32xf32, #tpu.memory_space<vmem>>, %arg14: memref<1x32xf32, #tpu.memory_space<vmem>>, %arg15: memref<32x128xbf16, #tpu.memory_space<vmem>>, %arg16: memref<1x128xf32, #tpu.memory_space<vmem>>, %arg17: memref<128x32xbf16, #tpu.memory_space<vmem>>, %arg18: memref<1x32xf32, #tpu.memory_space<vmem>>, %arg19: memref<1x32xf32, #tpu.memory_space<vmem>>, %arg20: memref<1x32xf32, #tpu.memory_space<vmem>>, %arg21: memref<1x8x32xf32, #tpu.memory_space<vmem>>, %arg22: memref<4x8x8xbf16, #tpu.memory_space<vmem>>, %arg23: memref<4x8x8xbf16, #tpu.memory_space<vmem>>, %arg24: memref<8x32xf32, #tpu.memory_space<vmem>>, %arg25: memref<8x32xf32, #tpu.memory_space<vmem>>, %arg26: memref<8x1xf32, #tpu.memory_space<vmem>>, %arg27: memref<8x1xf32, #tpu.memory_space<vmem>>, %arg28: memref<8x8xf32, #tpu.memory_space<vmem>>) attributes {dimension_semantics = [#tpu.dimension_semantics<parallel>, #tpu.dimension_semantics<arbitrary>, #tpu.dimension_semantics<arbitrary>], iteration_bounds = array<i64: 2, 1, 1>, scalar_prefetch = 0 : i64, scratch_operands = 7 : i64, tpu.core_type = #tpu.core_type<tc>, window_params = [{transform_indices = @transform_0, window_bounds = array<i64: 1, 8, 32>}, {transform_indices = @transform_1, window_bounds = array<i64: 1, 8, 32>}, {pipeline_mode = #tpu.pipeline_mode<synchronous>, transform_indices = @transform_2, window_bounds = array<i64: 32, 32>}, {pipeline_mode = #tpu.pipeline_mode<synchronous>, transform_indices = @transform_3, window_bounds = array<i64: 32, 32>}, {pipeline_mode = #tpu.pipeline_mode<synchronous>, transform_indices = @transform_4, window_bounds = array<i64: 32, 32>}, {pipeline_mode = #tpu.pipeline_mode<synchronous>, transform_indices = @transform_5, window_bounds = array<i64: 1, 32>}, {pipeline_mode = #tpu.pipeline_mode<synchronous>, transform_indices = @transform_6, window_bounds = array<i64: 1, 32>}, {pipeline_mode = #tpu.pipeline_mode<synchronous>, transform_indices = @transform_7, window_bounds = array<i64: 1, 32>}, {pipeline_mode = #tpu.pipeline_mode<synchronous>, transform_indices = @transform_8, window_bounds = array<i64: 4, 8, 32>}, {pipeline_mode = #tpu.pipeline_mode<synchronous>, transform_indices = @transform_9, window_bounds = array<i64: 1, 32>}, {pipeline_mode = #tpu.pipeline_mode<synchronous>, transform_indices = @transform_10, window_bounds = array<i64: 1, 32>}, {pipeline_mode = #tpu.pipeline_mode<synchronous>, transform_indices = @transform_11, window_bounds = array<i64: 1, 32>}, {transform_indices = @transform_12, window_bounds = array<i64: 32, 128>}, {transform_indices = @transform_13, window_bounds = array<i64: 1, 128>}, {transform_indices = @transform_14, window_bounds = array<i64: 128, 32>}, {pipeline_mode = #tpu.pipeline_mode<synchronous>, transform_indices = @transform_15, window_bounds = array<i64: 1, 32>}, {pipeline_mode = #tpu.pipeline_mode<synchronous>, transform_indices = @transform_16, window_bounds = array<i64: 1, 32>}, {pipeline_mode = #tpu.pipeline_mode<synchronous>, transform_indices = @transform_17, window_bounds = array<i64: 1, 32>}, {transform_indices = @transform_18, window_bounds = array<i64: 1, 8, 32>}]} {
    %c0_i32 = arith.constant 0 : i32
    %0 = arith.cmpi eq, %arg1, %c0_i32 : i32
    %c0_i32_0 = arith.constant 0 : i32
    %1 = arith.cmpi eq, %arg2, %c0_i32_0 : i32
    %2 = arith.andi %0, %1 : i1
    %3 = arith.extui %2 : i1 to i32
    %c0_i32_1 = arith.constant 0 : i32
    %4 = arith.cmpi ne, %3, %c0_i32_1 : i32
    scf.if %4 {
      %c0_19 = arith.constant 0 : index
      %c0_20 = arith.constant 0 : index
      %c0_21 = arith.constant 0 : index
      %28 = vector.load %arg4[%c0_19, %c0_20, %c0_21] : memref<1x8x32xbf16, #tpu.memory_space<vmem>>, vector<1x8x32xbf16>
      %29 = vector.shape_cast %28 : vector<1x8x32xbf16> to vector<8x32xbf16>
      %c0_22 = arith.constant 0 : index
      %c0_23 = arith.constant 0 : index
      %30 = vector.load %arg6[%c0_22, %c0_23] : memref<32x32xbf16, #tpu.memory_space<vmem>>, vector<32x32xbf16>
      %cst_24 = arith.constant dense<0.000000e+00> : vector<8x32xf32>
      %31 = tpu.matmul %29, %30, %cst_24 {dimension_numbers = #tpu.dot_dimension_numbers<[1], [0], [0], [1], [0, 0, 1, 1], [], []>} : vector<8x32xbf16>, vector<32x32xbf16>, vector<8x32xf32> -> vector<8x32xf32>
      %c0_25 = arith.constant 0 : index
      %c0_26 = arith.constant 0 : index
      %32 = vector.load %arg9[%c0_25, %c0_26] : memref<1x32xf32, #tpu.memory_space<vmem>>, vector<1x32xf32>
      %33 = vector.shape_cast %32 : vector<1x32xf32> to vector<32xf32>
      %34 = vector.shape_cast %33 : vector<32xf32> to vector<1x32xf32>
      %35 = vector.broadcast %34 : vector<1x32xf32> to vector<8x32xf32>
      %36 = arith.addf %31, %35 : vector<8x32xf32>
      %c0_27 = arith.constant 0 : index
      %c0_28 = arith.constant 0 : index
      %37 = vector.load %arg7[%c0_27, %c0_28] : memref<32x32xbf16, #tpu.memory_space<vmem>>, vector<32x32xbf16>
      %cst_29 = arith.constant dense<0.000000e+00> : vector<8x32xf32>
      %38 = tpu.matmul %29, %37, %cst_29 {dimension_numbers = #tpu.dot_dimension_numbers<[1], [0], [0], [1], [0, 0, 1, 1], [], []>} : vector<8x32xbf16>, vector<32x32xbf16>, vector<8x32xf32> -> vector<8x32xf32>
      %c0_30 = arith.constant 0 : index
      %c0_31 = arith.constant 0 : index
      %39 = vector.load %arg10[%c0_30, %c0_31] : memref<1x32xf32, #tpu.memory_space<vmem>>, vector<1x32xf32>
      %40 = vector.shape_cast %39 : vector<1x32xf32> to vector<32xf32>
      %41 = vector.shape_cast %40 : vector<32xf32> to vector<1x32xf32>
      %42 = vector.broadcast %41 : vector<1x32xf32> to vector<8x32xf32>
      %43 = arith.addf %38, %42 : vector<8x32xf32>
      %44 = vector.extract_strided_slice %36 {offsets = [0, 0], sizes = [8, 8], strides = [1, 1]} : vector<8x32xf32> to vector<8x8xf32>
      %45 = arith.truncf %44 : vector<8x8xf32> to vector<8x8xbf16>
      %c0_32 = arith.constant 0 : index
      %c0_33 = arith.constant 0 : index
      %c0_34 = arith.constant 0 : index
      %46 = vector.load %arg22[%c0_32, %c0_33, %c0_34] : memref<4x8x8xbf16, #tpu.memory_space<vmem>>, vector<1x8x8xbf16>
      %47 = vector.shape_cast %46 : vector<1x8x8xbf16> to vector<8x8xbf16>
      %48 = vector.shape_cast %45 : vector<8x8xbf16> to vector<1x8x8xbf16>
      tpu.vector_store %arg22[%c0_32, %c0_33, %c0_34], %48 {strides = array<i32>} : memref<4x8x8xbf16, #tpu.memory_space<vmem>>, vector<1x8x8xbf16>,
      %49 = vector.extract_strided_slice %43 {offsets = [0, 0], sizes = [8, 8], strides = [1, 1]} : vector<8x32xf32> to vector<8x8xf32>
      %50 = arith.truncf %49 : vector<8x8xf32> to vector<8x8xbf16>
      %c0_35 = arith.constant 0 : index
      %c0_36 = arith.constant 0 : index
      %c0_37 = arith.constant 0 : index
      %51 = vector.load %arg23[%c0_35, %c0_36, %c0_37] : memref<4x8x8xbf16, #tpu.memory_space<vmem>>, vector<1x8x8xbf16>
      %52 = vector.shape_cast %51 : vector<1x8x8xbf16> to vector<8x8xbf16>
      %53 = vector.shape_cast %50 : vector<8x8xbf16> to vector<1x8x8xbf16>
      tpu.vector_store %arg23[%c0_35, %c0_36, %c0_37], %53 {strides = array<i32>} : memref<4x8x8xbf16, #tpu.memory_space<vmem>>, vector<1x8x8xbf16>,
      %54 = vector.extract_strided_slice %36 {offsets = [0, 8], sizes = [8, 8], strides = [1, 1]} : vector<8x32xf32> to vector<8x8xf32>
      %55 = arith.truncf %54 : vector<8x8xf32> to vector<8x8xbf16>
      %c1 = arith.constant 1 : index
      %c0_38 = arith.constant 0 : index
      %c0_39 = arith.constant 0 : index
      %56 = vector.load %arg22[%c1, %c0_38, %c0_39] : memref<4x8x8xbf16, #tpu.memory_space<vmem>>, vector<1x8x8xbf16>
      %57 = vector.shape_cast %56 : vector<1x8x8xbf16> to vector<8x8xbf16>
      %58 = vector.shape_cast %55 : vector<8x8xbf16> to vector<1x8x8xbf16>
      tpu.vector_store %arg22[%c1, %c0_38, %c0_39], %58 {strides = array<i32>} : memref<4x8x8xbf16, #tpu.memory_space<vmem>>, vector<1x8x8xbf16>,
      %59 = vector.extract_strided_slice %43 {offsets = [0, 8], sizes = [8, 8], strides = [1, 1]} : vector<8x32xf32> to vector<8x8xf32>
      %60 = arith.truncf %59 : vector<8x8xf32> to vector<8x8xbf16>
      %c1_40 = arith.constant 1 : index
      %c0_41 = arith.constant 0 : index
      %c0_42 = arith.constant 0 : index
      %61 = vector.load %arg23[%c1_40, %c0_41, %c0_42] : memref<4x8x8xbf16, #tpu.memory_space<vmem>>, vector<1x8x8xbf16>
      %62 = vector.shape_cast %61 : vector<1x8x8xbf16> to vector<8x8xbf16>
      %63 = vector.shape_cast %60 : vector<8x8xbf16> to vector<1x8x8xbf16>
      tpu.vector_store %arg23[%c1_40, %c0_41, %c0_42], %63 {strides = array<i32>} : memref<4x8x8xbf16, #tpu.memory_space<vmem>>, vector<1x8x8xbf16>,
      %64 = vector.extract_strided_slice %36 {offsets = [0, 16], sizes = [8, 8], strides = [1, 1]} : vector<8x32xf32> to vector<8x8xf32>
      %65 = arith.truncf %64 : vector<8x8xf32> to vector<8x8xbf16>
      %c2 = arith.constant 2 : index
      %c0_43 = arith.constant 0 : index
      %c0_44 = arith.constant 0 : index
      %66 = vector.load %arg22[%c2, %c0_43, %c0_44] : memref<4x8x8xbf16, #tpu.memory_space<vmem>>, vector<1x8x8xbf16>
      %67 = vector.shape_cast %66 : vector<1x8x8xbf16> to vector<8x8xbf16>
      %68 = vector.shape_cast %65 : vector<8x8xbf16> to vector<1x8x8xbf16>
      tpu.vector_store %arg22[%c2, %c0_43, %c0_44], %68 {strides = array<i32>} : memref<4x8x8xbf16, #tpu.memory_space<vmem>>, vector<1x8x8xbf16>,
      %69 = vector.extract_strided_slice %43 {offsets = [0, 16], sizes = [8, 8], strides = [1, 1]} : vector<8x32xf32> to vector<8x8xf32>
      %70 = arith.truncf %69 : vector<8x8xf32> to vector<8x8xbf16>
      %c2_45 = arith.constant 2 : index
      %c0_46 = arith.constant 0 : index
      %c0_47 = arith.constant 0 : index
      %71 = vector.load %arg23[%c2_45, %c0_46, %c0_47] : memref<4x8x8xbf16, #tpu.memory_space<vmem>>, vector<1x8x8xbf16>
      %72 = vector.shape_cast %71 : vector<1x8x8xbf16> to vector<8x8xbf16>
      %73 = vector.shape_cast %70 : vector<8x8xbf16> to vector<1x8x8xbf16>
      tpu.vector_store %arg23[%c2_45, %c0_46, %c0_47], %73 {strides = array<i32>} : memref<4x8x8xbf16, #tpu.memory_space<vmem>>, vector<1x8x8xbf16>,
      %74 = vector.extract_strided_slice %36 {offsets = [0, 24], sizes = [8, 8], strides = [1, 1]} : vector<8x32xf32> to vector<8x8xf32>
      %75 = arith.truncf %74 : vector<8x8xf32> to vector<8x8xbf16>
      %c3 = arith.constant 3 : index
      %c0_48 = arith.constant 0 : index
      %c0_49 = arith.constant 0 : index
      %76 = vector.load %arg22[%c3, %c0_48, %c0_49] : memref<4x8x8xbf16, #tpu.memory_space<vmem>>, vector<1x8x8xbf16>
      %77 = vector.shape_cast %76 : vector<1x8x8xbf16> to vector<8x8xbf16>
      %78 = vector.shape_cast %75 : vector<8x8xbf16> to vector<1x8x8xbf16>
      tpu.vector_store %arg22[%c3, %c0_48, %c0_49], %78 {strides = array<i32>} : memref<4x8x8xbf16, #tpu.memory_space<vmem>>, vector<1x8x8xbf16>,
      %79 = vector.extract_strided_slice %43 {offsets = [0, 24], sizes = [8, 8], strides = [1, 1]} : vector<8x32xf32> to vector<8x8xf32>
      %80 = arith.truncf %79 : vector<8x8xf32> to vector<8x8xbf16>
      %c3_50 = arith.constant 3 : index
      %c0_51 = arith.constant 0 : index
      %c0_52 = arith.constant 0 : index
      %81 = vector.load %arg23[%c3_50, %c0_51, %c0_52] : memref<4x8x8xbf16, #tpu.memory_space<vmem>>, vector<1x8x8xbf16>
      %82 = vector.shape_cast %81 : vector<1x8x8xbf16> to vector<8x8xbf16>
      %83 = vector.shape_cast %80 : vector<8x8xbf16> to vector<1x8x8xbf16>
      tpu.vector_store %arg23[%c3_50, %c0_51, %c0_52], %83 {strides = array<i32>} : memref<4x8x8xbf16, #tpu.memory_space<vmem>>, vector<1x8x8xbf16>,
    } else {
    }
    %c0_i32_2 = arith.constant 0 : i32
    %5 = arith.cmpi eq, %arg2, %c0_i32_2 : i32
    %6 = arith.extui %5 : i1 to i32
    %c0_i32_3 = arith.constant 0 : i32
    %7 = arith.cmpi ne, %6, %c0_i32_3 : i32
    scf.if %7 {
      %c0_19 = arith.constant 0 : index
      %c0_20 = arith.constant 0 : index
      %c0_21 = arith.constant 0 : index
      %28 = vector.load %arg3[%c0_19, %c0_20, %c0_21] : memref<1x8x32xf32, #tpu.memory_space<vmem>>, vector<1x8x32xf32>
      %29 = vector.shape_cast %28 : vector<1x8x32xf32> to vector<8x32xf32>
      %30 = arith.truncf %29 : vector<8x32xf32> to vector<8x32xbf16>
      %c0_22 = arith.constant 0 : index
      %c0_23 = arith.constant 0 : index
      %31 = vector.load %arg5[%c0_22, %c0_23] : memref<32x32xbf16, #tpu.memory_space<vmem>>, vector<32x32xbf16>
      %cst_24 = arith.constant dense<0.000000e+00> : vector<8x32xf32>
      %32 = tpu.matmul %30, %31, %cst_24 {dimension_numbers = #tpu.dot_dimension_numbers<[1], [0], [0], [1], [0, 0, 1, 1], [], []>} : vector<8x32xbf16>, vector<32x32xbf16>, vector<8x32xf32> -> vector<8x32xf32>
      %c0_25 = arith.constant 0 : index
      %c0_26 = arith.constant 0 : index
      %33 = vector.load %arg8[%c0_25, %c0_26] : memref<1x32xf32, #tpu.memory_space<vmem>>, vector<1x32xf32>
      %34 = vector.shape_cast %33 : vector<1x32xf32> to vector<32xf32>
      %35 = vector.shape_cast %34 : vector<32xf32> to vector<1x32xf32>
      %36 = vector.broadcast %35 : vector<1x32xf32> to vector<8x32xf32>
      %37 = arith.addf %32, %36 : vector<8x32xf32>
      %38 = tpu.iota {dimensions = array<i32: 0>} : vector<8x8xi32>
      %c8_i32 = arith.constant 8 : i32
      %39 = arith.muli %arg1, %c8_i32 : i32
      %40 = vector.broadcast %39 : i32 to vector<8x8xi32>
      %41 = arith.addi %38, %40 : vector<8x8xi32>
      %cst_27 = arith.constant 0.000000e+00 : f32
      %42 = vector.broadcast %cst_27 : f32 to vector<8x32xf32>
      %43 = vector.extract_strided_slice %37 {offsets = [0, 0], sizes = [8, 8], strides = [1, 1]} : vector<8x32xf32> to vector<8x8xf32>
      %44 = arith.truncf %43 : vector<8x8xf32> to vector<8x8xbf16>
      %cst_28 = arith.constant -1.000000e+30 : f32
      %45 = vector.broadcast %cst_28 : f32 to vector<8x1xf32>
      %c0_29 = arith.constant 0 : index
      %c0_30 = arith.constant 0 : index
      %46 = vector.load %arg26[%c0_29, %c0_30] : memref<8x1xf32, #tpu.memory_space<vmem>>, vector<8x1xf32>
      tpu.vector_store %arg26[%c0_29, %c0_30], %45 {strides = array<i32>} : memref<8x1xf32, #tpu.memory_space<vmem>>, vector<8x1xf32>,
      %cst_31 = arith.constant 0.000000e+00 : f32
      %47 = vector.broadcast %cst_31 : f32 to vector<8x1xf32>
      %c0_32 = arith.constant 0 : index
      %c0_33 = arith.constant 0 : index
      %48 = vector.load %arg27[%c0_32, %c0_33] : memref<8x1xf32, #tpu.memory_space<vmem>>, vector<8x1xf32>
      tpu.vector_store %arg27[%c0_32, %c0_33], %47 {strides = array<i32>} : memref<8x1xf32, #tpu.memory_space<vmem>>, vector<8x1xf32>,
      %cst_34 = arith.constant 0.000000e+00 : f32
      %49 = vector.broadcast %cst_34 : f32 to vector<8x8xf32>
      %c0_35 = arith.constant 0 : index
      %c0_36 = arith.constant 0 : index
      %50 = vector.load %arg28[%c0_35, %c0_36] : memref<8x8xf32, #tpu.memory_space<vmem>>, vector<8x8xf32>
      tpu.vector_store %arg28[%c0_35, %c0_36], %49 {strides = array<i32>} : memref<8x8xf32, #tpu.memory_space<vmem>>, vector<8x8xf32>,
      %c1_i32 = arith.constant 1 : i32
      %51 = arith.addi %arg1, %c1_i32 : i32
      %c0_i32_37 = arith.constant 0 : i32
      %c0_i32_38 = arith.constant 0 : i32
      %52 = arith.subi %51, %c0_i32_38 : i32
      %53 = arith.addi %c0_i32_38, %52 : i32
      %c1_i32_39 = arith.constant 1 : i32
      scf.for %arg29 = %c0_i32_38 to %53 step %c1_i32_39  : i32 {
        %c8_i32_124 = arith.constant 8 : i32
        %164 = arith.muli %arg29, %c8_i32_124 : i32
        %165 = tpu.assume_multiple %164, 8 : i32
        %c0_125 = arith.constant 0 : index
        %166 = arith.index_cast %165 : i32 to index
        %c0_126 = arith.constant 0 : index
        %167 = vector.load %arg22[%c0_125, %166, %c0_126] : memref<4x8x8xbf16, #tpu.memory_space<vmem>>, vector<1x8x8xbf16>
        %168 = vector.shape_cast %167 : vector<1x8x8xbf16> to vector<8x8xbf16>
        %c0_127 = arith.constant 0 : index
        %169 = arith.index_cast %165 : i32 to index
        %c0_128 = arith.constant 0 : index
        %170 = vector.load %arg23[%c0_127, %169, %c0_128] : memref<4x8x8xbf16, #tpu.memory_space<vmem>>, vector<1x8x8xbf16>
        %171 = vector.shape_cast %170 : vector<1x8x8xbf16> to vector<8x8xbf16>
        %cst_129 = arith.constant dense<0.000000e+00> : vector<8x8xf32>
        %172 = tpu.matmul %44, %168, %cst_129 {dimension_numbers = #tpu.dot_dimension_numbers<[1], [1], [0], [0], [0, 0, 1, 0], [], []>} : vector<8x8xbf16>, vector<8x8xbf16>, vector<8x8xf32> -> vector<8x8xf32>
        %173 = tpu.iota {dimensions = array<i32: 1>} : vector<8x8xi32>
        %c8_i32_130 = arith.constant 8 : i32
        %174 = arith.muli %arg29, %c8_i32_130 : i32
        %175 = vector.broadcast %174 : i32 to vector<8x8xi32>
        %176 = arith.addi %173, %175 : vector<8x8xi32>
        %177 = arith.cmpi sge, %41, %176 : vector<8x8xi32>
        %cst_131 = arith.constant -1.000000e+30 : f32
        %178 = vector.broadcast %cst_131 : f32 to vector<8x8xf32>
        %179 = arith.select %177, %172, %178 : vector<8x8xi1>, vector<8x8xf32>
        %c0_132 = arith.constant 0 : index
        %c0_133 = arith.constant 0 : index
        %180 = vector.load %arg26[%c0_132, %c0_133] : memref<8x1xf32, #tpu.memory_space<vmem>>, vector<8x1xf32>
        %cst_134 = arith.constant dense<0xFF800000> : vector<8xf32>
        %181 = vector.multi_reduction <maximumf>, %179, %cst_134 [1] : vector<8x8xf32> to vector<8xf32>
        %182 = vector.shape_cast %181 : vector<8xf32> to vector<8x1xf32>
        %183 = arith.maximumf %180, %182 : vector<8x1xf32>
        %184 = arith.subf %180, %183 : vector<8x1xf32>
        %185 = math.exp %184 : vector<8x1xf32>
        %186 = vector.broadcast %183 : vector<8x1xf32> to vector<8x8xf32>
        %187 = arith.subf %179, %186 : vector<8x8xf32>
        %188 = math.exp %187 : vector<8x8xf32>
        %c0_135 = arith.constant 0 : index
        %c0_136 = arith.constant 0 : index
        %189 = vector.load %arg27[%c0_135, %c0_136] : memref<8x1xf32, #tpu.memory_space<vmem>>, vector<8x1xf32>
        %190 = arith.mulf %185, %189 : vector<8x1xf32>
        %cst_137 = arith.constant dense<0.000000e+00> : vector<8xf32>
        %191 = vector.multi_reduction <add>, %188, %cst_137 [1] : vector<8x8xf32> to vector<8xf32>
        %192 = vector.shape_cast %191 : vector<8xf32> to vector<8x1xf32>
        %193 = arith.addf %190, %192 : vector<8x1xf32>
        %c0_138 = arith.constant 0 : index
        %c0_139 = arith.constant 0 : index
        %194 = vector.load %arg27[%c0_138, %c0_139] : memref<8x1xf32, #tpu.memory_space<vmem>>, vector<8x1xf32>
        tpu.vector_store %arg27[%c0_138, %c0_139], %193 {strides = array<i32>} : memref<8x1xf32, #tpu.memory_space<vmem>>, vector<8x1xf32>,
        %c0_140 = arith.constant 0 : index
        %c0_141 = arith.constant 0 : index
        %195 = vector.load %arg28[%c0_140, %c0_141] : memref<8x8xf32, #tpu.memory_space<vmem>>, vector<8x8xf32>
        %196 = vector.broadcast %185 : vector<8x1xf32> to vector<8x8xf32>
        %197 = arith.mulf %196, %195 : vector<8x8xf32>
        %198 = arith.truncf %188 : vector<8x8xf32> to vector<8x8xbf16>
        %cst_142 = arith.constant dense<0.000000e+00> : vector<8x8xf32>
        %199 = tpu.matmul %198, %171, %cst_142 {dimension_numbers = #tpu.dot_dimension_numbers<[1], [0], [0], [1], [0, 0, 1, 1], [], []>} : vector<8x8xbf16>, vector<8x8xbf16>, vector<8x8xf32> -> vector<8x8xf32>
        %200 = arith.addf %197, %199 : vector<8x8xf32>
        %c0_143 = arith.constant 0 : index
        %c0_144 = arith.constant 0 : index
        %201 = vector.load %arg28[%c0_143, %c0_144] : memref<8x8xf32, #tpu.memory_space<vmem>>, vector<8x8xf32>
        tpu.vector_store %arg28[%c0_143, %c0_144], %200 {strides = array<i32>} : memref<8x8xf32, #tpu.memory_space<vmem>>, vector<8x8xf32>,
        %c0_145 = arith.constant 0 : index
        %c0_146 = arith.constant 0 : index
        %202 = vector.load %arg26[%c0_145, %c0_146] : memref<8x1xf32, #tpu.memory_space<vmem>>, vector<8x1xf32>
        tpu.vector_store %arg26[%c0_145, %c0_146], %183 {strides = array<i32>} : memref<8x1xf32, #tpu.memory_space<vmem>>, vector<8x1xf32>,
      }
      %c0_40 = arith.constant 0 : index
      %c0_41 = arith.constant 0 : index
      %54 = vector.load %arg28[%c0_40, %c0_41] : memref<8x8xf32, #tpu.memory_space<vmem>>, vector<8x8xf32>
      %c0_42 = arith.constant 0 : index
      %c0_43 = arith.constant 0 : index
      %55 = vector.load %arg27[%c0_42, %c0_43] : memref<8x1xf32, #tpu.memory_space<vmem>>, vector<8x1xf32>
      %56 = tpu.reciprocal %55 {approx = true} : vector<8x1xf32> -> vector<8x1xf32>
      %57 = vector.broadcast %56 : vector<8x1xf32> to vector<8x8xf32>
      %58 = arith.mulf %54, %57 : vector<8x8xf32>
      %59 = arith.truncf %58 : vector<8x8xf32> to vector<8x8xbf16>
      %c0_44 = arith.constant 0 : index
      %c0_45 = arith.constant 0 : index
      %c0_46 = arith.constant 0 : index
      %60 = vector.load %arg11[%c0_44, %c0_45, %c0_46] : memref<4x8x32xbf16, #tpu.memory_space<vmem>>, vector<1x8x32xbf16>
      %61 = vector.shape_cast %60 : vector<1x8x32xbf16> to vector<8x32xbf16>
      %cst_47 = arith.constant dense<0.000000e+00> : vector<8x32xf32>
      %62 = tpu.matmul %59, %61, %cst_47 {dimension_numbers = #tpu.dot_dimension_numbers<[1], [0], [0], [1], [0, 0, 1, 1], [], []>} : vector<8x8xbf16>, vector<8x32xbf16>, vector<8x32xf32> -> vector<8x32xf32>
      %63 = arith.addf %42, %62 : vector<8x32xf32>
      %64 = vector.extract_strided_slice %37 {offsets = [0, 8], sizes = [8, 8], strides = [1, 1]} : vector<8x32xf32> to vector<8x8xf32>
      %65 = arith.truncf %64 : vector<8x8xf32> to vector<8x8xbf16>
      %cst_48 = arith.constant -1.000000e+30 : f32
      %66 = vector.broadcast %cst_48 : f32 to vector<8x1xf32>
      %c0_49 = arith.constant 0 : index
      %c0_50 = arith.constant 0 : index
      %67 = vector.load %arg26[%c0_49, %c0_50] : memref<8x1xf32, #tpu.memory_space<vmem>>, vector<8x1xf32>
      tpu.vector_store %arg26[%c0_49, %c0_50], %66 {strides = array<i32>} : memref<8x1xf32, #tpu.memory_space<vmem>>, vector<8x1xf32>,
      %cst_51 = arith.constant 0.000000e+00 : f32
      %68 = vector.broadcast %cst_51 : f32 to vector<8x1xf32>
      %c0_52 = arith.constant 0 : index
      %c0_53 = arith.constant 0 : index
      %69 = vector.load %arg27[%c0_52, %c0_53] : memref<8x1xf32, #tpu.memory_space<vmem>>, vector<8x1xf32>
      tpu.vector_store %arg27[%c0_52, %c0_53], %68 {strides = array<i32>} : memref<8x1xf32, #tpu.memory_space<vmem>>, vector<8x1xf32>,
      %cst_54 = arith.constant 0.000000e+00 : f32
      %70 = vector.broadcast %cst_54 : f32 to vector<8x8xf32>
      %c0_55 = arith.constant 0 : index
      %c0_56 = arith.constant 0 : index
      %71 = vector.load %arg28[%c0_55, %c0_56] : memref<8x8xf32, #tpu.memory_space<vmem>>, vector<8x8xf32>
      tpu.vector_store %arg28[%c0_55, %c0_56], %70 {strides = array<i32>} : memref<8x8xf32, #tpu.memory_space<vmem>>, vector<8x8xf32>,
      %c1_i32_57 = arith.constant 1 : i32
      %72 = arith.addi %arg1, %c1_i32_57 : i32
      %c0_i32_58 = arith.constant 0 : i32
      %c0_i32_59 = arith.constant 0 : i32
      %73 = arith.subi %72, %c0_i32_59 : i32
      %74 = arith.addi %c0_i32_59, %73 : i32
      %c1_i32_60 = arith.constant 1 : i32
      scf.for %arg29 = %c0_i32_59 to %74 step %c1_i32_60  : i32 {
        %c8_i32_124 = arith.constant 8 : i32
        %164 = arith.muli %arg29, %c8_i32_124 : i32
        %165 = tpu.assume_multiple %164, 8 : i32
        %c1_125 = arith.constant 1 : index
        %166 = arith.index_cast %165 : i32 to index
        %c0_126 = arith.constant 0 : index
        %167 = vector.load %arg22[%c1_125, %166, %c0_126] : memref<4x8x8xbf16, #tpu.memory_space<vmem>>, vector<1x8x8xbf16>
        %168 = vector.shape_cast %167 : vector<1x8x8xbf16> to vector<8x8xbf16>
        %c1_127 = arith.constant 1 : index
        %169 = arith.index_cast %165 : i32 to index
        %c0_128 = arith.constant 0 : index
        %170 = vector.load %arg23[%c1_127, %169, %c0_128] : memref<4x8x8xbf16, #tpu.memory_space<vmem>>, vector<1x8x8xbf16>
        %171 = vector.shape_cast %170 : vector<1x8x8xbf16> to vector<8x8xbf16>
        %cst_129 = arith.constant dense<0.000000e+00> : vector<8x8xf32>
        %172 = tpu.matmul %65, %168, %cst_129 {dimension_numbers = #tpu.dot_dimension_numbers<[1], [1], [0], [0], [0, 0, 1, 0], [], []>} : vector<8x8xbf16>, vector<8x8xbf16>, vector<8x8xf32> -> vector<8x8xf32>
        %173 = tpu.iota {dimensions = array<i32: 1>} : vector<8x8xi32>
        %c8_i32_130 = arith.constant 8 : i32
        %174 = arith.muli %arg29, %c8_i32_130 : i32
        %175 = vector.broadcast %174 : i32 to vector<8x8xi32>
        %176 = arith.addi %173, %175 : vector<8x8xi32>
        %177 = arith.cmpi sge, %41, %176 : vector<8x8xi32>
        %cst_131 = arith.constant -1.000000e+30 : f32
        %178 = vector.broadcast %cst_131 : f32 to vector<8x8xf32>
        %179 = arith.select %177, %172, %178 : vector<8x8xi1>, vector<8x8xf32>
        %c0_132 = arith.constant 0 : index
        %c0_133 = arith.constant 0 : index
        %180 = vector.load %arg26[%c0_132, %c0_133] : memref<8x1xf32, #tpu.memory_space<vmem>>, vector<8x1xf32>
        %cst_134 = arith.constant dense<0xFF800000> : vector<8xf32>
        %181 = vector.multi_reduction <maximumf>, %179, %cst_134 [1] : vector<8x8xf32> to vector<8xf32>
        %182 = vector.shape_cast %181 : vector<8xf32> to vector<8x1xf32>
        %183 = arith.maximumf %180, %182 : vector<8x1xf32>
        %184 = arith.subf %180, %183 : vector<8x1xf32>
        %185 = math.exp %184 : vector<8x1xf32>
        %186 = vector.broadcast %183 : vector<8x1xf32> to vector<8x8xf32>
        %187 = arith.subf %179, %186 : vector<8x8xf32>
        %188 = math.exp %187 : vector<8x8xf32>
        %c0_135 = arith.constant 0 : index
        %c0_136 = arith.constant 0 : index
        %189 = vector.load %arg27[%c0_135, %c0_136] : memref<8x1xf32, #tpu.memory_space<vmem>>, vector<8x1xf32>
        %190 = arith.mulf %185, %189 : vector<8x1xf32>
        %cst_137 = arith.constant dense<0.000000e+00> : vector<8xf32>
        %191 = vector.multi_reduction <add>, %188, %cst_137 [1] : vector<8x8xf32> to vector<8xf32>
        %192 = vector.shape_cast %191 : vector<8xf32> to vector<8x1xf32>
        %193 = arith.addf %190, %192 : vector<8x1xf32>
        %c0_138 = arith.constant 0 : index
        %c0_139 = arith.constant 0 : index
        %194 = vector.load %arg27[%c0_138, %c0_139] : memref<8x1xf32, #tpu.memory_space<vmem>>, vector<8x1xf32>
        tpu.vector_store %arg27[%c0_138, %c0_139], %193 {strides = array<i32>} : memref<8x1xf32, #tpu.memory_space<vmem>>, vector<8x1xf32>,
        %c0_140 = arith.constant 0 : index
        %c0_141 = arith.constant 0 : index
        %195 = vector.load %arg28[%c0_140, %c0_141] : memref<8x8xf32, #tpu.memory_space<vmem>>, vector<8x8xf32>
        %196 = vector.broadcast %185 : vector<8x1xf32> to vector<8x8xf32>
        %197 = arith.mulf %196, %195 : vector<8x8xf32>
        %198 = arith.truncf %188 : vector<8x8xf32> to vector<8x8xbf16>
        %cst_142 = arith.constant dense<0.000000e+00> : vector<8x8xf32>
        %199 = tpu.matmul %198, %171, %cst_142 {dimension_numbers = #tpu.dot_dimension_numbers<[1], [0], [0], [1], [0, 0, 1, 1], [], []>} : vector<8x8xbf16>, vector<8x8xbf16>, vector<8x8xf32> -> vector<8x8xf32>
        %200 = arith.addf %197, %199 : vector<8x8xf32>
        %c0_143 = arith.constant 0 : index
        %c0_144 = arith.constant 0 : index
        %201 = vector.load %arg28[%c0_143, %c0_144] : memref<8x8xf32, #tpu.memory_space<vmem>>, vector<8x8xf32>
        tpu.vector_store %arg28[%c0_143, %c0_144], %200 {strides = array<i32>} : memref<8x8xf32, #tpu.memory_space<vmem>>, vector<8x8xf32>,
        %c0_145 = arith.constant 0 : index
        %c0_146 = arith.constant 0 : index
        %202 = vector.load %arg26[%c0_145, %c0_146] : memref<8x1xf32, #tpu.memory_space<vmem>>, vector<8x1xf32>
        tpu.vector_store %arg26[%c0_145, %c0_146], %183 {strides = array<i32>} : memref<8x1xf32, #tpu.memory_space<vmem>>, vector<8x1xf32>,
      }
      %c0_61 = arith.constant 0 : index
      %c0_62 = arith.constant 0 : index
      %75 = vector.load %arg28[%c0_61, %c0_62] : memref<8x8xf32, #tpu.memory_space<vmem>>, vector<8x8xf32>
      %c0_63 = arith.constant 0 : index
      %c0_64 = arith.constant 0 : index
      %76 = vector.load %arg27[%c0_63, %c0_64] : memref<8x1xf32, #tpu.memory_space<vmem>>, vector<8x1xf32>
      %77 = tpu.reciprocal %76 {approx = true} : vector<8x1xf32> -> vector<8x1xf32>
      %78 = vector.broadcast %77 : vector<8x1xf32> to vector<8x8xf32>
      %79 = arith.mulf %75, %78 : vector<8x8xf32>
      %80 = arith.truncf %79 : vector<8x8xf32> to vector<8x8xbf16>
      %c1 = arith.constant 1 : index
      %c0_65 = arith.constant 0 : index
      %c0_66 = arith.constant 0 : index
      %81 = vector.load %arg11[%c1, %c0_65, %c0_66] : memref<4x8x32xbf16, #tpu.memory_space<vmem>>, vector<1x8x32xbf16>
      %82 = vector.shape_cast %81 : vector<1x8x32xbf16> to vector<8x32xbf16>
      %cst_67 = arith.constant dense<0.000000e+00> : vector<8x32xf32>
      %83 = tpu.matmul %80, %82, %cst_67 {dimension_numbers = #tpu.dot_dimension_numbers<[1], [0], [0], [1], [0, 0, 1, 1], [], []>} : vector<8x8xbf16>, vector<8x32xbf16>, vector<8x32xf32> -> vector<8x32xf32>
      %84 = arith.addf %63, %83 : vector<8x32xf32>
      %85 = vector.extract_strided_slice %37 {offsets = [0, 16], sizes = [8, 8], strides = [1, 1]} : vector<8x32xf32> to vector<8x8xf32>
      %86 = arith.truncf %85 : vector<8x8xf32> to vector<8x8xbf16>
      %cst_68 = arith.constant -1.000000e+30 : f32
      %87 = vector.broadcast %cst_68 : f32 to vector<8x1xf32>
      %c0_69 = arith.constant 0 : index
      %c0_70 = arith.constant 0 : index
      %88 = vector.load %arg26[%c0_69, %c0_70] : memref<8x1xf32, #tpu.memory_space<vmem>>, vector<8x1xf32>
      tpu.vector_store %arg26[%c0_69, %c0_70], %87 {strides = array<i32>} : memref<8x1xf32, #tpu.memory_space<vmem>>, vector<8x1xf32>,
      %cst_71 = arith.constant 0.000000e+00 : f32
      %89 = vector.broadcast %cst_71 : f32 to vector<8x1xf32>
      %c0_72 = arith.constant 0 : index
      %c0_73 = arith.constant 0 : index
      %90 = vector.load %arg27[%c0_72, %c0_73] : memref<8x1xf32, #tpu.memory_space<vmem>>, vector<8x1xf32>
      tpu.vector_store %arg27[%c0_72, %c0_73], %89 {strides = array<i32>} : memref<8x1xf32, #tpu.memory_space<vmem>>, vector<8x1xf32>,
      %cst_74 = arith.constant 0.000000e+00 : f32
      %91 = vector.broadcast %cst_74 : f32 to vector<8x8xf32>
      %c0_75 = arith.constant 0 : index
      %c0_76 = arith.constant 0 : index
      %92 = vector.load %arg28[%c0_75, %c0_76] : memref<8x8xf32, #tpu.memory_space<vmem>>, vector<8x8xf32>
      tpu.vector_store %arg28[%c0_75, %c0_76], %91 {strides = array<i32>} : memref<8x8xf32, #tpu.memory_space<vmem>>, vector<8x8xf32>,
      %c1_i32_77 = arith.constant 1 : i32
      %93 = arith.addi %arg1, %c1_i32_77 : i32
      %c0_i32_78 = arith.constant 0 : i32
      %c0_i32_79 = arith.constant 0 : i32
      %94 = arith.subi %93, %c0_i32_79 : i32
      %95 = arith.addi %c0_i32_79, %94 : i32
      %c1_i32_80 = arith.constant 1 : i32
      scf.for %arg29 = %c0_i32_79 to %95 step %c1_i32_80  : i32 {
        %c8_i32_124 = arith.constant 8 : i32
        %164 = arith.muli %arg29, %c8_i32_124 : i32
        %165 = tpu.assume_multiple %164, 8 : i32
        %c2_125 = arith.constant 2 : index
        %166 = arith.index_cast %165 : i32 to index
        %c0_126 = arith.constant 0 : index
        %167 = vector.load %arg22[%c2_125, %166, %c0_126] : memref<4x8x8xbf16, #tpu.memory_space<vmem>>, vector<1x8x8xbf16>
        %168 = vector.shape_cast %167 : vector<1x8x8xbf16> to vector<8x8xbf16>
        %c2_127 = arith.constant 2 : index
        %169 = arith.index_cast %165 : i32 to index
        %c0_128 = arith.constant 0 : index
        %170 = vector.load %arg23[%c2_127, %169, %c0_128] : memref<4x8x8xbf16, #tpu.memory_space<vmem>>, vector<1x8x8xbf16>
        %171 = vector.shape_cast %170 : vector<1x8x8xbf16> to vector<8x8xbf16>
        %cst_129 = arith.constant dense<0.000000e+00> : vector<8x8xf32>
        %172 = tpu.matmul %86, %168, %cst_129 {dimension_numbers = #tpu.dot_dimension_numbers<[1], [1], [0], [0], [0, 0, 1, 0], [], []>} : vector<8x8xbf16>, vector<8x8xbf16>, vector<8x8xf32> -> vector<8x8xf32>
        %173 = tpu.iota {dimensions = array<i32: 1>} : vector<8x8xi32>
        %c8_i32_130 = arith.constant 8 : i32
        %174 = arith.muli %arg29, %c8_i32_130 : i32
        %175 = vector.broadcast %174 : i32 to vector<8x8xi32>
        %176 = arith.addi %173, %175 : vector<8x8xi32>
        %177 = arith.cmpi sge, %41, %176 : vector<8x8xi32>
        %cst_131 = arith.constant -1.000000e+30 : f32
        %178 = vector.broadcast %cst_131 : f32 to vector<8x8xf32>
        %179 = arith.select %177, %172, %178 : vector<8x8xi1>, vector<8x8xf32>
        %c0_132 = arith.constant 0 : index
        %c0_133 = arith.constant 0 : index
        %180 = vector.load %arg26[%c0_132, %c0_133] : memref<8x1xf32, #tpu.memory_space<vmem>>, vector<8x1xf32>
        %cst_134 = arith.constant dense<0xFF800000> : vector<8xf32>
        %181 = vector.multi_reduction <maximumf>, %179, %cst_134 [1] : vector<8x8xf32> to vector<8xf32>
        %182 = vector.shape_cast %181 : vector<8xf32> to vector<8x1xf32>
        %183 = arith.maximumf %180, %182 : vector<8x1xf32>
        %184 = arith.subf %180, %183 : vector<8x1xf32>
        %185 = math.exp %184 : vector<8x1xf32>
        %186 = vector.broadcast %183 : vector<8x1xf32> to vector<8x8xf32>
        %187 = arith.subf %179, %186 : vector<8x8xf32>
        %188 = math.exp %187 : vector<8x8xf32>
        %c0_135 = arith.constant 0 : index
        %c0_136 = arith.constant 0 : index
        %189 = vector.load %arg27[%c0_135, %c0_136] : memref<8x1xf32, #tpu.memory_space<vmem>>, vector<8x1xf32>
        %190 = arith.mulf %185, %189 : vector<8x1xf32>
        %cst_137 = arith.constant dense<0.000000e+00> : vector<8xf32>
        %191 = vector.multi_reduction <add>, %188, %cst_137 [1] : vector<8x8xf32> to vector<8xf32>
        %192 = vector.shape_cast %191 : vector<8xf32> to vector<8x1xf32>
        %193 = arith.addf %190, %192 : vector<8x1xf32>
        %c0_138 = arith.constant 0 : index
        %c0_139 = arith.constant 0 : index
        %194 = vector.load %arg27[%c0_138, %c0_139] : memref<8x1xf32, #tpu.memory_space<vmem>>, vector<8x1xf32>
        tpu.vector_store %arg27[%c0_138, %c0_139], %193 {strides = array<i32>} : memref<8x1xf32, #tpu.memory_space<vmem>>, vector<8x1xf32>,
        %c0_140 = arith.constant 0 : index
        %c0_141 = arith.constant 0 : index
        %195 = vector.load %arg28[%c0_140, %c0_141] : memref<8x8xf32, #tpu.memory_space<vmem>>, vector<8x8xf32>
        %196 = vector.broadcast %185 : vector<8x1xf32> to vector<8x8xf32>
        %197 = arith.mulf %196, %195 : vector<8x8xf32>
        %198 = arith.truncf %188 : vector<8x8xf32> to vector<8x8xbf16>
        %cst_142 = arith.constant dense<0.000000e+00> : vector<8x8xf32>
        %199 = tpu.matmul %198, %171, %cst_142 {dimension_numbers = #tpu.dot_dimension_numbers<[1], [0], [0], [1], [0, 0, 1, 1], [], []>} : vector<8x8xbf16>, vector<8x8xbf16>, vector<8x8xf32> -> vector<8x8xf32>
        %200 = arith.addf %197, %199 : vector<8x8xf32>
        %c0_143 = arith.constant 0 : index
        %c0_144 = arith.constant 0 : index
        %201 = vector.load %arg28[%c0_143, %c0_144] : memref<8x8xf32, #tpu.memory_space<vmem>>, vector<8x8xf32>
        tpu.vector_store %arg28[%c0_143, %c0_144], %200 {strides = array<i32>} : memref<8x8xf32, #tpu.memory_space<vmem>>, vector<8x8xf32>,
        %c0_145 = arith.constant 0 : index
        %c0_146 = arith.constant 0 : index
        %202 = vector.load %arg26[%c0_145, %c0_146] : memref<8x1xf32, #tpu.memory_space<vmem>>, vector<8x1xf32>
        tpu.vector_store %arg26[%c0_145, %c0_146], %183 {strides = array<i32>} : memref<8x1xf32, #tpu.memory_space<vmem>>, vector<8x1xf32>,
      }
      %c0_81 = arith.constant 0 : index
      %c0_82 = arith.constant 0 : index
      %96 = vector.load %arg28[%c0_81, %c0_82] : memref<8x8xf32, #tpu.memory_space<vmem>>, vector<8x8xf32>
      %c0_83 = arith.constant 0 : index
      %c0_84 = arith.constant 0 : index
      %97 = vector.load %arg27[%c0_83, %c0_84] : memref<8x1xf32, #tpu.memory_space<vmem>>, vector<8x1xf32>
      %98 = tpu.reciprocal %97 {approx = true} : vector<8x1xf32> -> vector<8x1xf32>
      %99 = vector.broadcast %98 : vector<8x1xf32> to vector<8x8xf32>
      %100 = arith.mulf %96, %99 : vector<8x8xf32>
      %101 = arith.truncf %100 : vector<8x8xf32> to vector<8x8xbf16>
      %c2 = arith.constant 2 : index
      %c0_85 = arith.constant 0 : index
      %c0_86 = arith.constant 0 : index
      %102 = vector.load %arg11[%c2, %c0_85, %c0_86] : memref<4x8x32xbf16, #tpu.memory_space<vmem>>, vector<1x8x32xbf16>
      %103 = vector.shape_cast %102 : vector<1x8x32xbf16> to vector<8x32xbf16>
      %cst_87 = arith.constant dense<0.000000e+00> : vector<8x32xf32>
      %104 = tpu.matmul %101, %103, %cst_87 {dimension_numbers = #tpu.dot_dimension_numbers<[1], [0], [0], [1], [0, 0, 1, 1], [], []>} : vector<8x8xbf16>, vector<8x32xbf16>, vector<8x32xf32> -> vector<8x32xf32>
      %105 = arith.addf %84, %104 : vector<8x32xf32>
      %106 = vector.extract_strided_slice %37 {offsets = [0, 24], sizes = [8, 8], strides = [1, 1]} : vector<8x32xf32> to vector<8x8xf32>
      %107 = arith.truncf %106 : vector<8x8xf32> to vector<8x8xbf16>
      %cst_88 = arith.constant -1.000000e+30 : f32
      %108 = vector.broadcast %cst_88 : f32 to vector<8x1xf32>
      %c0_89 = arith.constant 0 : index
      %c0_90 = arith.constant 0 : index
      %109 = vector.load %arg26[%c0_89, %c0_90] : memref<8x1xf32, #tpu.memory_space<vmem>>, vector<8x1xf32>
      tpu.vector_store %arg26[%c0_89, %c0_90], %108 {strides = array<i32>} : memref<8x1xf32, #tpu.memory_space<vmem>>, vector<8x1xf32>,
      %cst_91 = arith.constant 0.000000e+00 : f32
      %110 = vector.broadcast %cst_91 : f32 to vector<8x1xf32>
      %c0_92 = arith.constant 0 : index
      %c0_93 = arith.constant 0 : index
      %111 = vector.load %arg27[%c0_92, %c0_93] : memref<8x1xf32, #tpu.memory_space<vmem>>, vector<8x1xf32>
      tpu.vector_store %arg27[%c0_92, %c0_93], %110 {strides = array<i32>} : memref<8x1xf32, #tpu.memory_space<vmem>>, vector<8x1xf32>,
      %cst_94 = arith.constant 0.000000e+00 : f32
      %112 = vector.broadcast %cst_94 : f32 to vector<8x8xf32>
      %c0_95 = arith.constant 0 : index
      %c0_96 = arith.constant 0 : index
      %113 = vector.load %arg28[%c0_95, %c0_96] : memref<8x8xf32, #tpu.memory_space<vmem>>, vector<8x8xf32>
      tpu.vector_store %arg28[%c0_95, %c0_96], %112 {strides = array<i32>} : memref<8x8xf32, #tpu.memory_space<vmem>>, vector<8x8xf32>,
      %c1_i32_97 = arith.constant 1 : i32
      %114 = arith.addi %arg1, %c1_i32_97 : i32
      %c0_i32_98 = arith.constant 0 : i32
      %c0_i32_99 = arith.constant 0 : i32
      %115 = arith.subi %114, %c0_i32_99 : i32
      %116 = arith.addi %c0_i32_99, %115 : i32
      %c1_i32_100 = arith.constant 1 : i32
      scf.for %arg29 = %c0_i32_99 to %116 step %c1_i32_100  : i32 {
        %c8_i32_124 = arith.constant 8 : i32
        %164 = arith.muli %arg29, %c8_i32_124 : i32
        %165 = tpu.assume_multiple %164, 8 : i32
        %c3_125 = arith.constant 3 : index
        %166 = arith.index_cast %165 : i32 to index
        %c0_126 = arith.constant 0 : index
        %167 = vector.load %arg22[%c3_125, %166, %c0_126] : memref<4x8x8xbf16, #tpu.memory_space<vmem>>, vector<1x8x8xbf16>
        %168 = vector.shape_cast %167 : vector<1x8x8xbf16> to vector<8x8xbf16>
        %c3_127 = arith.constant 3 : index
        %169 = arith.index_cast %165 : i32 to index
        %c0_128 = arith.constant 0 : index
        %170 = vector.load %arg23[%c3_127, %169, %c0_128] : memref<4x8x8xbf16, #tpu.memory_space<vmem>>, vector<1x8x8xbf16>
        %171 = vector.shape_cast %170 : vector<1x8x8xbf16> to vector<8x8xbf16>
        %cst_129 = arith.constant dense<0.000000e+00> : vector<8x8xf32>
        %172 = tpu.matmul %107, %168, %cst_129 {dimension_numbers = #tpu.dot_dimension_numbers<[1], [1], [0], [0], [0, 0, 1, 0], [], []>} : vector<8x8xbf16>, vector<8x8xbf16>, vector<8x8xf32> -> vector<8x8xf32>
        %173 = tpu.iota {dimensions = array<i32: 1>} : vector<8x8xi32>
        %c8_i32_130 = arith.constant 8 : i32
        %174 = arith.muli %arg29, %c8_i32_130 : i32
        %175 = vector.broadcast %174 : i32 to vector<8x8xi32>
        %176 = arith.addi %173, %175 : vector<8x8xi32>
        %177 = arith.cmpi sge, %41, %176 : vector<8x8xi32>
        %cst_131 = arith.constant -1.000000e+30 : f32
        %178 = vector.broadcast %cst_131 : f32 to vector<8x8xf32>
        %179 = arith.select %177, %172, %178 : vector<8x8xi1>, vector<8x8xf32>
        %c0_132 = arith.constant 0 : index
        %c0_133 = arith.constant 0 : index
        %180 = vector.load %arg26[%c0_132, %c0_133] : memref<8x1xf32, #tpu.memory_space<vmem>>, vector<8x1xf32>
        %cst_134 = arith.constant dense<0xFF800000> : vector<8xf32>
        %181 = vector.multi_reduction <maximumf>, %179, %cst_134 [1] : vector<8x8xf32> to vector<8xf32>
        %182 = vector.shape_cast %181 : vector<8xf32> to vector<8x1xf32>
        %183 = arith.maximumf %180, %182 : vector<8x1xf32>
        %184 = arith.subf %180, %183 : vector<8x1xf32>
        %185 = math.exp %184 : vector<8x1xf32>
        %186 = vector.broadcast %183 : vector<8x1xf32> to vector<8x8xf32>
        %187 = arith.subf %179, %186 : vector<8x8xf32>
        %188 = math.exp %187 : vector<8x8xf32>
        %c0_135 = arith.constant 0 : index
        %c0_136 = arith.constant 0 : index
        %189 = vector.load %arg27[%c0_135, %c0_136] : memref<8x1xf32, #tpu.memory_space<vmem>>, vector<8x1xf32>
        %190 = arith.mulf %185, %189 : vector<8x1xf32>
        %cst_137 = arith.constant dense<0.000000e+00> : vector<8xf32>
        %191 = vector.multi_reduction <add>, %188, %cst_137 [1] : vector<8x8xf32> to vector<8xf32>
        %192 = vector.shape_cast %191 : vector<8xf32> to vector<8x1xf32>
        %193 = arith.addf %190, %192 : vector<8x1xf32>
        %c0_138 = arith.constant 0 : index
        %c0_139 = arith.constant 0 : index
        %194 = vector.load %arg27[%c0_138, %c0_139] : memref<8x1xf32, #tpu.memory_space<vmem>>, vector<8x1xf32>
        tpu.vector_store %arg27[%c0_138, %c0_139], %193 {strides = array<i32>} : memref<8x1xf32, #tpu.memory_space<vmem>>, vector<8x1xf32>,
        %c0_140 = arith.constant 0 : index
        %c0_141 = arith.constant 0 : index
        %195 = vector.load %arg28[%c0_140, %c0_141] : memref<8x8xf32, #tpu.memory_space<vmem>>, vector<8x8xf32>
        %196 = vector.broadcast %185 : vector<8x1xf32> to vector<8x8xf32>
        %197 = arith.mulf %196, %195 : vector<8x8xf32>
        %198 = arith.truncf %188 : vector<8x8xf32> to vector<8x8xbf16>
        %cst_142 = arith.constant dense<0.000000e+00> : vector<8x8xf32>
        %199 = tpu.matmul %198, %171, %cst_142 {dimension_numbers = #tpu.dot_dimension_numbers<[1], [0], [0], [1], [0, 0, 1, 1], [], []>} : vector<8x8xbf16>, vector<8x8xbf16>, vector<8x8xf32> -> vector<8x8xf32>
        %200 = arith.addf %197, %199 : vector<8x8xf32>
        %c0_143 = arith.constant 0 : index
        %c0_144 = arith.constant 0 : index
        %201 = vector.load %arg28[%c0_143, %c0_144] : memref<8x8xf32, #tpu.memory_space<vmem>>, vector<8x8xf32>
        tpu.vector_store %arg28[%c0_143, %c0_144], %200 {strides = array<i32>} : memref<8x8xf32, #tpu.memory_space<vmem>>, vector<8x8xf32>,
        %c0_145 = arith.constant 0 : index
        %c0_146 = arith.constant 0 : index
        %202 = vector.load %arg26[%c0_145, %c0_146] : memref<8x1xf32, #tpu.memory_space<vmem>>, vector<8x1xf32>
        tpu.vector_store %arg26[%c0_145, %c0_146], %183 {strides = array<i32>} : memref<8x1xf32, #tpu.memory_space<vmem>>, vector<8x1xf32>,
      }
      %c0_101 = arith.constant 0 : index
      %c0_102 = arith.constant 0 : index
      %117 = vector.load %arg28[%c0_101, %c0_102] : memref<8x8xf32, #tpu.memory_space<vmem>>, vector<8x8xf32>
      %c0_103 = arith.constant 0 : index
      %c0_104 = arith.constant 0 : index
      %118 = vector.load %arg27[%c0_103, %c0_104] : memref<8x1xf32, #tpu.memory_space<vmem>>, vector<8x1xf32>
      %119 = tpu.reciprocal %118 {approx = true} : vector<8x1xf32> -> vector<8x1xf32>
      %120 = vector.broadcast %119 : vector<8x1xf32> to vector<8x8xf32>
      %121 = arith.mulf %117, %120 : vector<8x8xf32>
      %122 = arith.truncf %121 : vector<8x8xf32> to vector<8x8xbf16>
      %c3 = arith.constant 3 : index
      %c0_105 = arith.constant 0 : index
      %c0_106 = arith.constant 0 : index
      %123 = vector.load %arg11[%c3, %c0_105, %c0_106] : memref<4x8x32xbf16, #tpu.memory_space<vmem>>, vector<1x8x32xbf16>
      %124 = vector.shape_cast %123 : vector<1x8x32xbf16> to vector<8x32xbf16>
      %cst_107 = arith.constant dense<0.000000e+00> : vector<8x32xf32>
      %125 = tpu.matmul %122, %124, %cst_107 {dimension_numbers = #tpu.dot_dimension_numbers<[1], [0], [0], [1], [0, 0, 1, 1], [], []>} : vector<8x8xbf16>, vector<8x32xbf16>, vector<8x32xf32> -> vector<8x32xf32>
      %126 = arith.addf %105, %125 : vector<8x32xf32>
      %c0_108 = arith.constant 0 : index
      %c0_109 = arith.constant 0 : index
      %127 = vector.load %arg12[%c0_108, %c0_109] : memref<1x32xf32, #tpu.memory_space<vmem>>, vector<1x32xf32>
      %128 = vector.shape_cast %127 : vector<1x32xf32> to vector<32xf32>
      %129 = vector.shape_cast %128 : vector<32xf32> to vector<1x32xf32>
      %130 = vector.broadcast %129 : vector<1x32xf32> to vector<8x32xf32>
      %131 = arith.addf %126, %130 : vector<8x32xf32>
      %132 = arith.addf %131, %29 : vector<8x32xf32>
      %c0_110 = arith.constant 0 : index
      %c0_111 = arith.constant 0 : index
      %133 = vector.load %arg13[%c0_110, %c0_111] : memref<1x32xf32, #tpu.memory_space<vmem>>, vector<1x32xf32>
      %134 = vector.shape_cast %133 : vector<1x32xf32> to vector<32xf32>
      %c0_112 = arith.constant 0 : index
      %c0_113 = arith.constant 0 : index
      %135 = vector.load %arg14[%c0_112, %c0_113] : memref<1x32xf32, #tpu.memory_space<vmem>>, vector<1x32xf32>
      %136 = vector.shape_cast %135 : vector<1x32xf32> to vector<32xf32>
      %cst_114 = arith.constant dense<0.000000e+00> : vector<8xf32>
      %137 = vector.multi_reduction <add>, %132, %cst_114 [1] : vector<8x32xf32> to vector<8xf32>
      %138 = vector.shape_cast %137 : vector<8xf32> to vector<8x1xf32>
      %cst_115 = arith.constant 3.200000e+01 : f32
      %139 = vector.broadcast %cst_115 : f32 to vector<8x1xf32>
      %140 = arith.divf %138, %139 : vector<8x1xf32>
      %141 = vector.broadcast %140 : vector<8x1xf32> to vector<8x32xf32>
      %142 = arith.subf %132, %141 : vector<8x32xf32>
      %143 = arith.mulf %142, %142 : vector<8x32xf32>
      %cst_116 = arith.constant dense<0.000000e+00> : vector<8xf32>
      %144 = vector.multi_reduction <add>, %143, %cst_116 [1] : vector<8x32xf32> to vector<8xf32>
      %145 = vector.shape_cast %144 : vector<8xf32> to vector<8x1xf32>
      %cst_117 = arith.constant 3.200000e+01 : f32
      %146 = vector.broadcast %cst_117 : f32 to vector<8x1xf32>
      %147 = arith.divf %145, %146 : vector<8x1xf32>
      %148 = vector.broadcast %140 : vector<8x1xf32> to vector<8x32xf32>
      %149 = arith.subf %132, %148 : vector<8x32xf32>
      %cst_118 = arith.constant 9.99999974E-6 : f32
      %150 = vector.broadcast %cst_118 : f32 to vector<8x1xf32>
      %151 = arith.addf %147, %150 : vector<8x1xf32>
      %152 = math.rsqrt %151 : vector<8x1xf32>
      %153 = vector.broadcast %152 : vector<8x1xf32> to vector<8x32xf32>
      %154 = arith.mulf %149, %153 : vector<8x32xf32>
      %155 = vector.shape_cast %134 : vector<32xf32> to vector<1x32xf32>
      %156 = vector.broadcast %155 : vector<1x32xf32> to vector<8x32xf32>
      %157 = arith.mulf %154, %156 : vector<8x32xf32>
      %158 = vector.shape_cast %136 : vector<32xf32> to vector<1x32xf32>
      %159 = vector.broadcast %158 : vector<1x32xf32> to vector<8x32xf32>
      %160 = arith.addf %157, %159 : vector<8x32xf32>
      %c0_119 = arith.constant 0 : index
      %c0_120 = arith.constant 0 : index
      %161 = vector.load %arg24[%c0_119, %c0_120] : memref<8x32xf32, #tpu.memory_space<vmem>>, vector<8x32xf32>
      tpu.vector_store %arg24[%c0_119, %c0_120], %160 {strides = array<i32>} : memref<8x32xf32, #tpu.memory_space<vmem>>, vector<8x32xf32>,
      %cst_121 = arith.constant 0.000000e+00 : f32
      %162 = vector.broadcast %cst_121 : f32 to vector<8x32xf32>
      %c0_122 = arith.constant 0 : index
      %c0_123 = arith.constant 0 : index
      %163 = vector.load %arg25[%c0_122, %c0_123] : memref<8x32xf32, #tpu.memory_space<vmem>>, vector<8x32xf32>
      tpu.vector_store %arg25[%c0_122, %c0_123], %162 {strides = array<i32>} : memref<8x32xf32, #tpu.memory_space<vmem>>, vector<8x32xf32>,
    } else {
    }
    %c0 = arith.constant 0 : index
    %c0_4 = arith.constant 0 : index
    %8 = vector.load %arg24[%c0, %c0_4] : memref<8x32xf32, #tpu.memory_space<vmem>>, vector<8x32xf32>
    %9 = arith.truncf %8 : vector<8x32xf32> to vector<8x32xbf16>
    %c0_5 = arith.constant 0 : index
    %c0_6 = arith.constant 0 : index
    %10 = vector.load %arg15[%c0_5, %c0_6] : memref<32x128xbf16, #tpu.memory_space<vmem>>, vector<32x128xbf16>
    %cst = arith.constant dense<0.000000e+00> : vector<8x128xf32>
    %11 = tpu.matmul %9, %10, %cst {dimension_numbers = #tpu.dot_dimension_numbers<[1], [0], [0], [1], [0, 0, 1, 1], [], []>} : vector<8x32xbf16>, vector<32x128xbf16>, vector<8x128xf32> -> vector<8x128xf32>
    %c0_7 = arith.constant 0 : index
    %c0_8 = arith.constant 0 : index
    %12 = vector.load %arg16[%c0_7, %c0_8] : memref<1x128xf32, #tpu.memory_space<vmem>>, vector<1x128xf32>
    %13 = vector.shape_cast %12 : vector<1x128xf32> to vector<128xf32>
    %14 = vector.shape_cast %13 : vector<128xf32> to vector<1x128xf32>
    %15 = vector.broadcast %14 : vector<1x128xf32> to vector<8x128xf32>
    %16 = arith.addf %11, %15 : vector<8x128xf32>
    %cst_9 = arith.constant 0.000000e+00 : f32
    %17 = vector.broadcast %cst_9 : f32 to vector<8x128xf32>
    %18 = arith.maximumf %16, %17 : vector<8x128xf32>
    %c0_10 = arith.constant 0 : index
    %c0_11 = arith.constant 0 : index
    %19 = vector.load %arg25[%c0_10, %c0_11] : memref<8x32xf32, #tpu.memory_space<vmem>>, vector<8x32xf32>
    %20 = arith.truncf %18 : vector<8x128xf32> to vector<8x128xbf16>
    %c0_12 = arith.constant 0 : index
    %c0_13 = arith.constant 0 : index
    %21 = vector.load %arg17[%c0_12, %c0_13] : memref<128x32xbf16, #tpu.memory_space<vmem>>, vector<128x32xbf16>
    %cst_14 = arith.constant dense<0.000000e+00> : vector<8x32xf32>
    %22 = tpu.matmul %20, %21, %cst_14 {dimension_numbers = #tpu.dot_dimension_numbers<[1], [0], [0], [1], [0, 0, 1, 1], [], []>} : vector<8x128xbf16>, vector<128x32xbf16>, vector<8x32xf32> -> vector<8x32xf32>
    %23 = arith.addf %19, %22 : vector<8x32xf32>
    %c0_15 = arith.constant 0 : index
    %c0_16 = arith.constant 0 : index
    %24 = vector.load %arg25[%c0_15, %c0_16] : memref<8x32xf32, #tpu.memory_space<vmem>>, vector<8x32xf32>
    tpu.vector_store %arg25[%c0_15, %c0_16], %23 {strides = array<i32>} : memref<8x32xf32, #tpu.memory_space<vmem>>, vector<8x32xf32>,
    %c0_i32_17 = arith.constant 0 : i32
    %25 = arith.cmpi eq, %arg2, %c0_i32_17 : i32
    %26 = arith.extui %25 : i1 to i32
    %c0_i32_18 = arith.constant 0 : i32
    %27 = arith.cmpi ne, %26, %c0_i32_18 : i32
    scf.if %27 {
      %c0_19 = arith.constant 0 : index
      %c0_20 = arith.constant 0 : index
      %28 = vector.load %arg24[%c0_19, %c0_20] : memref<8x32xf32, #tpu.memory_space<vmem>>, vector<8x32xf32>
      %c0_21 = arith.constant 0 : index
      %c0_22 = arith.constant 0 : index
      %29 = vector.load %arg25[%c0_21, %c0_22] : memref<8x32xf32, #tpu.memory_space<vmem>>, vector<8x32xf32>
      %30 = arith.addf %28, %29 : vector<8x32xf32>
      %c0_23 = arith.constant 0 : index
      %c0_24 = arith.constant 0 : index
      %31 = vector.load %arg18[%c0_23, %c0_24] : memref<1x32xf32, #tpu.memory_space<vmem>>, vector<1x32xf32>
      %32 = vector.shape_cast %31 : vector<1x32xf32> to vector<32xf32>
      %33 = vector.shape_cast %32 : vector<32xf32> to vector<1x32xf32>
      %34 = vector.broadcast %33 : vector<1x32xf32> to vector<8x32xf32>
      %35 = arith.addf %30, %34 : vector<8x32xf32>
      %c0_25 = arith.constant 0 : index
      %c0_26 = arith.constant 0 : index
      %36 = vector.load %arg19[%c0_25, %c0_26] : memref<1x32xf32, #tpu.memory_space<vmem>>, vector<1x32xf32>
      %37 = vector.shape_cast %36 : vector<1x32xf32> to vector<32xf32>
      %c0_27 = arith.constant 0 : index
      %c0_28 = arith.constant 0 : index
      %38 = vector.load %arg20[%c0_27, %c0_28] : memref<1x32xf32, #tpu.memory_space<vmem>>, vector<1x32xf32>
      %39 = vector.shape_cast %38 : vector<1x32xf32> to vector<32xf32>
      %cst_29 = arith.constant dense<0.000000e+00> : vector<8xf32>
      %40 = vector.multi_reduction <add>, %35, %cst_29 [1] : vector<8x32xf32> to vector<8xf32>
      %41 = vector.shape_cast %40 : vector<8xf32> to vector<8x1xf32>
      %cst_30 = arith.constant 3.200000e+01 : f32
      %42 = vector.broadcast %cst_30 : f32 to vector<8x1xf32>
      %43 = arith.divf %41, %42 : vector<8x1xf32>
      %44 = vector.broadcast %43 : vector<8x1xf32> to vector<8x32xf32>
      %45 = arith.subf %35, %44 : vector<8x32xf32>
      %46 = arith.mulf %45, %45 : vector<8x32xf32>
      %cst_31 = arith.constant dense<0.000000e+00> : vector<8xf32>
      %47 = vector.multi_reduction <add>, %46, %cst_31 [1] : vector<8x32xf32> to vector<8xf32>
      %48 = vector.shape_cast %47 : vector<8xf32> to vector<8x1xf32>
      %cst_32 = arith.constant 3.200000e+01 : f32
      %49 = vector.broadcast %cst_32 : f32 to vector<8x1xf32>
      %50 = arith.divf %48, %49 : vector<8x1xf32>
      %51 = vector.broadcast %43 : vector<8x1xf32> to vector<8x32xf32>
      %52 = arith.subf %35, %51 : vector<8x32xf32>
      %cst_33 = arith.constant 9.99999974E-6 : f32
      %53 = vector.broadcast %cst_33 : f32 to vector<8x1xf32>
      %54 = arith.addf %50, %53 : vector<8x1xf32>
      %55 = math.rsqrt %54 : vector<8x1xf32>
      %56 = vector.broadcast %55 : vector<8x1xf32> to vector<8x32xf32>
      %57 = arith.mulf %52, %56 : vector<8x32xf32>
      %58 = vector.shape_cast %37 : vector<32xf32> to vector<1x32xf32>
      %59 = vector.broadcast %58 : vector<1x32xf32> to vector<8x32xf32>
      %60 = arith.mulf %57, %59 : vector<8x32xf32>
      %61 = vector.shape_cast %39 : vector<32xf32> to vector<1x32xf32>
      %62 = vector.broadcast %61 : vector<1x32xf32> to vector<8x32xf32>
      %63 = arith.addf %60, %62 : vector<8x32xf32>
      %c0_34 = arith.constant 0 : index
      %c0_35 = arith.constant 0 : index
      %c0_36 = arith.constant 0 : index
      %64 = vector.load %arg21[%c0_34, %c0_35, %c0_36] : memref<1x8x32xf32, #tpu.memory_space<vmem>>, vector<1x8x32xf32>
      %65 = vector.shape_cast %64 : vector<1x8x32xf32> to vector<8x32xf32>
      %66 = vector.shape_cast %63 : vector<8x32xf32> to vector<1x8x32xf32>
      tpu.vector_store %arg21[%c0_34, %c0_35, %c0_36], %66 {strides = array<i32>} : memref<1x8x32xf32, #tpu.memory_space<vmem>>, vector<1x8x32xf32>,
    } else {
    }
    return
  }
  func.func @transform_0(%arg0: i32, %arg1: i32, %arg2: i32) -> (i32, i32, i32) {
    %c0_i32 = arith.constant 0 : i32
    %c0_i32_0 = arith.constant 0 : i32
    return %arg0, %arg1, %c0_i32 : i32, i32, i32
  }
  func.func @transform_1(%arg0: i32, %arg1: i32, %arg2: i32) -> (i32, i32, i32) {
    %c0_i32 = arith.constant 0 : i32
    %c0_i32_0 = arith.constant 0 : i32
    %c0_i32_1 = arith.constant 0 : i32
    return %arg0, %c0_i32, %c0_i32_0 : i32, i32, i32
  }
  func.func @transform_2(%arg0: i32, %arg1: i32, %arg2: i32) -> (i32, i32) {
    %c0_i32 = arith.constant 0 : i32
    %c0_i32_0 = arith.constant 0 : i32
    %c0_i32_1 = arith.constant 0 : i32
    return %c0_i32, %c0_i32_0 : i32, i32
  }
  func.func @transform_3(%arg0: i32, %arg1: i32, %arg2: i32) -> (i32, i32) {
    %c0_i32 = arith.constant 0 : i32
    %c0_i32_0 = arith.constant 0 : i32
    %c0_i32_1 = arith.constant 0 : i32
    return %c0_i32, %c0_i32_0 : i32, i32
  }
  func.func @transform_4(%arg0: i32, %arg1: i32, %arg2: i32) -> (i32, i32) {
    %c0_i32 = arith.constant 0 : i32
    %c0_i32_0 = arith.constant 0 : i32
    %c0_i32_1 = arith.constant 0 : i32
    return %c0_i32, %c0_i32_0 : i32, i32
  }
  func.func @transform_5(%arg0: i32, %arg1: i32, %arg2: i32) -> (i32, i32) {
    %c0_i32 = arith.constant 0 : i32
    %c0_i32_0 = arith.constant 0 : i32
    %c0_i32_1 = arith.constant 0 : i32
    return %c0_i32, %c0_i32_0 : i32, i32
  }
  func.func @transform_6(%arg0: i32, %arg1: i32, %arg2: i32) -> (i32, i32) {
    %c0_i32 = arith.constant 0 : i32
    %c0_i32_0 = arith.constant 0 : i32
    %c0_i32_1 = arith.constant 0 : i32
    return %c0_i32, %c0_i32_0 : i32, i32
  }
  func.func @transform_7(%arg0: i32, %arg1: i32, %arg2: i32) -> (i32, i32) {
    %c0_i32 = arith.constant 0 : i32
    %c0_i32_0 = arith.constant 0 : i32
    %c0_i32_1 = arith.constant 0 : i32
    return %c0_i32, %c0_i32_0 : i32, i32
  }
  func.func @transform_8(%arg0: i32, %arg1: i32, %arg2: i32) -> (i32, i32, i32) {
    %c0_i32 = arith.constant 0 : i32
    %c0_i32_0 = arith.constant 0 : i32
    %c0_i32_1 = arith.constant 0 : i32
    %c0_i32_2 = arith.constant 0 : i32
    return %c0_i32, %c0_i32_0, %c0_i32_1 : i32, i32, i32
  }
  func.func @transform_9(%arg0: i32, %arg1: i32, %arg2: i32) -> (i32, i32) {
    %c0_i32 = arith.constant 0 : i32
    %c0_i32_0 = arith.constant 0 : i32
    %c0_i32_1 = arith.constant 0 : i32
    return %c0_i32, %c0_i32_0 : i32, i32
  }
  func.func @transform_10(%arg0: i32, %arg1: i32, %arg2: i32) -> (i32, i32) {
    %c0_i32 = arith.constant 0 : i32
    %c0_i32_0 = arith.constant 0 : i32
    %c0_i32_1 = arith.constant 0 : i32
    return %c0_i32, %c0_i32_0 : i32, i32
  }
  func.func @transform_11(%arg0: i32, %arg1: i32, %arg2: i32) -> (i32, i32) {
    %c0_i32 = arith.constant 0 : i32
    %c0_i32_0 = arith.constant 0 : i32
    %c0_i32_1 = arith.constant 0 : i32
    return %c0_i32, %c0_i32_0 : i32, i32
  }
  func.func @transform_12(%arg0: i32, %arg1: i32, %arg2: i32) -> (i32, i32) {
    %c0_i32 = arith.constant 0 : i32
    %c0_i32_0 = arith.constant 0 : i32
    return %c0_i32, %arg2 : i32, i32
  }
  func.func @transform_13(%arg0: i32, %arg1: i32, %arg2: i32) -> (i32, i32) {
    %c0_i32 = arith.constant 0 : i32
    %c0_i32_0 = arith.constant 0 : i32
    return %c0_i32, %arg2 : i32, i32
  }
  func.func @transform_14(%arg0: i32, %arg1: i32, %arg2: i32) -> (i32, i32) {
    %c0_i32 = arith.constant 0 : i32
    %c0_i32_0 = arith.constant 0 : i32
    return %arg2, %c0_i32 : i32, i32
  }
  func.func @transform_15(%arg0: i32, %arg1: i32, %arg2: i32) -> (i32, i32) {
    %c0_i32 = arith.constant 0 : i32
    %c0_i32_0 = arith.constant 0 : i32
    %c0_i32_1 = arith.constant 0 : i32
    return %c0_i32, %c0_i32_0 : i32, i32
  }
  func.func @transform_16(%arg0: i32, %arg1: i32, %arg2: i32) -> (i32, i32) {
    %c0_i32 = arith.constant 0 : i32
    %c0_i32_0 = arith.constant 0 : i32
    %c0_i32_1 = arith.constant 0 : i32
    return %c0_i32, %c0_i32_0 : i32, i32
  }
  func.func @transform_17(%arg0: i32, %arg1: i32, %arg2: i32) -> (i32, i32) {
    %c0_i32 = arith.constant 0 : i32
    %c0_i32_0 = arith.constant 0 : i32
    %c0_i32_1 = arith.constant 0 : i32
    return %c0_i32, %c0_i32_0 : i32, i32
  }
  func.func @transform_18(%arg0: i32, %arg1: i32, %arg2: i32) -> (i32, i32, i32) {
    %c0_i32 = arith.constant 0 : i32
    %c0_i32_0 = arith.constant 0 : i32
    return %arg0, %arg1, %c0_i32 : i32, i32, i32
  }
}

</mosaic_0001>

<bundles_post_ra>
// kernel: tpu_custom_call.1
= control target key start
LH: loop header
LB: loop body
LE: loop exit
PB: predicated region body
PF: predicated region fallthrough
CT: control target
= control target key end

     0   :  { %s4827_s0 = inlined_call_operand.hbm [shape: f32[2,8,32], index: 0, kind: input, shape index: {}]   ;;  %s4828_s1 = inlined_call_operand.hbm [shape: bf16[2,8,32], index: 1, kind: input, shape index: {}]   ;;  %s4829_s2 = inlined_call_operand.hbm [shape: bf16[32,32], index: 2, kind: input, shape index: {}]   ;;  %s4830_s3 = inlined_call_operand.hbm [shape: bf16[32,32], index: 3, kind: input, shape index: {}]   ;;  %s4831_s4 = inlined_call_operand.hbm [shape: bf16[32,32], index: 4, kind: input, shape index: {}]   ;;  %s4832_s5 = inlined_call_operand.hbm [shape: f32[1,32], index: 5, kind: input, shape index: {}]   ;;  %s4833_s6 = inlined_call_operand.hbm [shape: f32[1,32], index: 6, kind: input, shape index: {}]   ;;  %s4834_s7 = inlined_call_operand.hbm [shape: f32[1,32], index: 7, kind: input, shape index: {}]   ;;  %s4835_s8 = inlined_call_operand.hbm [shape: bf16[4,8,32], index: 8, kind: input, shape index: {}]   ;;  %s4836_s9 = inlined_call_operand.hbm [shape: f32[1,32], index: 9, kind: input, shape index: {}]   ;;  %s4837_s10 = inlined_call_operand.hbm [shape: f32[1,32], index: 10, kind: input, shape index: {}]   ;;  %s4838_s11 = inlined_call_operand.hbm [shape: f32[1,32], index: 11, kind: input, shape index: {}]   ;;  %s4839_s12 = inlined_call_operand.hbm [shape: bf16[32,128], index: 12, kind: input, shape index: {}]   ;;  %s4840_s13 = inlined_call_operand.hbm [shape: f32[1,128], index: 13, kind: input, shape index: {}]   ;;  %s4841_s14 = inlined_call_operand.hbm [shape: bf16[128,32], index: 14, kind: input, shape index: {}]   ;;  %s4842_s15 = inlined_call_operand.hbm [shape: f32[1,32], index: 15, kind: input, shape index: {}]   ;;  %s4843_s16 = inlined_call_operand.hbm [shape: f32[1,32], index: 16, kind: input, shape index: {}]   ;;  %s4844_s17 = inlined_call_operand.hbm [shape: f32[1,32], index: 17, kind: input, shape index: {}]   ;;  %s4845_s18 = inlined_call_operand.hbm [shape: f32[2,8,32], index: 18, kind: output, shape index: {}]  }
   0x1   :  { %4868 = sst [smem:[#allocation59_spill]] %s4827_s0 }
   0x2   :  { %4869 = sst [smem:[#allocation60_spill]] %s4828_s1 }
   0x3   :  { %4870 = sst [smem:[#allocation61_spill]] %s4829_s2 }
   0x4   :  { %4871 = sst [smem:[#allocation62_spill]] %s4830_s3 }
   0x5   :  { %4872 = sst [smem:[#allocation63_spill]] %s4831_s4 }
   0x6   :  { %4873 = sst [smem:[#allocation64_spill]] %s4832_s5 }
   0x7   :  { %4874 = sst [smem:[#allocation65_spill]] %s4833_s6 }
   0x8   :  { %4875 = sst [smem:[#allocation66_spill]] %s4834_s7 }
   0x9   :  { %4876 = sst [smem:[#allocation67_spill]] %s4835_s8 }
   0xa   :  { %4877 = sst [smem:[#allocation68_spill]] %s4836_s9 }
   0xb   :  { %4878 = sst [smem:[#allocation69_spill]] %s4837_s10 }
   0xc   :  { %4879 = sst [smem:[#allocation70_spill]] %s4844_s17 }
   0xd   :  { %4880 = sst [smem:[#allocation71_spill]] %s4845_s18 }
   0xe   :  { %23 = vsyncpa [#allocation10], 0 }
   0xf   :  { %25 = vsyncpa [#allocation10 + $0x1], 0 }
  0x10   :  { %26 = vsyncpa [#allocation13], 0 }
  0x11   :  { %28 = vsyncpa [#allocation13 + $0x1], 0 }
  0x12   :  { %29 = vsyncpa [#allocation16], 0 }
  0x13   :  { %30 = vsyncpa [#allocation19], 0 }
  0x14   :  { %31 = vsyncpa [#allocation22], 0 }
  0x15   :  { %32 = vsyncpa [#allocation25], 0 }
  0x16   :  { %33 = vsyncpa [#allocation28], 0 }
  0x17   :  { %34 = vsyncpa [#allocation31], 0 }
  0x18   :  { %35 = vsyncpa [#allocation34], 0 }
  0x19   :  { %36 = vsyncpa [#allocation37], 0 }
  0x1a   :  { %37 = vsyncpa [#allocation11], 0 }
  0x1b   :  { %39 = vsyncpa [#allocation11 + $0x1], 0  ;;  %s4004_s27 = smov 0   ;;  %s4006_s28 = smov 0  }
  0x1c   :  { %s4008_s29 = smov 0   ;;  %s4010_s30 = smov 0  }
  0x1d   :  { %s4012_s0 = smov 0   ;;  %s4014_s19 = smov 0  }
  0x1e LB: > { %4881 = sst [smem:[#allocation51_spill]] %s3828_s27  ;;  %s4035_s1 = sadd.s32 4294967295, %s3848_s19   ;;  %s3848_s19 = sphi %s4014_s19, %s45_s19   ;;  %s3844_s0 = sphi %s4012_s0, %s4957_s0   ;;  %s3840_s30 = sphi %s4010_s30, %s4953_s30   ;;  %s3836_s29 = sphi %s4008_s29, %s4956_s29   ;;  %s3832_s28 = sphi %s4006_s28, %s4951_s28   ;;  %s3828_s27 = sphi %s4004_s27, %s4955_s27  }
  0x1f   : > { %4882 = sst [smem:[#allocation52_spill]] %s3832_s28  ;;  %p2582_p0 = scmp.ge.s32.totalorder %s3848_s19, 1 }
  0x20   : > { %4883 = sst [smem:[#allocation53_spill]] %s3836_s29  ;;  %p4861_p1 = scmp.eq.s32.totalorder %s4035_s1, 0 }
  0x21   : > { %4884 = sst [smem:[#allocation54_spill]] %s3840_s30  ;;  %p502_p2 = scmp.lt.s32.totalorder %s3848_s19, 3 }
  0x22   : > { %4885 = sst [smem:[#allocation55_spill]] %s3844_s0  ;;  %s3866_s21 = smov [#allocation14]  }
  0x23   : > { %4886 = sst [smem:[#allocation56_spill]] %s3848_s19  ;;  %p4040_p3 = pnand %p2582_p0, %p502_p2 }
  0x24   : > { %4887 = sst [smem:[#allocation57_spill]] %s4035_s1  ;;  %s514_s22 = sshll.u32 %s3866_s21, 4  ;;  %s4044_s22 = int_to_ptr.vmem [resolvable:$true] %s514_s22 }
  0x25   : > { %s4888_s20 = scalar_select %p4040_p3, 1, 0 }
  0x26   : > { %p2932_p4 = pneg %p4040_p3  ;;  %s3867_s23 = smov [#allocation15]  }
  0x27   : > { %4889 = sst [smem:[#allocation58_spill]] %s4888_s20  ;;  %s527_s24 = sshll.u32 %s3867_s23, 4  ;;  %s4055_s24 = int_to_ptr.vmem [resolvable:$true] %s527_s24 }
  0x28   : > { %p4051_p6 = pnand %p2932_p4, %p4861_p1  ;;  %s3868_s25 = smov [#allocation18]  }
  0x29   : > { %s4057_s26 = sshll.u32 %s3868_s25, 4  ;;  %s4891_s30 = sld [smem:[#allocation61_spill]]  ;;  %s555_s26 = int_to_ptr.vmem [resolvable:$true] %s4057_s26 }
  0x2a   : > { %p4067_p8 = pneg %p4051_p6 }
  0x2f   : > { %s4892_s17 = smov %s4891_s30  ;;  %s3202_s27 = scalar_lea.hbm %s4891_s30, 256 }
  0x30   : > { %p3203_p7 = scmp.ne.s32.totalorder %s4892_s17, %s3202_s27  ;;  %p3209_p11 = scmp.lt.u32.totalorder %s3202_s27, %s4892_s17 }
  0x32   : > { %p3205_p9 = pnand %p4067_p8, %p3203_p7 }
  0x34   : > { %p3206_p10 = pneg %p3205_p9 }
  0x36   : > { %p3211_p12 = pnand %p3209_p11, %p3206_p10 }
  0x38   : > { %3214 = shalt.err (!%p3211_p12)
}
  0x39   : > { %s3215_s18 = scalar_lea.vmem %s4044_s22, 256  ;;  %p3223_p4 = scmp.lt.s32.totalorder %s4044_s22, %s4044_s22 }
  0x3a   : > { %p3216_p13 = scmp.ne.s32.totalorder %s4044_s22, %s3215_s18  ;;  %p3224_p5 = scmp.lt.s32.totalorder %s3215_s18, %s3215_s18 }
  0x3c   : > { %p3218_p0 = pnand %p3216_p13, %p4067_p8  ;;  %p3225_p7 = por %p3224_p5, %p3223_p4 }
  0x3e   : > { %p3219_p2 = pneg %p3218_p0 }
  0x40   : > { %p3226_p9 = pnand %p3225_p7, %p3219_p2 }
  0x42   : > { %3229 = shalt.err (!%p3226_p9)
}
  0x43   : > { %s4863_s28 = smov 64   ;;  %s3870_s27 = smov 4  }
  0x44   : > { %2935 = dma.hbm_to_vmem [thread:$0]  (!%p4051_p6), %s4892_s17, 256, %s4044_s22, [#allocation13], %s4863_s28, %s4863_s28, %s3870_s27  }
  0x45   : > { %s4894_s3 = sld [smem:[#allocation62_spill]] }
  0x4b   : > { %s3230_s25 = scalar_lea.hbm %s4894_s3, 256 }
  0x4c   : > { %p3231_p5 = scmp.ne.s32.totalorder %s4894_s3, %s3230_s25  ;;  %p3237_p12 = scmp.lt.u32.totalorder %s3230_s25, %s4894_s3 }
  0x4e   : > { %p3233_p10 = pnand %p3231_p5, %p4067_p8 }
  0x50   : > { %p3234_p11 = pneg %p3233_p10 }
  0x52   : > { %p3239_p13 = pnand %p3237_p12, %p3234_p11 }
  0x54   : > { %3242 = shalt.err (!%p3239_p13)
}
  0x55   : > { %s3243_s22 = scalar_lea.vmem %s4055_s24, 256  ;;  %p3251_p7 = scmp.lt.s32.totalorder %s4055_s24, %s4055_s24 }
  0x56   : > { %p3244_p0 = scmp.ne.s32.totalorder %s4055_s24, %s3243_s22  ;;  %p3252_p9 = scmp.lt.s32.totalorder %s3243_s22, %s3243_s22 }
  0x58   : > { %p3246_p2 = pnand %p3244_p0, %p4067_p8  ;;  %p3253_p5 = por %p3252_p9, %p3251_p7 }
  0x5a   : > { %p3247_p4 = pneg %p3246_p2 }
  0x5c   : > { %p3254_p10 = pnand %p3253_p5, %p3247_p4 }
  0x5e   : > { %3257 = shalt.err (!%p3254_p10)
}
  0x5f   : > { %2938 = dma.hbm_to_vmem [thread:$0]  (!%p4051_p6), %s4894_s3, 256, %s4055_s24, [#allocation16], %s4863_s28, %s4863_s28, %s3870_s27  }
  0x60   : > { %s4895_s5 = sld [smem:[#allocation64_spill]] }
  0x66   : > { %s3258_s20 = scalar_lea.hbm %s4895_s5, 16 }
  0x67   : > { %p3259_p11 = scmp.ne.s32.totalorder %s4895_s5, %s3258_s20  ;;  %p3265_p0 = scmp.lt.u32.totalorder %s3258_s20, %s4895_s5 }
  0x69   : > { %p3261_p12 = pnand %p3259_p11, %p4067_p8 }
  0x6b   : > { %p3262_p13 = pneg %p3261_p12 }
  0x6d   : > { %p3267_p2 = pnand %p3265_p0, %p3262_p13 }
  0x6f   : > { %3270 = shalt.err (!%p3267_p2)
}
  0x70   : > { %s3271_s22 = scalar_lea.vmem %s555_s26, 16  ;;  %s3278_s24 = scalar_lea.vmem %s555_s26, 32 }
  0x71   : > { %p3272_p4 = scmp.ne.s32.totalorder %s555_s26, %s3271_s22  ;;  %p3279_p5 = scmp.lt.s32.totalorder %s555_s26, %s555_s26 }
  0x72   : > { %p3280_p10 = scmp.lt.s32.totalorder %s3278_s24, %s3271_s22 }
  0x73   : > { %p3274_p7 = pnand %p3272_p4, %p4067_p8 }
  0x74   : > { %p3281_p1 = por %p3280_p10, %p3279_p5 }
  0x75   : > { %p3275_p9 = pneg %p3274_p7 }
  0x77   : > { %p3282_p3 = pnand %p3281_p1, %p3275_p9 }
  0x79   : > { %3285 = shalt.err (!%p3282_p3)
}
  0x7a   : > { %2944 = dma.hbm_to_vmem [thread:$0]  (!%p4051_p6), %s4895_s5, 16, %s555_s26, [#allocation19]  }
  0x7b   : > { %s3871_s19 = smov [#allocation21]   ;;  %s3872_s20 = smov [#allocation24]  }
  0x7c   : > { %s576_s30 = sshll.u32 %s3871_s19, 4  ;;  %s600_s21 = sshll.u32 %s3872_s20, 4  ;;  %s577_s30 = int_to_ptr.vmem [resolvable:$true] %s576_s30  ;;  %s601_s21 = int_to_ptr.vmem [resolvable:$true] %s600_s21 }
  0x7d   : > { %s4896_s7 = sld [smem:[#allocation66_spill]] }
  0x83   : > { %s3286_s18 = scalar_lea.hbm %s4896_s7, 16 }
  0x84   : > { %p3287_p1 = scmp.ne.s32.totalorder %s4896_s7, %s3286_s18  ;;  %p3293_p12 = scmp.lt.u32.totalorder %s3286_s18, %s4896_s7 }
  0x86   : > { %p3289_p3 = pnand %p3287_p1, %p4067_p8 }
  0x88   : > { %p3290_p11 = pneg %p3289_p3 }
  0x8a   : > { %p3295_p13 = pnand %p3293_p12, %p3290_p11 }
  0x8c   : > { %3298 = shalt.err (!%p3295_p13)
}
  0x8d   : > { %s3299_s26 = scalar_lea.vmem %s577_s30, 16  ;;  %s3306_s0 = scalar_lea.vmem %s577_s30, 32 }
  0x8e   : > { %p3300_p0 = scmp.ne.s32.totalorder %s577_s30, %s3299_s26  ;;  %p3307_p7 = scmp.lt.s32.totalorder %s577_s30, %s577_s30 }
  0x8f   : > { %p3308_p9 = scmp.lt.s32.totalorder %s3306_s0, %s3299_s26 }
  0x90   : > { %p3302_p2 = pnand %p3300_p0, %p4067_p8 }
  0x91   : > { %p3309_p5 = por %p3308_p9, %p3307_p7 }
  0x92   : > { %p3303_p4 = pneg %p3302_p2 }
  0x94   : > { %p3310_p10 = pnand %p3309_p5, %p3303_p4 }
  0x96   : > { %3313 = shalt.err (!%p3310_p10)
}
  0x97   : > { %2950 = dma.hbm_to_vmem [thread:$0]  (!%p4051_p6), %s4896_s7, 16, %s577_s30, [#allocation22]  }
  0x98   : > { %s4897_s9 = sld [smem:[#allocation68_spill]] }
  0x9e   : > { %s3314_s25 = scalar_lea.hbm %s4897_s9, 16 }
  0x9f   : > { %p3315_p1 = scmp.ne.s32.totalorder %s4897_s9, %s3314_s25  ;;  %p3321_p12 = scmp.lt.u32.totalorder %s3314_s25, %s4897_s9 }
  0xa1   : > { %p3317_p3 = pnand %p3315_p1, %p4067_p8 }
  0xa3   : > { %p3318_p11 = pneg %p3317_p3 }
  0xa5   : > { %p3323_p13 = pnand %p3321_p12, %p3318_p11 }
  0xa7   : > { %3326 = shalt.err (!%p3323_p13)
}
  0xa8   : > { %s3327_s26 = scalar_lea.vmem %s601_s21, 16  ;;  %s3334_s30 = scalar_lea.vmem %s601_s21, 32 }
  0xa9   : > { %p3328_p0 = scmp.ne.s32.totalorder %s601_s21, %s3327_s26  ;;  %p3335_p7 = scmp.lt.s32.totalorder %s601_s21, %s601_s21 }
  0xaa   : > { %p3336_p9 = scmp.lt.s32.totalorder %s3334_s30, %s3327_s26 }
  0xab   : > { %p3330_p2 = pnand %p3328_p0, %p4067_p8 }
  0xac   : > { %p3337_p5 = por %p3336_p9, %p3335_p7 }
  0xad   : > { %p3331_p4 = pneg %p3330_p2 }
  0xaf   : > { %p3338_p10 = pnand %p3337_p5, %p3331_p4 }
  0xb1   : > { %3341 = shalt.err (!%p3338_p10)
}
  0xb2   : > { %2956 = dma.hbm_to_vmem [thread:$0]  (!%p4051_p6), %s4897_s9, 16, %s601_s21, [#allocation25]  }
  0xb3   : > { %s3873_s20 = smov [#allocation27]   ;;  %s3874_s23 = smov [#allocation30]  }
  0xb4   : > { %s622_s28 = sshll.u32 %s3873_s20, 4  ;;  %s650_s25 = sshll.u32 %s3874_s23, 4  ;;  %s623_s28 = int_to_ptr.vmem [resolvable:$true] %s622_s28  ;;  %s651_s25 = int_to_ptr.vmem [resolvable:$true] %s650_s25 }
  0xb5   : > { %s3342_s24 = scalar_lea.hbm %s4838_s11, 16 }
  0xb6   : > { %p3343_p1 = scmp.ne.s32.totalorder %s4838_s11, %s3342_s24  ;;  %p3349_p12 = scmp.lt.u32.totalorder %s3342_s24, %s4838_s11 }
  0xb8   : > { %p3345_p3 = pnand %p3343_p1, %p4067_p8 }
  0xba   : > { %p3346_p11 = pneg %p3345_p3 }
  0xbc   : > { %p3351_p13 = pnand %p3349_p12, %p3346_p11 }
  0xbe   : > { %3354 = shalt.err (!%p3351_p13)
}
  0xbf   : > { %s3355_s21 = scalar_lea.vmem %s623_s28, 16  ;;  %s3362_s19 = scalar_lea.vmem %s623_s28, 32 }
  0xc0   : > { %p3356_p0 = scmp.ne.s32.totalorder %s623_s28, %s3355_s21  ;;  %p3363_p7 = scmp.lt.s32.totalorder %s623_s28, %s623_s28 }
  0xc1   : > { %p3364_p9 = scmp.lt.s32.totalorder %s3362_s19, %s3355_s21 }
  0xc2   : > { %p3358_p2 = pnand %p3356_p0, %p4067_p8 }
  0xc3   : > { %p3365_p5 = por %p3364_p9, %p3363_p7 }
  0xc4   : > { %p3359_p4 = pneg %p3358_p2 }
  0xc6   : > { %p3366_p10 = pnand %p3365_p5, %p3359_p4 }
  0xc8   : > { %3369 = shalt.err (!%p3366_p10)
}
  0xc9   : > { %2962 = dma.hbm_to_vmem [thread:$0]  (!%p4051_p6), %s4838_s11, 16, %s623_s28, [#allocation28]  }
  0xca   : > { %s3370_s24 = scalar_lea.hbm %s4840_s13, 16 }
  0xcb   : > { %p3371_p1 = scmp.ne.s32.totalorder %s4840_s13, %s3370_s24  ;;  %p3377_p12 = scmp.lt.u32.totalorder %s3370_s24, %s4840_s13 }
  0xcd   : > { %p3373_p3 = pnand %p3371_p1, %p4067_p8 }
  0xcf   : > { %p3374_p11 = pneg %p3373_p3 }
  0xd1   : > { %p3379_p13 = pnand %p3377_p12, %p3374_p11 }
  0xd3   : > { %3382 = shalt.err (!%p3379_p13)
}
  0xd4   : > { %s3383_s21 = scalar_lea.vmem %s651_s25, 16  ;;  %s3390_s28 = scalar_lea.vmem %s651_s25, 32 }
  0xd5   : > { %p3384_p0 = scmp.ne.s32.totalorder %s651_s25, %s3383_s21  ;;  %p3391_p7 = scmp.lt.s32.totalorder %s651_s25, %s651_s25 }
  0xd6   : > { %p3392_p9 = scmp.lt.s32.totalorder %s3390_s28, %s3383_s21 }
  0xd7   : > { %p3386_p2 = pnand %p3384_p0, %p4067_p8 }
  0xd8   : > { %p3393_p5 = por %p3392_p9, %p3391_p7 }
  0xd9   : > { %p3387_p4 = pneg %p3386_p2 }
  0xdb   : > { %p3394_p10 = pnand %p3393_p5, %p3387_p4 }
  0xdd   : > { %3397 = shalt.err (!%p3394_p10)
}
  0xde   : > { %2968 = dma.hbm_to_vmem [thread:$0]  (!%p4051_p6), %s4840_s13, 16, %s651_s25, [#allocation31]  }
  0xdf   : > { %s3875_s23 = smov [#allocation33]   ;;  %s3876_s22 = smov [#allocation17]  }
  0xe0   : > { %s677_s18 = sshll.u32 %s3875_s23, 4  ;;  %s540_s24 = sshll.u32 %s3876_s22, 4  ;;  %s678_s18 = int_to_ptr.vmem [resolvable:$true] %s677_s18  ;;  %s541_s24 = int_to_ptr.vmem [resolvable:$true] %s540_s24 }
  0xe1   : > { %s3398_s30 = scalar_lea.hbm %s4842_s15, 16 }
  0xe2   : > { %p3399_p1 = scmp.ne.s32.totalorder %s4842_s15, %s3398_s30  ;;  %p3405_p12 = scmp.lt.u32.totalorder %s3398_s30, %s4842_s15 }
  0xe4   : > { %p3401_p3 = pnand %p3399_p1, %p4067_p8 }
  0xe6   : > { %p3402_p11 = pneg %p3401_p3 }
  0xe8   : > { %p3407_p13 = pnand %p3405_p12, %p3402_p11 }
  0xea   : > { %3410 = shalt.err (!%p3407_p13)
}
  0xeb   : > { %s3411_s25 = scalar_lea.vmem %s678_s18, 16  ;;  %s3418_s20 = scalar_lea.vmem %s678_s18, 32 }
  0xec   : > { %p3412_p0 = scmp.ne.s32.totalorder %s678_s18, %s3411_s25  ;;  %p3419_p7 = scmp.lt.s32.totalorder %s678_s18, %s678_s18 }
  0xed   : > { %p3420_p9 = scmp.lt.s32.totalorder %s3418_s20, %s3411_s25 }
  0xee   : > { %p3414_p2 = pnand %p3412_p0, %p4067_p8 }
  0xef   : > { %p3421_p5 = por %p3420_p9, %p3419_p7 }
  0xf0   : > { %p3415_p4 = pneg %p3414_p2 }
  0xf2   : > { %p3422_p10 = pnand %p3421_p5, %p3415_p4 }
  0xf4   : > { %3425 = shalt.err (!%p3422_p10)
}
  0xf5   : > { %2974 = dma.hbm_to_vmem [thread:$0]  (!%p4051_p6), %s4842_s15, 16, %s678_s18, [#allocation34]  }
  0xf6   : > { %s4898_s4 = sld [smem:[#allocation63_spill]] }
  0xfc   : > { %s3426_s30 = scalar_lea.hbm %s4898_s4, 256 }
  0xfd   : > { %p3427_p1 = scmp.ne.s32.totalorder %s4898_s4, %s3426_s30  ;;  %p3433_p12 = scmp.lt.u32.totalorder %s3426_s30, %s4898_s4 }
  0xff   : > { %p3429_p3 = pnand %p3427_p1, %p4067_p8 }
 0x101   : > { %p3430_p11 = pneg %p3429_p3 }
 0x103   : > { %p3435_p13 = pnand %p3433_p12, %p3430_p11 }
 0x105   : > { %3438 = shalt.err (!%p3435_p13)
}
 0x106   : > { %s3439_s25 = scalar_lea.vmem %s541_s24, 256  ;;  %p3447_p7 = scmp.lt.s32.totalorder %s541_s24, %s541_s24 }
 0x107   : > { %p3440_p0 = scmp.ne.s32.totalorder %s541_s24, %s3439_s25  ;;  %p3448_p9 = scmp.lt.s32.totalorder %s3439_s25, %s3439_s25 }
 0x109   : > { %p3442_p2 = pnand %p3440_p0, %p4067_p8  ;;  %p3449_p5 = por %p3448_p9, %p3447_p7 }
 0x10b   : > { %p3443_p4 = pneg %p3442_p2 }
 0x10d   : > { %p3450_p10 = pnand %p3449_p5, %p3443_p4 }
 0x10f   : > { %3453 = shalt.err (!%p3450_p10)
}
 0x110   : > { %s4899_s18 = smov 64   ;;  %s3877_s22 = smov [#allocation20]  }
 0x111   : > { %2941 = dma.hbm_to_vmem [thread:$0]  (!%p4051_p6), %s4898_s4, 256, %s541_s24, [#allocation16], %s4899_s18, %s4899_s18, %s3870_s27  }
 0x112   : > { %s565_s29 = sshll.u32 %s3877_s22, 4  ;;  %s3878_s26 = smov [#allocation23]   ;;  %s566_s29 = int_to_ptr.vmem [resolvable:$true] %s565_s29 }
 0x113   : > { %s586_s30 = sshll.u32 %s3878_s26, 4  ;;  %s4900_s6 = sld [smem:[#allocation65_spill]]  ;;  %s587_s30 = int_to_ptr.vmem [resolvable:$true] %s586_s30 }
 0x119   : > { %s3454_s28 = scalar_lea.hbm %s4900_s6, 16 }
 0x11a   : > { %p3455_p1 = scmp.ne.s32.totalorder %s4900_s6, %s3454_s28  ;;  %p3461_p12 = scmp.lt.u32.totalorder %s3454_s28, %s4900_s6 }
 0x11c   : > { %p3457_p3 = pnand %p3455_p1, %p4067_p8 }
 0x11e   : > { %p3458_p11 = pneg %p3457_p3 }
 0x120   : > { %p3463_p13 = pnand %p3461_p12, %p3458_p11 }
 0x122   : > { %3466 = shalt.err (!%p3463_p13)
}
 0x123   : > { %s3467_s24 = scalar_lea.vmem %s566_s29, 16  ;;  %s3474_s23 = scalar_lea.vmem %s566_s29, 32 }
 0x124   : > { %p3468_p0 = scmp.ne.s32.totalorder %s566_s29, %s3467_s24  ;;  %p3475_p7 = scmp.lt.s32.totalorder %s566_s29, %s566_s29 }
 0x125   : > { %p3476_p9 = scmp.lt.s32.totalorder %s3474_s23, %s3467_s24 }
 0x126   : > { %p3470_p2 = pnand %p3468_p0, %p4067_p8 }
 0x127   : > { %p3477_p5 = por %p3476_p9, %p3475_p7 }
 0x128   : > { %p3471_p4 = pneg %p3470_p2 }
 0x12a   : > { %p3478_p10 = pnand %p3477_p5, %p3471_p4 }
 0x12c   : > { %3481 = shalt.err (!%p3478_p10)
}
 0x12d   : > { %2947 = dma.hbm_to_vmem [thread:$0]  (!%p4051_p6), %s4900_s6, 16, %s566_s29, [#allocation19]  }
 0x12e   : > { %s4901_s8 = sld [smem:[#allocation67_spill]] }
 0x134   : > { %s3482_s21 = scalar_lea.hbm %s4901_s8, 256 }
 0x135   : > { %p3483_p1 = scmp.ne.s32.totalorder %s4901_s8, %s3482_s21  ;;  %p3489_p12 = scmp.lt.u32.totalorder %s3482_s21, %s4901_s8 }
 0x137   : > { %p3485_p3 = pnand %p3483_p1, %p4067_p8 }
 0x139   : > { %p3486_p11 = pneg %p3485_p3 }
 0x13b   : > { %p3491_p13 = pnand %p3489_p12, %p3486_p11 }
 0x13d   : > { %3494 = shalt.err (!%p3491_p13)
}
 0x13e   : > { %s3495_s24 = scalar_lea.vmem %s587_s30, 256  ;;  %p3503_p7 = scmp.lt.s32.totalorder %s587_s30, %s587_s30 }
 0x13f   : > { %p3496_p0 = scmp.ne.s32.totalorder %s587_s30, %s3495_s24  ;;  %p3504_p9 = scmp.lt.s32.totalorder %s3495_s24, %s3495_s24 }
 0x141   : > { %p3498_p2 = pnand %p3496_p0, %p4067_p8  ;;  %p3505_p5 = por %p3504_p9, %p3503_p7 }
 0x143   : > { %p3499_p4 = pneg %p3498_p2 }
 0x145   : > { %p3506_p10 = pnand %p3505_p5, %p3499_p4 }
 0x147   : > { %3509 = shalt.err (!%p3506_p10)
}
 0x148   : > { %2953 = dma.hbm_to_vmem [thread:$0]  (!%p4051_p6), %s4901_s8, 256, %s587_s30, [#allocation22], %s4899_s18, %s4899_s18, %s3870_s27  }
 0x149   : > { %s3879_s22 = smov [#allocation26]   ;;  %s3880_s3 = smov [#allocation29]  }
 0x14a   : > { %s611_s26 = sshll.u32 %s3879_s22, 4  ;;  %s634_s0 = sshll.u32 %s3880_s3, 4  ;;  %s612_s26 = int_to_ptr.vmem [resolvable:$true] %s611_s26  ;;  %s635_s0 = int_to_ptr.vmem [resolvable:$true] %s634_s0 }
 0x14b   : > { %s4902_s10 = sld [smem:[#allocation69_spill]] }
 0x151   : > { %s3510_s19 = scalar_lea.hbm %s4902_s10, 16 }
 0x152   : > { %p3511_p1 = scmp.ne.s32.totalorder %s4902_s10, %s3510_s19  ;;  %p3517_p12 = scmp.lt.u32.totalorder %s3510_s19, %s4902_s10 }
 0x154   : > { %p3513_p3 = pnand %p3511_p1, %p4067_p8 }
 0x156   : > { %p3514_p11 = pneg %p3513_p3 }
 0x158   : > { %p3519_p13 = pnand %p3517_p12, %p3514_p11 }
 0x15a   : > { %3522 = shalt.err (!%p3519_p13)
}
 0x15b   : > { %s3523_s30 = scalar_lea.vmem %s612_s26, 16  ;;  %s3530_s23 = scalar_lea.vmem %s612_s26, 32 }
 0x15c   : > { %p3524_p0 = scmp.ne.s32.totalorder %s612_s26, %s3523_s30  ;;  %p3531_p7 = scmp.lt.s32.totalorder %s612_s26, %s612_s26 }
 0x15d   : > { %p3532_p9 = scmp.lt.s32.totalorder %s3530_s23, %s3523_s30 }
 0x15e   : > { %p3526_p2 = pnand %p3524_p0, %p4067_p8 }
 0x15f   : > { %p3533_p5 = por %p3532_p9, %p3531_p7 }
 0x160   : > { %p3527_p4 = pneg %p3526_p2 }
 0x162   : > { %p3534_p10 = pnand %p3533_p5, %p3527_p4 }
 0x164   : > { %3537 = shalt.err (!%p3534_p10)
}
 0x165   : > { %2959 = dma.hbm_to_vmem [thread:$0]  (!%p4051_p6), %s4902_s10, 16, %s612_s26, [#allocation25]  }
 0x166   : > { %s3538_s19 = scalar_lea.hbm %s4839_s12, 256 }
 0x167   : > { %p3539_p1 = scmp.ne.s32.totalorder %s4839_s12, %s3538_s19  ;;  %p3545_p12 = scmp.lt.u32.totalorder %s3538_s19, %s4839_s12 }
 0x169   : > { %p3541_p3 = pnand %p3539_p1, %p4067_p8 }
 0x16b   : > { %p3542_p11 = pneg %p3541_p3 }
 0x16d   : > { %p3547_p13 = pnand %p3545_p12, %p3542_p11 }
 0x16f   : > { %3550 = shalt.err (!%p3547_p13)
}
 0x170   : > { %s3551_s30 = scalar_lea.vmem %s635_s0, 256  ;;  %p3559_p7 = scmp.lt.s32.totalorder %s635_s0, %s635_s0 }
 0x171   : > { %p3552_p0 = scmp.ne.s32.totalorder %s635_s0, %s3551_s30  ;;  %p3560_p9 = scmp.lt.s32.totalorder %s3551_s30, %s3551_s30 }
 0x173   : > { %p3554_p2 = pnand %p3552_p0, %p4067_p8  ;;  %p3561_p5 = por %p3560_p9, %p3559_p7 }
 0x175   : > { %p3555_p4 = pneg %p3554_p2 }
 0x177   : > { %p3562_p10 = pnand %p3561_p5, %p3555_p4 }
 0x179   : > { %3565 = shalt.err (!%p3562_p10)
}
 0x17a   : > { %2965 = dma.hbm_to_vmem [thread:$0]  (!%p4051_p6), %s4839_s12, 256, %s635_s0, [#allocation28], %s4899_s18, %s4899_s18, %s3870_s27  }
 0x17b   : > { %s3881_s22 = smov [#allocation32]   ;;  %s3882_s21 = smov [#allocation35]  }
 0x17c   : > { %s663_s3 = sshll.u32 %s3881_s22, 4  ;;  %s688_s28 = sshll.u32 %s3882_s21, 4  ;;  %s664_s3 = int_to_ptr.vmem [resolvable:$true] %s663_s3  ;;  %s689_s28 = int_to_ptr.vmem [resolvable:$true] %s688_s28 }
 0x17d   : > { %s3566_s20 = scalar_lea.hbm %s4841_s14, 1024 }
 0x17e   : > { %p3567_p1 = scmp.ne.s32.totalorder %s4841_s14, %s3566_s20  ;;  %p3573_p12 = scmp.lt.u32.totalorder %s3566_s20, %s4841_s14 }
 0x180   : > { %p3569_p3 = pnand %p3567_p1, %p4067_p8 }
 0x182   : > { %p3570_p11 = pneg %p3569_p3 }
 0x184   : > { %p3575_p13 = pnand %p3573_p12, %p3570_p11 }
 0x186   : > { %3578 = shalt.err (!%p3575_p13)
}
 0x187   : > { %s3579_s0 = scalar_lea.vmem %s664_s3, 1024  ;;  %p3587_p7 = scmp.lt.s32.totalorder %s664_s3, %s664_s3 }
 0x188   : > { %p3580_p0 = scmp.ne.s32.totalorder %s664_s3, %s3579_s0  ;;  %p3588_p9 = scmp.lt.s32.totalorder %s3579_s0, %s3579_s0 }
 0x18a   : > { %p3582_p2 = pnand %p3580_p0, %p4067_p8  ;;  %p3589_p5 = por %p3588_p9, %p3587_p7 }
 0x18c   : > { %p3583_p4 = pneg %p3582_p2 }
 0x18e   : > { %p3590_p10 = pnand %p3589_p5, %p3583_p4 }
 0x190   : > { %3593 = shalt.err (!%p3590_p10)
}
 0x191   : > { %2971 = dma.hbm_to_vmem [thread:$0]  (!%p4051_p6), %s4841_s14, 1024, %s664_s3, [#allocation31], %s4899_s18, %s4899_s18, %s3870_s27  }
 0x192   : > { %s3594_s25 = scalar_lea.hbm %s4843_s16, 16 }
 0x193   : > { %p3595_p1 = scmp.ne.s32.totalorder %s4843_s16, %s3594_s25  ;;  %p3601_p12 = scmp.lt.u32.totalorder %s3594_s25, %s4843_s16 }
 0x195   : > { %p3597_p3 = pnand %p3595_p1, %p4067_p8 }
 0x197   : > { %p3598_p11 = pneg %p3597_p3 }
 0x199   : > { %p3603_p13 = pnand %p3601_p12, %p3598_p11 }
 0x19b   : > { %3606 = shalt.err (!%p3603_p13)
}
 0x19c   : > { %s3607_s26 = scalar_lea.vmem %s689_s28, 16  ;;  %s3614_s27 = scalar_lea.vmem %s689_s28, 32 }
 0x19d   : > { %p3608_p0 = scmp.ne.s32.totalorder %s689_s28, %s3607_s26  ;;  %p3615_p7 = scmp.lt.s32.totalorder %s689_s28, %s689_s28 }
 0x19e   : > { %p3616_p9 = scmp.lt.s32.totalorder %s3614_s27, %s3607_s26 }
 0x19f   : > { %p3610_p2 = pnand %p3608_p0, %p4067_p8 }
 0x1a0   : > { %p3617_p5 = por %p3616_p9, %p3615_p7 }
 0x1a1   : > { %p3611_p4 = pneg %p3610_p2 }
 0x1a3   : > { %p3618_p10 = pnand %p3617_p5, %p3611_p4 }
 0x1a5   : > { %3621 = shalt.err (!%p3618_p10)
}
 0x1a6   : > { %2977 = dma.hbm_to_vmem [thread:$0]  (!%p4051_p6), %s4843_s16, 16, %s689_s28, [#allocation34]  }
 0x1a7   : > { %s3883_s0 = smov [#allocation36]   ;;  %s4903_s19 = sld [smem:[#allocation70_spill]] }
 0x1a8   : > { %s699_s23 = sshll.u32 %s3883_s0, 4  ;;  %s700_s23 = int_to_ptr.vmem [resolvable:$true] %s699_s23 }
 0x1ad   : > { %s4904_s25 = smov %s4903_s19  ;;  %s3622_s20 = scalar_lea.hbm %s4903_s19, 16 }
 0x1ae   : > { %p3623_p1 = scmp.ne.s32.totalorder %s4904_s25, %s3622_s20  ;;  %p3629_p12 = scmp.lt.u32.totalorder %s3622_s20, %s4904_s25 }
 0x1b0   : > { %p3625_p3 = pnand %p3623_p1, %p4067_p8 }
 0x1b2   : > { %p3626_p11 = pneg %p3625_p3 }
 0x1b4   : > { %p3631_p13 = pnand %p3629_p12, %p3626_p11 }
 0x1b6   : > { %3634 = shalt.err (!%p3631_p13)
}
 0x1b7   : > { %s3635_s28 = scalar_lea.vmem %s700_s23, 16  ;;  %s3642_s27 = scalar_lea.vmem %s700_s23, 32 }
 0x1b8   : > { %p3636_p0 = scmp.ne.s32.totalorder %s700_s23, %s3635_s28  ;;  %p3643_p7 = scmp.lt.s32.totalorder %s700_s23, %s700_s23 }
 0x1b9   : > { %p3644_p9 = scmp.lt.s32.totalorder %s3642_s27, %s3635_s28 }
 0x1ba   : > { %p3638_p2 = pnand %p3636_p0, %p4067_p8 }
 0x1bb   : > { %p3645_p5 = por %p3644_p9, %p3643_p7 }
 0x1bc   : > { %p3639_p4 = pneg %p3638_p2 }
 0x1be   : > { %p3646_p10 = pnand %p3645_p5, %p3639_p4 }
 0x1c0   : > { %3649 = shalt.err (!%p3646_p10)
}
 0x1c1   : > { %s4905_s0 = sld [smem:[#allocation56_spill]]  ;;  %s4906_s22 = sld [smem:[#allocation55_spill]] }
 0x1c2   : > { %s4907_s21 = sld [smem:[#allocation53_spill]]  ;;  %s4908_s19 = sld [smem:[#allocation52_spill]] }
 0x1c3   : > { %s4909_s1 = sld [smem:[#allocation51_spill]]  ;;  %s4910_s20 = sld [smem:[#allocation57_spill]] }
 0x1c4   : > { %2980 = dma.hbm_to_vmem [thread:$0]  (!%p4051_p6), %s4904_s25, 16, %s700_s23, [#allocation37]  }
 0x1c5   : > { %s4916_s4 = sld [smem:[#allocation59_spill]] }
 0x1c7   : > { %s2581_s24 = sadd.s32 4294967294, %s4905_s0   ;;  %s64_s29 = sadd.s32 1, %s4906_s22 }
 0x1c8   : > { %p66_p8 = scmp.ge.s32.totalorder %s64_s29, 2  ;;  %s73_s2 = sadd.s32 1, %s4907_s21 }
 0x1c9   : > { %p80_p1 = scmp.ne.s32.totalorder %s4907_s21, %s4908_s19  ;;  %p81_p3 = scmp.eq.s32.totalorder %s4905_s0, 0 }
 0x1ca   : > { %s4959_s29 = smov (%p66_p8, %s64_s29), 0  ;;  %p86_p12 = scmp.ne.s32.totalorder %s4908_s19, %s4909_s1 }
 0x1cb   : > { %p4390_p11 = por %p81_p3, %p80_p1  ;;  %s68_s23 = ssub.s32 %s4906_s22, %s4959_s29 }
 0x1cc   : > { %p489_p6 = scmp.eq.s32.totalorder %s4910_s20, 1  ;;  %p71_p13 = scmp.eq.s32.totalorder %s68_s23, 0 }
 0x1cd   : > { %p4912_p0 = scmp.eq.s32.totalorder %s4910_s20, 0  ;;  %p495_p7 = scmp.eq.s32.totalorder %s2581_s24, 1 }
 0x1ce   : > { %p4405_p4 = por %p489_p6, %p80_p1  ;;  %p3008_p5 = scmp.lt.s32.totalorder %s4905_s0, 2 }
 0x1cf   : > { %p4401_p2 = por %p4912_p0, %p86_p12  ;;  %p4412_p9 = por %p495_p7, %p86_p12 }
 0x1d0   : > { %s4914_s28 = scalar_select %p4405_p4, 1, 0 }
 0x1d1   : > { %s4913_s26 = scalar_select %p4401_p2, 1, 0 }
 0x1d2   : > { %s4410_s27 = scalar_select %p71_p13, %s4907_s21, %s73_s2  }
 0x1d3   : > { %s4915_s18 = scalar_select %p4412_p9, 1, 0 }
 0x1d4   : > { %s4418_s3 = sand.u32 1, %s4907_s21   ;;  %s2601_s19 = sshll.u32 %s4906_s22, 7 }
 0x1d5   : > { %s2600_s1 = sshll.u32 %s4418_s3, 3  ;;  %s4425_s5 = scalar_lea.hbm %s4916_s4, %s2601_s19 }
 0x1d6   : > { %s714_s24 = scalar_lea.vmem [#allocation9], %s2600_s1  ;;  %p4429_p10 = pnand %p3008_p5, %p4390_p11 }
 0x1d7   : > { %s722_s2 = sshll.u32 %s714_s24, 4  ;;  %s711_s7 = scalar_lea.sflag [#allocation10], %s4418_s3  ;;  %s4433_s2 = int_to_ptr.vmem [resolvable:$true] %s722_s2 }
 0x1d8   : > { %s3650_s20 = scalar_lea.hbm %s4425_s5, 128  ;;  %p3652_p1 = pneg %p4429_p10 }
 0x1d9   : > { %p3651_p8 = scmp.ne.s32.totalorder %s4425_s5, %s3650_s20  ;;  %s3655_s1 = scalar_lea.hbm %s4916_s4, 256 }
 0x1da   : > { %p3656_p11 = scmp.lt.u32.totalorder %s4425_s5, %s4916_s4  ;;  %p3657_p6 = scmp.lt.u32.totalorder %s3655_s1, %s3650_s20 }
 0x1db   : > { %p3653_p3 = pnand %p3652_p1, %p3651_p8  ;;  %p3659_p0 = scmp.lt.u32.totalorder %s3650_s20, %s4425_s5 }
 0x1dc   : > { %p3658_p13 = por %p3657_p6, %p3656_p11 }
 0x1dd   : > { %p3654_p12 = pneg %p3653_p3 }
 0x1de   : > { %p3660_p7 = por %p3659_p0, %p3658_p13 }
 0x1e0   : > { %p3661_p5 = pnand %p3660_p7, %p3654_p12 }
 0x1e2   : > { %3664 = shalt.err (!%p3661_p5)
}
 0x1e3   : > { %s3665_s21 = scalar_lea.vmem %s4433_s2, 128  ;;  %s3884_s19 = smov [#allocation9]  }
 0x1e4   : > { %p3666_p8 = scmp.ne.s32.totalorder %s4433_s2, %s3665_s21  ;;  %s3670_s30 = sshll.u32 %s3884_s19, 4  ;;  %s3671_s30 = int_to_ptr.vmem [resolvable:$false] %s3670_s30 }
 0x1e5   : > { %s3672_s23 = scalar_lea.vmem %s3671_s30, 256  ;;  %p3673_p4 = scmp.lt.s32.totalorder %s4433_s2, %s3671_s30 }
 0x1e6   : > { %p3668_p3 = pnand %p3666_p8, %p3652_p1  ;;  %p3674_p11 = scmp.lt.s32.totalorder %s3672_s23, %s3665_s21 }
 0x1e8   : > { %p3669_p9 = pneg %p3668_p3  ;;  %p3675_p6 = por %p3674_p11, %p3673_p4 }
 0x1ea   : > { %p3676_p13 = pnand %p3675_p6, %p3669_p9 }
 0x1ec   : > { %3679 = shalt.err (!%p3676_p13)
}
 0x1ed   : > { %2984 = dma.hbm_to_vmem [thread:$0]  (!%p4429_p10), %s4425_s5, 128, %s4433_s2, %s711_s7  }
 0x1ee   : > { %s2602_s20 = sshll.u32 %s4418_s3, 2  ;;  %s2603_s1 = sshll.u32 %s4906_s22, 6 }
 0x1ef   : > { %s4918_s4 = sld [smem:[#allocation60_spill]]  ;;  %s733_s21 = scalar_lea.vmem [#allocation12], %s2602_s20 }
 0x1f0   : > { %s740_s30 = sshll.u32 %s733_s21, 4  ;;  %s4919_s23 = sand.u32 1, %s4905_s0   ;;  %s741_s30 = int_to_ptr.vmem [resolvable:$true] %s740_s30 }
 0x1f1   : > { %s730_s9 = scalar_lea.sflag [#allocation13], %s4919_s23 }
 0x1f5   : > { %s4467_s8 = scalar_lea.hbm %s4918_s4, %s2603_s1  ;;  %s3685_s22 = scalar_lea.hbm %s4918_s4, 128 }
 0x1f6   : > { %s3680_s10 = scalar_lea.hbm %s4467_s8, 64  ;;  %p3686_p0 = scmp.lt.u32.totalorder %s4467_s8, %s4918_s4 }
 0x1f7   : > { %p3681_p4 = scmp.ne.s32.totalorder %s4467_s8, %s3680_s10  ;;  %p3687_p7 = scmp.lt.u32.totalorder %s3685_s22, %s3680_s10 }
 0x1f8   : > { %p3689_p8 = scmp.lt.u32.totalorder %s3680_s10, %s4467_s8 }
 0x1f9   : > { %p3683_p9 = pnand %p3681_p4, %p3652_p1  ;;  %p3688_p5 = por %p3687_p7, %p3686_p0 }
 0x1fb   : > { %p3684_p12 = pneg %p3683_p9  ;;  %p3690_p3 = por %p3689_p8, %p3688_p5 }
 0x1fd   : > { %p3691_p11 = pnand %p3690_p3, %p3684_p12 }
 0x1ff   : > { %3694 = shalt.err (!%p3691_p11)
}
 0x200   : > { %s3695_s0 = scalar_lea.vmem %s741_s30, 64  ;;  %s3885_s20 = smov [#allocation12]  }
 0x201   : > { %p3696_p6 = scmp.ne.s32.totalorder %s741_s30, %s3695_s0  ;;  %s3700_s1 = sshll.u32 %s3885_s20, 4  ;;  %s3701_s1 = int_to_ptr.vmem [resolvable:$false] %s3700_s1 }
 0x202   : > { %s3702_s24 = scalar_lea.vmem %s3701_s1, 128  ;;  %p3703_p9 = scmp.lt.s32.totalorder %s741_s30, %s3701_s1 }
 0x203   : > { %p3698_p13 = pnand %p3696_p6, %p3652_p1  ;;  %p3704_p2 = scmp.lt.s32.totalorder %s3702_s24, %s3695_s0 }
 0x205   : > { %p3699_p4 = pneg %p3698_p13  ;;  %p3705_p0 = por %p3704_p2, %p3703_p9 }
 0x207   : > { %p3706_p7 = pnand %p3705_p0, %p3699_p4 }
 0x209   : > { %3709 = shalt.err (!%p3706_p7)
}
 0x20a   : > { %2987 = dma.hbm_to_vmem [thread:$0]  (!%p4429_p10), %s4467_s8, 64, %s741_s30, %s730_s9  }
 0x20b   : > { %s4920_s10 = sld [smem:[#allocation58_spill]] }
 0x211   : > { %p4921_p12 = scmp.ne.s32.totalorder %s4920_s10, 0 }
 0x212   : > { %s4922_s19 = sld [smem:[#allocation52_spill]] (!%p4921_p12)  ;;  %p4923_p2 = scmp.ne.s32.totalorder (!%p4921_p12), %s4913_s26, 0 }
 0x213   : > { %749 = sbr.rel (%p4921_p12) target bundleno = 6219 (0x184b), region = 92 }
 0x218   : > { %s4493_s21 = sand.u32 (!%p4921_p12), 1, %s4922_s19  }
 0x219   : > { %s2605_s23 = sshll.u32 (!%p4921_p12), %s4493_s21, 3  ;;  %s752_s5 = scalar_lea.sflag (!%p4921_p12), [#allocation10], %s4493_s21 }
 0x21a   : > { %s4499_s7 = scalar_lea.vmem [#allocation9], %s2605_s23 }
 0x21b   : > { %3779 = dma.done.wait (%p4923_p2), %s752_s5, 128  }
 0x21c   : > { %3781 = vsyncadd (%p4923_p2), %s752_s5, 4294967168  ;;  %s4924_s6 = sld [smem:[#allocation57_spill]]  ;;  %s2606_s9 = sshll.u32 %s4493_s21, 2 }
 0x21d   : > { %s4507_s22 = scalar_lea.vmem [#allocation12], %s2606_s9 }
 0x222   : > { %s760_s8 = sand.u32 1, %s4924_s6  }
 0x223   : > { %s761_s30 = scalar_lea.sflag [#allocation13], %s760_s8 }
 0x224   : > { %3783 = dma.done.wait (%p4923_p2), %s761_s30, 64  }
 0x225   : > { %3785 = vsyncadd (%p4923_p2), %s761_s30, 4294967232  ;;  %p4925_p10 = scmp.eq.s32.totalorder %s4924_s6, 0 }
 0x227   : > { %3787 = dma.done.wait (%p4925_p10), [#allocation13], 256   ;;  %p4926_p1 = pmov %p4925_p10 }
 0x229   : > { %3789 = vsyncadd (%p4926_p1), [#allocation13], 4294967040  ;;  %p4927_p5 = pmov %p4926_p1 }
 0x22a   : > { %p4928_p8 = pmov %p4926_p1 }
 0x22b   : > { %3791 = dma.done.wait (%p4927_p5), [#allocation16], 512  }
 0x22c   : > { %3793 = vsyncadd (%p4928_p8), [#allocation16], 4294966784  ;;  %p4929_p3 = pmov %p4926_p1 }
 0x22d   : > { %p4930_p11 = pmov %p4926_p1 }
 0x22e   : > { %3795 = dma.done.wait (%p4929_p3), [#allocation19], 32  }
 0x22f   : > { %3797 = vsyncadd (%p4930_p11), [#allocation19], 4294967264  ;;  %p4931_p6 = pmov %p4926_p1 }
 0x230   : > { %p4932_p13 = pmov %p4926_p1 }
 0x231   : > { %3799 = dma.done.wait (%p4931_p6), [#allocation22], 272  }
 0x232   : > { %3801 = vsyncadd (%p4932_p13), [#allocation22], 4294967024  ;;  %p4933_p4 = pmov %p4926_p1 }
 0x233   : > { %p4934_p9 = pmov %p4926_p1 }
 0x234   : > { %3803 = dma.done.wait (%p4933_p4), [#allocation25], 32  }
 0x235   : > { %3805 = vsyncadd (%p4934_p9), [#allocation25], 4294967264  ;;  %p4935_p0 = pmov %p4926_p1 }
 0x237   : > { %3807 = dma.done.wait (%p4935_p0), [#allocation28], 272   ;;  %p4936_p7 = pmov %p4935_p0 }
 0x238   : > { %p4937_p12 = pmov %p4935_p0 }
 0x239   : > { %3809 = vsyncadd (%p4936_p7), [#allocation28], 4294967024 }
 0x23a   : > { %3811 = dma.done.wait (%p4937_p12), [#allocation31], 1040   ;;  %p4938_p2 = pmov %p4935_p0 }
 0x23b   : > { %p4939_p10 = pmov %p4935_p0 }
 0x23c   : > { %3813 = vsyncadd (%p4938_p2), [#allocation31], 4294966256 }
 0x23d   : > { %3815 = dma.done.wait (%p4939_p10), [#allocation34], 32   ;;  %p4940_p1 = pmov %p4935_p0 }
 0x23e   : > { %p4941_p5 = pmov %p4935_p0 }
 0x23f   : > { %3817 = vsyncadd (%p4940_p1), [#allocation34], 4294967264 }
 0x240   : > { %3819 = dma.done.wait (%p4941_p5), [#allocation37], 16   ;;  %p4942_p8 = pmov %p4935_p0 }
 0x241   : > { %vm1144_vm0 = vcmask 7168   ;;  %vm1147_vm1 = vcmask 64512   ;;  %v3886_v0 = vmov 0.0   ;;  %v3887_v1 = vmov -1e+30   ;;  %v3146_v2 = vld [vmem:[#allocation15] sm:$0xff]  }
 0x242   : > { %3821 = vsyncadd (%p4942_p8), [#allocation37], 4294967280  ;;  %2737 = vmatprep.subr.bf16.mxu0 %v3886_v0  ;;  %1146 = vst.msk [vmem:[#allocation7] sm:$0xff] %vm1144_vm0, %v3886_v0  ;;  %2745 = vmatprep.subr.bf16.mxu1 %v3886_v0  ;;  %vm3888_vm2 = vmmov 0   ;;  %v3147_v3 = vld [vmem:[#allocation17] sm:$0xff]   ;;  %v3148_v4 = vld [vmem:[#allocation15 + $0x8] sm:$0xff]   ;;  %v1138_v12 = vlaneseq }
 0x243   : > { %1148 = vst.msk [vmem:[#allocation8] sm:$0xff] %vm1147_vm1, %v3886_v0  ;;  %2741 = vmatprep.mubr.msk.bf16.mxu0 %vm3888_vm2, %v3886_v0  ;;  %2749 = vmatprep.mubr.msk.bf16.mxu1 %vm3888_vm2, %v3886_v0  ;;  %v3149_v5 = vld [vmem:[#allocation17 + $0x8] sm:$0xff]   ;;  %v894_v6 = vld [vmem:[%s4507_s22] sm:$0xf]  ;;  %vm918_vm3 = vcmask 261120   ;;  %v3150_v7 = vld [vmem:[#allocation14] sm:$0xff]  }
 0x244   : > { %1145 = vst.msk [vmem:[#allocation6] sm:$0xff] %vm1144_vm0, %v3887_v1  ;;  %2738 = vmatpush3.bf16.msra.mxu0 %v3146_v2  ;;  %2746 = vmatpush3.bf16.msra.mxu1 %v3147_v3  ;;  %v3151_v8 = vld [vmem:[#allocation14 + $0x8] sm:$0xff]   ;;  %v2624_v11 = vld [vmem:[#allocation20] ss:$0 sm:$0xff]  ;;  %v2628_v13 = vld [vmem:[#allocation21] ss:$0 sm:$0xff] }
 0x245   : > { %2739 = vmatprep.subr.bf16.mxu0 %v3886_v0  ;;  %2747 = vmatprep.subr.bf16.mxu1 %v3886_v0  ;;  %v4568_v9 = vld [vmem:[%s4499_s7] sm:$0xff]  ;;  %v4577_v15 = vshrl.u32 %v1138_v12, 7  ;;  %vm1026_vm4 = vcmask 60416   ;;  %s3889_s26 = smov 112   ;;  %s3890_s3 = smov 120  }
 0x246   : > { %v1070_v10 = vpack.c.bf16 %v4568_v9, %v4568_v9  ;;  %v2634_v27 = vld [vmem:[#allocation18] ss:$0 sm:$0xff]  ;;  %s3891_s2 = smov 104   ;;  %s4591_s0 = scalar_lea.vmem [#allocation38], %s2605_s23 }
 0x247   : > { %s4593_s20 = smov 0  }
 0x248   : > { %2740 = vmatpush3.bf16.msra.mxu0 %v3148_v4  ;;  %2748 = vmatpush3.bf16.msra.mxu1 %v3149_v5 }
 0x249   : > { %2753 = vmatprep.subr.bf16.mxu0 %v3886_v0 }
 0x24b   : > { %2742 = vmatmul.mubr.msk.bf16.vlgmr.msra.gmra.mrb[0].mxu0 %vm918_vm3, %v894_v6  ;;  %2750 = vmatmul.mubr.msk.bf16.vlgmr.msra.gmra.mrb[0].mxu1 %vm918_vm3, %v894_v6 }
 0x24c   : > { %2754 = vmatpush3.bf16.msra.mxu0 %v3150_v7  ;;  %2757 = vmatprep.mubr.msk.bf16.mxu0 %vm3888_vm2, %v3886_v0 }
 0x24d   : > { %2755 = vmatprep.subr.bf16.mxu0 %v3886_v0 }
 0x250   : > { %2756 = vmatpush3.bf16.msra.mxu0 %v3151_v8 }
 0x253   : > { %2758 = vmatmul.mubr.msk.bf16.vlgmr.msra.gmra.mrb[4].mxu0 %vm918_vm3, %v1070_v10 }
 0x31e   : > { %v956_v14 = vpop.f32.mrb[0].mxu0  ;;  %v1019_v18 = vpop.f32.mrb[0].mxu1 }
 0x31f   : > { %v957_v16 = vadd.f32 %v2624_v11, %v956_v14  ;;  %v2743_v17 = vpop.f32.mrb[1].mxu0  ;;  %v1020_v19 = vadd.f32 %v2628_v13, %v1019_v18  ;;  %v2751_v21 = vpop.f32.mrb[1].mxu1 }
 0x320   : > { %v959_v20 = vpop.f32.mrb[2].mxu0  ;;  %v1022_v24 = vpop.f32.mrb[2].mxu1 }
 0x321   : > { %v1025_v22 = vpack.c.bf16 %v957_v16, %v957_v16  ;;  %v2744_v23 = vpop.f32.mrb[3].mxu0  ;;  %v1028_v25 = vpack.c.bf16 %v1020_v19, %v1020_v19  ;;  %v2752_v26 = vpop.f32.mrb[3].mxu1 }
 0x323   : > { %1027 = vst.msk [vmem:[#allocation2] sm:$0xf] %vm1026_vm4, %v1025_v22  ;;  %1046 = vrot.lane.b32.xlu1 %v1025_v22, %s3889_s26  ;;  %1033 = vrot.lane.b32.xlu0 %v1025_v22, %s3890_s3  ;;  %1029 = vst.msk [vmem:[#allocation3] sm:$0xf] %vm1026_vm4, %v1028_v25 }
 0x326   : > { %v1132_v28 = vpop.f32.mrb[4].mxu0 }
 0x327   : > { %1051 = vrot.lane.b32.xlu1 %v1028_v25, %s3889_s26  ;;  %1041 = vrot.lane.b32.xlu0 %v1028_v25, %s3890_s3  ;;  %v1133_v29 = vadd.f32 %v2634_v27, %v1132_v28  ;;  %v2759_v30 = vpop.f32.mrb[5].mxu0 }
 0x328   : > { %v1135_v31 = vpop.f32.mrb[6].mxu0 }
 0x329   : > { %v4581_v32 = vpack.c.bf16 %v1133_v29, %v1133_v29  ;;  %v2760_v33 = vpop.f32.mrb[7].mxu0 }
 0x32b   : > { %1061 = vrot.lane.b32.xlu1 %v1028_v25, %s3891_s2  ;;  %1056 = vrot.lane.b32.xlu0 %v1025_v22, %s3891_s2 }
 0x395   : > { %v1047_v34 = vpop.permute.xlu1 %1046  ;;  %v1034_v35 = vpop.permute.xlu0 %1033 }
 0x396   : > { %1050 = vst.msk [vmem:[#allocation2 + $0x8] sm:$0xf] %vm1026_vm4, %v1047_v34  ;;  %1037 = vst.msk [vmem:[#allocation2 + $0x4] sm:$0xf] %vm1026_vm4, %v1034_v35 }
 0x399   : > { %v1052_v36 = vpop.permute.xlu1 %1051  ;;  %v1042_v37 = vpop.permute.xlu0 %1041 }
 0x39a   : > { %1055 = vst.msk [vmem:[#allocation3 + $0x8] sm:$0xf] %vm1026_vm4, %v1052_v36  ;;  %1045 = vst.msk [vmem:[#allocation3 + $0x4] sm:$0xf] %vm1026_vm4, %v1042_v37 }
 0x39d   : > { %v1062_v38 = vpop.permute.xlu1 %1061  ;;  %v1057_v39 = vpop.permute.xlu0 %1056 }
 0x39e   : > { %1065 = vst.msk [vmem:[#allocation3 + $0xc] sm:$0xf] %vm1026_vm4, %v1062_v38  ;;  %1060 = vst.msk [vmem:[#allocation2 + $0xc] sm:$0xf] %vm1026_vm4, %v1057_v39 }
 0x39f LB: >> { %v3892_v40 = vmov 0.0   ;;  %vm3893_vm5 = vmmov 0   ;;  %s2638_s1 = sshll.u32 %s3852_s20, 3  ;;  %v4603_v43 = vand.u32 127, %v1138_v12  ;;  %v3894_v52 = vmov 0   ;;  %v1217_v53 = vld [vmem:[#allocation6] sm:$0xff]  ;;  %s3852_s20 = sphi %s4593_s20, %s1153_s20  }
 0x3a0   : >> { %2761 = vmatprep.subr.bf16.mxu0 %v3892_v40  ;;  %2763 = vmatprep.mubr.msk.bf16.mxu0 %vm3893_vm5, %v3892_v40  ;;  %s1157_s24 = sshra.s32 %s2638_s1, 3  ;;  %v1213_v44 = vstv %s2638_s1  ;;  %vm1251_vm7 = vcmask 1043456   ;;  %v1233_v5 = vld [vmem:[#allocation7] sm:$0xff]  ;;  %v1240_v10 = vld [vmem:[#allocation8] sm:$0xff]  ;;  %s1153_s20 = sadd.s32 1, %s3852_s20  }
 0x3a1   : >> { %2767 = vmatprep.subr.bf16.mxu1 %v3892_v40  ;;  %2769 = vmatprep.mubr.msk.bf16.mxu1 %vm3893_vm5, %v3892_v40  ;;  %s2639_s10 = sshll.u32 %s1157_s24, 2  ;;  %v1214_v45 = vadd.s32 %v1213_v44, %v4603_v43  ;;  %p1152_p3 = scmp.ge.s32.totalorder %s1153_s20, 1 }
 0x3a2   : >> { %s1160_s19 = scalar_lea.vmem [#allocation2], %s2639_s10  ;;  %3152 = vset.pattern.permute.xlu0 %v3894_v52  ;;  %3153 = vset.pattern.permute.xlu1 %v3894_v52  ;;  %s1163_s23 = scalar_lea.vmem [#allocation3], %s2639_s10  ;;  %v3895_v21 = vmov (%p1152_p3), 0   ;;  %v4624_v24 = vld [vmem:[#allocation23] sm:$0xf] (%p1152_p3) }
 0x3a3   : >> { %vm1215_vm6 = vcmp.ge.s32.totalorder %v4577_v15, %v1214_v45  ;;  %s4630_s5 = smov (%p1152_p3), 0  }
 0x3a5   : >> { %v1161_v41 = vld [vmem:[%s1160_s19] sm:$0xf] }
 0x3a6   : >> { %v1169_v42 = vsel %vm1147_vm1, %v1161_v41, 0  ;;  %v1164_v57 = vld [vmem:[%s1163_s23] sm:$0xf] }
 0x3a7   : >> { %2762 = vmatpush3.bf16.xpose.msra.mxu0 %v1169_v42  ;;  %v1253_v58 = vsel %vm1251_vm7, %v1164_v57, 0 }
 0x3a8   : >> { %2768 = vmatpush3.bf16.msra.mxu1 %v1253_v58 }
 0x3ae   : >> { %2764 = vmatmul.mubr.msk.bf16.vlgmr.msra.gmra.mrb[0].mxu0 %vm1147_vm1, %v4581_v32 }
 0x481   : >> { %v1205_v46 = vpop.f32.mrb[0].mxu0 }
 0x482   : >> { %v1216_v47 = vsel %vm1215_vm6, %v1205_v46, -1e+30  ;;  %v2765_v48 = vpop.f32.mrb[1].mxu0 }
 0x483   : >> { %v1208_v49 = vpop.f32.mrb[2].mxu0  ;;  %v1218_v50 = vsel %vm1147_vm1, %v1216_v47, -inf }
 0x484   : >> { %1219 = vmax.xlane.f32.xlu0 %v1218_v50  ;;  %v2766_v51 = vpop.f32.mrb[3].mxu0 }
 0x511   : >> { %v1220_v54 = vpop.xlane.xlu0 %1219 }
 0x512   : >> { %v1221_v55 = vmax.f32 %v1217_v53, %v1220_v54 }
 0x514   : >> { %v1222_v56 = vsub.f32 %v1217_v53, %v1221_v55  ;;  %1297 = vst.msk [vmem:[#allocation6] sm:$0xff] %vm1144_vm0, %v1221_v55  ;;  %1227 = vperm.xlu0 %3152, %v1221_v55  }
 0x515   : > { %1309 = vst.msk [vmem:[#allocation6] sm:$0xff] (%p1152_p3), %vm1144_vm0, %v3887_v1 }
 0x516   : >> { %v1223_v3 = vmul.f32 1.442695, %v1222_v56 }
 0x518   : > { %3158 = vset.pattern.permute.xlu0 (%p1152_p3), %v3895_v21 }
 0x593   : >> { %v1228_v59 = vpop.permute.xlu0 %1227 }
 0x594   : >> { %v1230_v60 = vsub.f32 %v1216_v47, %v1228_v59 }
 0x596   : >> { %v1231_v61 = vmul.f32 1.442695, %v1230_v60 }
 0x598   : >> { %3154 = vpow2.f32 %v1231_v61 }
 0x599   : >> { %3156 = vpow2.f32 %v1223_v3 }
 0x5a2   : >> { %v3155_v62 = vpop.eup %3154 }
 0x5a3   : >> { %v1235_v63 = vsel %vm1147_vm1, %v3155_v62, 0.0  ;;  %v1247_v2 = vpack.c.bf16 %v3155_v62, %v3155_v62  ;;  %v3157_v4 = vpop.eup %3156 }
 0x5a4   : >> { %1236 = vadd.xlane.f32.xlu1 %v1235_v63  ;;  %v1234_v6 = vmul.f32 %v3157_v4, %v1233_v5 }
 0x5a5   : >> { %2770 = vmatmul.mubr.msk.bf16.vlgmr.msra.gmra.mrb[0].mxu1 %vm1147_vm1, %v1247_v2 }
 0x5b5   : >> { %1243 = vperm.xlu1 %3153, %v3157_v4  }
 0x631   : >> { %v1237_v7 = vpop.xlane.xlu1 %1236 }
 0x632   : >> { %v1238_v8 = vadd.f32 %v1237_v7, %v1234_v6 }
 0x634   : >> { %1239 = vst.msk [vmem:[#allocation7] sm:$0xff] %vm1144_vm0, %v1238_v8 }
 0x635   : >> { %v1244_v11 = vpop.permute.xlu1 %1243 }
 0x636   : >> { %v1246_v13 = vmul.f32 %v1244_v11, %v1240_v10 }
 0x63b   : > { %v1299_v20 = vld [vmem:[#allocation7] sm:$0xff] (%p1152_p3) }
 0x63c   : > { %3159 = vrcp.f32 (%p1152_p3), %v1299_v20  ;;  %1310 = vst.msk [vmem:[#allocation7] sm:$0xff] (%p1152_p3), %vm1144_vm0, %v3886_v0 }
 0x646   : > { %v3160_v22 = vpop.eup (%p1152_p3), %3159 }
 0x647   : > { %1303 = vperm.xlu0 (%p1152_p3), %3158, %v3160_v22  }
 0x675   : > { %1155 = sbr.rel (!%p1152_p3) target bundleno = 927 (0x39f), region = 274 }
 0x678   : >> { %v1289_v14 = vpop.f32.mrb[0].mxu1 }
 0x679   : >> { %v1295_v16 = vadd.f32 %v1289_v14, %v1246_v13  ;;  %v2771_v17 = vpop.f32.mrb[1].mxu1 }
 0x67a   : >> { %v1292_v18 = vpop.f32.mrb[2].mxu1 }
 0x67b   : >> { %1296 = vst.msk [vmem:[#allocation8] sm:$0xff] %vm1147_vm1, %v1295_v16  ;;  %v2772_v19 = vpop.f32.mrb[3].mxu1 }
 0x682   : > { %v1298_v23 = vld [vmem:[#allocation8] sm:$0xff] }
 0x683   : > { %1311 = vst.msk [vmem:[#allocation8] sm:$0xff] %vm1147_vm1, %v3886_v0 }
 0x6c6   : > { %v1304_v25 = vpop.permute.xlu0 %1303 }
 0x6c7   : > { %v4626_v12 = vmul.f32 %v1304_v25, %v1298_v23 }
 0x6c9   : > { %v1307_v26 = vpack.c.bf16 %v4626_v12, %v4626_v12 }
 0x6ca LB: >> { %s3896_s7 = smov 120   ;;  %v3897_v27 = vmov 0.0   ;;  %s2643_s6 = sshll.u32 %s3856_s5, 3  ;;  %vm3898_vm8 = vmmov 0   ;;  %v3899_v40 = vmov 0   ;;  %v1383_v41 = vld [vmem:[#allocation6] sm:$0xff]  ;;  %s3856_s5 = sphi %s4630_s5, %s1315_s5  }
 0x6cb   : >> { %1329 = vrot.lane.b32.xlu0 %v4581_v32, %s3896_s7  ;;  %2773 = vmatprep.subr.bf16.mxu0 %v3897_v27  ;;  %s4637_s8 = sshra.s32 %s2643_s6, 3  ;;  %v1379_v31 = vstv %s2643_s6  ;;  %v1399_v56 = vld [vmem:[#allocation7] sm:$0xff]  ;;  %v1406_v60 = vld [vmem:[#allocation8] sm:$0xff]  ;;  %s1315_s5 = sadd.s32 1, %s3856_s5  }
 0x6cc   : >> { %2775 = vmatprep.mubr.msk.bf16.mxu0 %vm3898_vm8, %v3897_v27  ;;  %2779 = vmatprep.subr.bf16.mxu1 %v3897_v27  ;;  %s2644_s9 = sshll.u32 %s4637_s8, 2  ;;  %v1380_v33 = vadd.s32 %v1379_v31, %v4603_v43  ;;  %p1314_p11 = scmp.ge.s32.totalorder %s1315_s5, 1 }
 0x6cd   : >> { %2781 = vmatprep.mubr.msk.bf16.mxu1 %vm3898_vm8, %v3897_v27  ;;  %s2346_s30 = scalar_lea.vmem [#allocation2], %s2644_s9  ;;  %3161 = vset.pattern.permute.xlu1 %v3899_v40  ;;  %s2349_s22 = scalar_lea.vmem [#allocation3], %s2644_s9  ;;  %v1527_v7 = vsel (%p1314_p11), %vm1251_vm7, %v4624_v24, 0  ;;  %v1475_v11 = vld [vmem:[#allocation23 + $0x4] sm:$0xf] (%p1314_p11) }
 0x6ce   : >> { %v2645_v28 = vld [vmem:[%s2346_s30 + $0x4] sm:$0xf]  ;;  %vm1381_vm9 = vcmp.ge.s32.totalorder %v4577_v15, %v1380_v33  ;;  %3162 = vset.pattern.permute.xlu0 %v3899_v40  ;;  %v1481_v13 = vsel (%p1314_p11), %vm1251_vm7, %v1475_v11, 0  ;;  %s4677_s26 = smov (%p1314_p11), 0  }
 0x6cf   : >> { %v1335_v29 = vsel %vm1147_vm1, %v2645_v28, 0  ;;  %v2647_v47 = vld [vmem:[%s2349_s22 + $0x4] sm:$0xf] }
 0x6d0   : >> { %2774 = vmatpush3.bf16.xpose.msra.mxu0 %v1335_v29  ;;  %v1419_v48 = vsel %vm1251_vm7, %v2647_v47, 0 }
 0x6d1   : >> { %2780 = vmatpush3.bf16.msra.mxu1 %v1419_v48  ;;  %2791 = vmatprep.subr.bf16.mxu0 (%p1314_p11), %v3886_v0 }
 0x6d2   : > { %2785 = vmatprep.subr.bf16.mxu1 (%p1314_p11), %v3886_v0 }
 0x73d   : >> { %v1330_v30 = vpop.permute.xlu0 %1329 }
 0x73e   : >> { %2776 = vmatmul.mubr.msk.bf16.vlgmr.msra.gmra.mrb[0].mxu0 %vm1147_vm1, %v1330_v30 }
 0x73f   : > { %2792 = vmatpush3.bf16.msra.mxu0 (%p1314_p11), %v1527_v7  ;;  %2793 = vmatprep.mubr.msk.bf16.mxu0 (%p1314_p11), %vm3888_vm2, %v3886_v0 }
 0x811   : >> { %v1371_v34 = vpop.f32.mrb[0].mxu0 }
 0x812   : >> { %v1382_v35 = vsel %vm1381_vm9, %v1371_v34, -1e+30  ;;  %v2777_v36 = vpop.f32.mrb[1].mxu0 }
 0x813   : >> { %v1374_v37 = vpop.f32.mrb[2].mxu0  ;;  %v1384_v38 = vsel %vm1147_vm1, %v1382_v35, -inf }
 0x814   : >> { %1385 = vmax.xlane.f32.xlu0 %v1384_v38  ;;  %v2778_v39 = vpop.f32.mrb[3].mxu0  ;;  %2794 = vmatmul.mubr.msk.bf16.vlgmr.msra.gmra.mrb[0].mxu0 (%p1314_p11), %vm1147_vm1, %v1307_v26 }
 0x8a1   : >> { %v1386_v42 = vpop.xlane.xlu0 %1385 }
 0x8a2   : >> { %v1387_v44 = vmax.f32 %v1383_v41, %v1386_v42 }
 0x8a4   : >> { %v1388_v45 = vsub.f32 %v1383_v41, %v1387_v44  ;;  %1463 = vst.msk [vmem:[#allocation6] sm:$0xff] %vm1144_vm0, %v1387_v44  ;;  %1393 = vperm.xlu1 %3161, %v1387_v44  }
 0x8a5   : > { %1569 = vst.msk [vmem:[#allocation6] sm:$0xff] (%p1314_p11), %vm1144_vm0, %v3887_v1 }
 0x8a6   : >> { %v1389_v46 = vmul.f32 1.442695, %v1388_v45 }
 0x8a8   : >> { %3163 = vpow2.f32 %v1389_v46 }
 0x8b2   : >> { %v3164_v49 = vpop.eup %3163 }
 0x8b3   : >> { %1409 = vperm.xlu0 %3162, %v3164_v49   ;;  %v1400_v57 = vmul.f32 %v3164_v49, %v1399_v56 }
 0x8b7   : > { %3167 = vset.pattern.permute.xlu0 (%p1314_p11), %v3895_v21 }
 0x8e7   : > { %v1563_v18 = vpop.f32.mrb[0].mxu0 (%p1314_p11) }
 0x8e8   : > { %v2795_v19 = vpop.f32.mrb[1].mxu0 (%p1314_p11) }
 0x8e9   : > { %v1566_v20 = vpop.f32.mrb[2].mxu0 (%p1314_p11) }
 0x8ea   : > { %v2796_v22 = vpop.f32.mrb[3].mxu0 (%p1314_p11) }
 0x923   : >> { %v1394_v50 = vpop.permute.xlu1 %1393 }
 0x924   : >> { %v1396_v51 = vsub.f32 %v1382_v35, %v1394_v50 }
 0x926   : >> { %v1397_v52 = vmul.f32 1.442695, %v1396_v51 }
 0x928   : >> { %3165 = vpow2.f32 %v1397_v52 }
 0x932   : >> { %v3166_v53 = vpop.eup %3165  ;;  %v1410_v61 = vpop.permute.xlu0 %1409 }
 0x933   : >> { %v1401_v54 = vsel %vm1147_vm1, %v3166_v53, 0.0  ;;  %v1413_v55 = vpack.c.bf16 %v3166_v53, %v3166_v53  ;;  %v1412_v62 = vmul.f32 %v1410_v61, %v1406_v60 }
 0x934   : >> { %1402 = vadd.xlane.f32.xlu1 %v1401_v54 }
 0x935   : >> { %2782 = vmatmul.mubr.msk.bf16.vlgmr.msra.gmra.mrb[0].mxu1 %vm1147_vm1, %v1413_v55 }
 0x936   : > { %2787 = vmatprep.mubr.msk.bf16.mxu1 (%p1314_p11), %vm3888_vm2, %v3886_v0  ;;  %2786 = vmatpush3.bf16.msra.mxu1 (%p1314_p11), %v1481_v13 }
 0x9c1   : >> { %v1403_v58 = vpop.xlane.xlu1 %1402 }
 0x9c2   : >> { %v1404_v59 = vadd.f32 %v1403_v58, %v1400_v57 }
 0x9c4   : >> { %1405 = vst.msk [vmem:[#allocation7] sm:$0xff] %vm1144_vm0, %v1404_v59 }
 0x9cb   : > { %v1465_v6 = vld [vmem:[#allocation7] sm:$0xff] (%p1314_p11) }
 0x9cc   : > { %3168 = vrcp.f32 (%p1314_p11), %v1465_v6  ;;  %1570 = vst.msk [vmem:[#allocation7] sm:$0xff] (%p1314_p11), %vm1144_vm0, %v3886_v0 }
 0x9d6   : > { %v3169_v8 = vpop.eup (%p1314_p11), %3168 }
 0x9d7   : > { %1469 = vperm.xlu0 (%p1314_p11), %3167, %v3169_v8  }
 0xa05   : > { %1317 = sbr.rel (!%p1314_p11) target bundleno = 1738 (0x6ca), region = 285 }
 0xa08   : >> { %v1455_v63 = vpop.f32.mrb[0].mxu1 }
 0xa09   : >> { %v1461_v2 = vadd.f32 %v1455_v63, %v1412_v62  ;;  %v2783_v3 = vpop.f32.mrb[1].mxu1 }
 0xa0a   : >> { %v1458_v4 = vpop.f32.mrb[2].mxu1 }
 0xa0b   : >> { %1462 = vst.msk [vmem:[#allocation8] sm:$0xff] %vm1147_vm1, %v1461_v2  ;;  %v2784_v5 = vpop.f32.mrb[3].mxu1 }
 0xa12   : > { %v1464_v10 = vld [vmem:[#allocation8] sm:$0xff] }
 0xa13   : > { %1571 = vst.msk [vmem:[#allocation8] sm:$0xff] %vm1147_vm1, %v3886_v0 }
 0xa56   : > { %v1470_v14 = vpop.permute.xlu0 %1469 }
 0xa57   : > { %v1472_v16 = vmul.f32 %v1470_v14, %v1464_v10 }
 0xa59   : > { %v1473_v17 = vpack.c.bf16 %v1472_v16, %v1472_v16 }
 0xa5b   : > { %2788 = vmatmul.mubr.msk.bf16.vlgmr.msra.gmra.mrb[0].mxu1 %vm1147_vm1, %v1473_v17 }
 0xb2e   : > { %v1517_v23 = vpop.f32.mrb[0].mxu1 }
 0xb2f   : > { %v4675_v24 = vadd.f32 %v1563_v18, %v1517_v23  ;;  %v2789_v25 = vpop.f32.mrb[1].mxu1 }
 0xb30   : > { %v1520_v12 = vpop.f32.mrb[2].mxu1 }
 0xb31   : > { %v2790_v26 = vpop.f32.mrb[3].mxu1 }
 0xb32 LB: >> { %s3900_s3 = smov 112   ;;  %v3901_v27 = vmov 0.0   ;;  %s2652_s2 = sshll.u32 %s3860_s26, 3  ;;  %vm3902_vm10 = vmmov 0   ;;  %v3903_v40 = vmov 0   ;;  %v1643_v41 = vld [vmem:[#allocation6] sm:$0xff]  ;;  %s3860_s26 = sphi %s4677_s26, %s1575_s26  }
 0xb33   : >> { %1589 = vrot.lane.b32.xlu0 %v4581_v32, %s3900_s3  ;;  %2797 = vmatprep.subr.bf16.mxu0 %v3901_v27  ;;  %s4684_s20 = sshra.s32 %s2652_s2, 3  ;;  %v1639_v31 = vstv %s2652_s2  ;;  %v1659_v56 = vld [vmem:[#allocation7] sm:$0xff]  ;;  %v1666_v60 = vld [vmem:[#allocation8] sm:$0xff]  ;;  %s1575_s26 = sadd.s32 1, %s3860_s26  }
 0xb34   : >> { %2799 = vmatprep.mubr.msk.bf16.mxu0 %vm3902_vm10, %v3901_v27  ;;  %2803 = vmatprep.subr.bf16.mxu1 %v3901_v27  ;;  %s2653_s1 = sshll.u32 %s4684_s20, 2  ;;  %v1640_v33 = vadd.s32 %v1639_v31, %v4603_v43  ;;  %p1574_p6 = scmp.ge.s32.totalorder %s1575_s26, 1 }
 0xb35   : >> { %2805 = vmatprep.mubr.msk.bf16.mxu1 %vm3902_vm10, %v3901_v27  ;;  %s2352_s24 = scalar_lea.vmem [#allocation2], %s2653_s1  ;;  %3170 = vset.pattern.permute.xlu1 %v3903_v40  ;;  %s2355_s10 = scalar_lea.vmem [#allocation3], %s2653_s1  ;;  %v1734_v10 = vld [vmem:[#allocation23 + $0x8] sm:$0xf] (%p1574_p6) }
 0xb36   : >> { %v2654_v28 = vld [vmem:[%s2352_s24 + $0x8] sm:$0xf]  ;;  %vm1641_vm11 = vcmp.ge.s32.totalorder %v4577_v15, %v1640_v33  ;;  %3171 = vset.pattern.permute.xlu0 %v3903_v40  ;;  %v1739_v11 = vsel (%p1574_p6), %vm1251_vm7, %v1734_v10, 0  ;;  %s4716_s19 = smov (%p1574_p6), 0  }
 0xb37   : >> { %v1595_v29 = vsel %vm1147_vm1, %v2654_v28, 0  ;;  %v2656_v47 = vld [vmem:[%s2355_s10 + $0x8] sm:$0xf] }
 0xb38   : >> { %2798 = vmatpush3.bf16.xpose.msra.mxu0 %v1595_v29  ;;  %v1678_v48 = vsel %vm1251_vm7, %v2656_v47, 0 }
 0xb39   : >> { %2804 = vmatpush3.bf16.msra.mxu1 %v1678_v48  ;;  %2809 = vmatprep.subr.bf16.mxu0 (%p1574_p6), %v3886_v0 }
 0xba5   : >> { %v1590_v30 = vpop.permute.xlu0 %1589 }
 0xba6   : >> { %2800 = vmatmul.mubr.msk.bf16.vlgmr.msra.gmra.mrb[0].mxu0 %vm1147_vm1, %v1590_v30 }
 0xba7   : > { %2811 = vmatprep.mubr.msk.bf16.mxu0 (%p1574_p6), %vm3888_vm2, %v3886_v0  ;;  %2810 = vmatpush3.bf16.msra.mxu0 (%p1574_p6), %v1739_v11 }
 0xc79   : >> { %v1631_v34 = vpop.f32.mrb[0].mxu0 }
 0xc7a   : >> { %v1642_v35 = vsel %vm1641_vm11, %v1631_v34, -1e+30  ;;  %v2801_v36 = vpop.f32.mrb[1].mxu0 }
 0xc7b   : >> { %v1634_v37 = vpop.f32.mrb[2].mxu0  ;;  %v1644_v38 = vsel %vm1147_vm1, %v1642_v35, -inf }
 0xc7c   : >> { %1645 = vmax.xlane.f32.xlu0 %v1644_v38  ;;  %v2802_v39 = vpop.f32.mrb[3].mxu0 }
 0xd09   : >> { %v1646_v42 = vpop.xlane.xlu0 %1645 }
 0xd0a   : >> { %v1647_v44 = vmax.f32 %v1643_v41, %v1646_v42 }
 0xd0c   : >> { %v1648_v45 = vsub.f32 %v1643_v41, %v1647_v44  ;;  %1722 = vst.msk [vmem:[#allocation6] sm:$0xff] %vm1144_vm0, %v1647_v44  ;;  %1653 = vperm.xlu1 %3170, %v1647_v44  }
 0xd0d   : > { %1782 = vst.msk [vmem:[#allocation6] sm:$0xff] (%p1574_p6), %vm1144_vm0, %v3887_v1 }
 0xd0e   : >> { %v1649_v46 = vmul.f32 1.442695, %v1648_v45 }
 0xd10   : >> { %3172 = vpow2.f32 %v1649_v46 }
 0xd1a   : >> { %v3173_v49 = vpop.eup %3172 }
 0xd1b   : >> { %1669 = vperm.xlu0 %3171, %v3173_v49   ;;  %v1660_v57 = vmul.f32 %v3173_v49, %v1659_v56 }
 0xd1f   : > { %3176 = vset.pattern.permute.xlu0 (%p1574_p6), %v3895_v21 }
 0xd8b   : >> { %v1654_v50 = vpop.permute.xlu1 %1653 }
 0xd8c   : >> { %v1656_v51 = vsub.f32 %v1642_v35, %v1654_v50 }
 0xd8e   : >> { %v1657_v52 = vmul.f32 1.442695, %v1656_v51 }
 0xd90   : >> { %3174 = vpow2.f32 %v1657_v52 }
 0xd9a   : >> { %v3175_v53 = vpop.eup %3174  ;;  %v1670_v61 = vpop.permute.xlu0 %1669 }
 0xd9b   : >> { %v1661_v54 = vsel %vm1147_vm1, %v3175_v53, 0.0  ;;  %v1673_v55 = vpack.c.bf16 %v3175_v53, %v3175_v53  ;;  %v1672_v62 = vmul.f32 %v1670_v61, %v1666_v60 }
 0xd9c   : >> { %1662 = vadd.xlane.f32.xlu1 %v1661_v54 }
 0xd9d   : >> { %2806 = vmatmul.mubr.msk.bf16.vlgmr.msra.gmra.mrb[0].mxu1 %vm1147_vm1, %v1673_v55 }
 0xe29   : >> { %v1663_v58 = vpop.xlane.xlu1 %1662 }
 0xe2a   : >> { %v1664_v59 = vadd.f32 %v1663_v58, %v1660_v57 }
 0xe2c   : >> { %1665 = vst.msk [vmem:[#allocation7] sm:$0xff] %vm1144_vm0, %v1664_v59 }
 0xe33   : > { %v1724_v6 = vld [vmem:[#allocation7] sm:$0xff] (%p1574_p6) }
 0xe34   : > { %3177 = vrcp.f32 (%p1574_p6), %v1724_v6  ;;  %1783 = vst.msk [vmem:[#allocation7] sm:$0xff] (%p1574_p6), %vm1144_vm0, %v3886_v0 }
 0xe3e   : > { %v3178_v7 = vpop.eup (%p1574_p6), %3177 }
 0xe3f   : > { %1728 = vperm.xlu0 (%p1574_p6), %3176, %v3178_v7  }
 0xe6d   : > { %1577 = sbr.rel (!%p1574_p6) target bundleno = 2866 (0xb32), region = 296 }
 0xe70   : >> { %v1714_v63 = vpop.f32.mrb[0].mxu1 }
 0xe71   : >> { %v1720_v2 = vadd.f32 %v1714_v63, %v1672_v62  ;;  %v2807_v3 = vpop.f32.mrb[1].mxu1 }
 0xe72   : >> { %v1717_v4 = vpop.f32.mrb[2].mxu1 }
 0xe73   : >> { %1721 = vst.msk [vmem:[#allocation8] sm:$0xff] %vm1147_vm1, %v1720_v2  ;;  %v2808_v5 = vpop.f32.mrb[3].mxu1 }
 0xe7a   : > { %v1723_v8 = vld [vmem:[#allocation8] sm:$0xff] }
 0xe7b   : > { %1784 = vst.msk [vmem:[#allocation8] sm:$0xff] %vm1147_vm1, %v3886_v0 }
 0xebe   : > { %v1729_v13 = vpop.permute.xlu0 %1728 }
 0xebf   : > { %v1731_v14 = vmul.f32 %v1729_v13, %v1723_v8 }
 0xec1   : > { %v1732_v1 = vpack.c.bf16 %v1731_v14, %v1731_v14 }
 0xec3   : > { %2812 = vmatmul.mubr.msk.bf16.vlgmr.msra.gmra.mrb[0].mxu0 %vm1147_vm1, %v1732_v1 }
 0xf96   : > { %v1775_v16 = vpop.f32.mrb[0].mxu0 }
 0xf97   : > { %v4714_v17 = vadd.f32 %v1775_v16, %v4675_v24  ;;  %v2813_v18 = vpop.f32.mrb[1].mxu0 }
 0xf98   : > { %v1778_v19 = vpop.f32.mrb[2].mxu0 }
 0xf99   : > { %v2814_v20 = vpop.f32.mrb[3].mxu0 }
 0xf9a LB: >> { %s3904_s23 = smov 104   ;;  %v3905_v22 = vmov 0.0   ;;  %s2660_s5 = sshll.u32 %s3864_s19, 3  ;;  %vm3906_vm12 = vmmov 0   ;;  %v3907_v34 = vmov 0   ;;  %v1856_v35 = vld [vmem:[#allocation6] sm:$0xff]  ;;  %s3864_s19 = sphi %s4716_s19, %s1788_s19  }
 0xf9b   : >> { %1802 = vrot.lane.b32.xlu0 %v4581_v32, %s3904_s23  ;;  %2815 = vmatprep.subr.bf16.mxu0 %v3905_v22  ;;  %s4723_s7 = sshra.s32 %s2660_s5, 3  ;;  %v1852_v12 = vstv %s2660_s5  ;;  %v1872_v50 = vld [vmem:[#allocation7] sm:$0xff]  ;;  %v1879_v54 = vld [vmem:[#allocation8] sm:$0xff]  ;;  %s1788_s19 = sadd.s32 1, %s3864_s19  }
 0xf9c   : >> { %2817 = vmatprep.mubr.msk.bf16.mxu0 %vm3906_vm12, %v3905_v22  ;;  %2821 = vmatprep.subr.bf16.mxu1 %v3905_v22  ;;  %s2661_s6 = sshll.u32 %s4723_s7, 2  ;;  %v1853_v26 = vadd.s32 %v1852_v12, %v4603_v43  ;;  %p1787_p13 = scmp.ge.s32.totalorder %s1788_s19, 1 }
 0xf9d   : >> { %2823 = vmatprep.mubr.msk.bf16.mxu1 %vm3906_vm12, %v3905_v22  ;;  %s2358_s8 = scalar_lea.vmem [#allocation2], %s2661_s6  ;;  %3179 = vset.pattern.permute.xlu1 %v3907_v34  ;;  %s2361_s9 = scalar_lea.vmem [#allocation3], %s2661_s6  ;;  %2035 = vst.msk [vmem:[#allocation5] sm:$0xff] (%p1787_p13), %vm918_vm3, %v3886_v0  ;;  %v1947_v2 = vld [vmem:[#allocation23 + $0xc] sm:$0xf] (%p1787_p13)  ;;  %v3186_v22 = vld [vmem:[#allocation29] sm:$0xff] (%p1787_p13)  }
 0xf9e   : >> { %v2662_v23 = vld [vmem:[%s2358_s8 + $0xc] sm:$0xf]  ;;  %vm1854_vm13 = vcmp.ge.s32.totalorder %v4577_v15, %v1853_v26  ;;  %3180 = vset.pattern.permute.xlu0 %v3907_v34  ;;  %v1952_v15 = vsel (%p1787_p13), %vm1251_vm7, %v1947_v2, 0  ;;  %v2668_v5 = vld [vmem:[#allocation24] ss:$0 sm:$0xff] (%p1787_p13)  ;;  %v3192_v12 = vld [vmem:[#allocation32 + $0x20] sm:$0xff] (%p1787_p13)  }
 0xf9f   : >> { %v1808_v24 = vsel %vm1147_vm1, %v2662_v23, 0  ;;  %v2664_v40 = vld [vmem:[%s2361_s9 + $0xc] sm:$0xf]  ;;  %v3187_v23 = vld [vmem:[#allocation29 + $0x8] sm:$0xff] (%p1787_p13)   ;;  %v2670_v34 = vld [vmem:[#allocation27] ss:$0 sm:$0xff] (%p1787_p13) }
 0xfa0   : >> { %2816 = vmatpush3.bf16.xpose.msra.mxu0 %v1808_v24  ;;  %v1891_v41 = vsel %vm1251_vm7, %v2664_v40, 0  ;;  %v3189_v24 = vld [vmem:[#allocation32 + $0x8] sm:$0xff] (%p1787_p13)   ;;  %v3195_v40 = vld [vmem:[#allocation32 + $0x38] sm:$0xff] (%p1787_p13)   ;;  %s4943_s30 = sld [smem:[#allocation54_spill]] (%p1787_p13)  ;;  %s2274_s26 = sshll.u32 (%p1787_p13), %s4591_s0, 4  ;;  %s4778_s26 = int_to_ptr.vmem [resolvable:$true] %s2274_s26 }
 0xfa1   : >> { %2822 = vmatpush3.bf16.msra.mxu1 %v1891_v41  ;;  %2841 = vmatprep.subr.bf16.mxu0 (%p1787_p13), %v3886_v0  ;;  %v3193_v26 = vld [vmem:[#allocation32 + $0x28] sm:$0xff] (%p1787_p13)   ;;  %v2671_v41 = vld [vmem:[#allocation30] ss:$0 sm:$0xff] (%p1787_p13)  ;;  %s4944_s20 = sld [smem:[#allocation71_spill]] (%p1787_p13)  ;;  %s2260_s24 = scalar_lea.sflag (%p1787_p13), [#allocation11], %s4493_s21 }
 0xfa2   : > { %2827 = vmatprep.subr.bf16.mxu1 (%p1787_p13), %v3886_v0  ;;  %s3710_s10 = scalar_lea.vmem (%p1787_p13), %s4778_s26, 128  ;;  %p4945_p9 = scmp.ne.s32.totalorder (%p1787_p13), %s4914_s28, 0 }
 0xfa3   : > { %p3711_p4 = scmp.ne.s32.totalorder (%p1787_p13), %s4778_s26, %s3710_s10  ;;  %s3908_s19 = smov (%p1787_p13), [#allocation38]  }
 0xfa4   : > { %s3714_s23 = sshll.u32 (%p1787_p13), %s3908_s19, 4  ;;  %s3715_s23 = int_to_ptr.vmem [resolvable:$false] %s3714_s23 }
 0xfa5   : > { %p3712_p0 = pnand (%p1787_p13), %p3711_p4, %p4945_p9  ;;  %s3716_s5 = scalar_lea.vmem (%p1787_p13), %s3715_s23, 256 }
 0xfa6   : > { %s2687_s22 = sshll.u32 (%p1787_p13), %s4943_s30, 7  ;;  %p3717_p12 = scmp.lt.s32.totalorder (%p1787_p13), %s4778_s26, %s3715_s23 }
 0xfa7   : > { %s4776_s1 = scalar_lea.hbm (%p1787_p13), %s4944_s20, %s2687_s22  ;;  %p3713_p7 = pneg (%p1787_p13), %p3712_p0 }
 0xfa8   : > { %p3718_p2 = scmp.lt.s32.totalorder (%p1787_p13), %s3716_s5, %s3710_s10 }
 0xfaa   : > { %p3719_p10 = por (%p1787_p13), %p3718_p2, %p3717_p12 }
 0xfac   : > { %p3720_p1 = pnand (%p1787_p13), %p3719_p10, %p3713_p7 }
0x100d   : >> { %v1803_v25 = vpop.permute.xlu0 %1802 }
0x100e   : >> { %2818 = vmatmul.mubr.msk.bf16.vlgmr.msra.gmra.mrb[0].mxu0 %vm1147_vm1, %v1803_v25  ;;  %v3191_v25 = vld [vmem:[#allocation32 + $0x18] sm:$0xff] (%p1787_p13)  }
0x100f   : > { %2857 = vmatprep.mubr.msk.bf16.mxu0 (%p1787_p13), %vm3888_vm2, %v3886_v0 }
0x10e1   : >> { %v1844_v27 = vpop.f32.mrb[0].mxu0 }
0x10e2   : >> { %v1855_v28 = vsel %vm1854_vm13, %v1844_v27, -1e+30  ;;  %v2819_v29 = vpop.f32.mrb[1].mxu0 }
0x10e3   : >> { %v1847_v30 = vpop.f32.mrb[2].mxu0  ;;  %v1857_v31 = vsel %vm1147_vm1, %v1855_v28, -inf }
0x10e4   : >> { %1858 = vmax.xlane.f32.xlu0 %v1857_v31  ;;  %v2820_v33 = vpop.f32.mrb[3].mxu0  ;;  %v2669_v31 = vld [vmem:[#allocation26] ss:$0 sm:$0xff] (%p1787_p13) }
0x1171   : >> { %v1859_v36 = vpop.xlane.xlu0 %1858 }
0x1172   : >> { %v1860_v37 = vmax.f32 %v1856_v35, %v1859_v36 }
0x1174   : >> { %v1861_v38 = vsub.f32 %v1856_v35, %v1860_v37  ;;  %1935 = vst.msk [vmem:[#allocation6] sm:$0xff] %vm1144_vm0, %v1860_v37  ;;  %1866 = vperm.xlu1 %3179, %v1860_v37  }
0x1176   : >> { %v1862_v39 = vmul.f32 1.442695, %v1861_v38 }
0x1178   : >> { %3181 = vpow2.f32 %v1862_v39  ;;  %v3194_v39 = vld [vmem:[#allocation32 + $0x30] sm:$0xff] (%p1787_p13)  }
0x1182   : >> { %v3182_v42 = vpop.eup %3181 }
0x1183   : >> { %1882 = vperm.xlu0 %3180, %v3182_v42   ;;  %v1873_v51 = vmul.f32 %v3182_v42, %v1872_v50  ;;  %v2106_v50 = vld [vmem:[#allocation5] sm:$0xff] (%p1787_p13) }
0x1187   : > { %3185 = vset.pattern.permute.xlu0 (%p1787_p13), %v3895_v21 }
0x11f3   : >> { %v1867_v44 = vpop.permute.xlu1 %1866 }
0x11f4   : >> { %v1869_v45 = vsub.f32 %v1855_v28, %v1867_v44 }
0x11f6   : >> { %v1870_v46 = vmul.f32 1.442695, %v1869_v45 }
0x11f8   : >> { %3183 = vpow2.f32 %v1870_v46 }
0x1202   : >> { %v3184_v47 = vpop.eup %3183  ;;  %v1883_v55 = vpop.permute.xlu0 %1882 }
0x1203   : >> { %v1874_v48 = vsel %vm1147_vm1, %v3184_v47, 0.0  ;;  %v1886_v49 = vpack.c.bf16 %v3184_v47, %v3184_v47  ;;  %v1885_v56 = vmul.f32 %v1883_v55, %v1879_v54 }
0x1204   : >> { %1875 = vadd.xlane.f32.xlu1 %v1874_v48 }
0x1205   : >> { %2824 = vmatmul.mubr.msk.bf16.vlgmr.msra.gmra.mrb[0].mxu1 %vm1147_vm1, %v1886_v49 }
0x1206   : > { %2829 = vmatprep.mubr.msk.bf16.mxu1 (%p1787_p13), %vm3888_vm2, %v3886_v0  ;;  %2828 = vmatpush3.bf16.msra.mxu1 (%p1787_p13), %v1952_v15 }
0x1207   : > { %2833 = vmatprep.subr.bf16.mxu1 (%p1787_p13), %v3886_v0 }
0x1291   : >> { %v1876_v52 = vpop.xlane.xlu1 %1875 }
0x1292   : >> { %v1877_v53 = vadd.f32 %v1876_v52, %v1873_v51 }
0x1294   : >> { %1878 = vst.msk [vmem:[#allocation7] sm:$0xff] %vm1144_vm0, %v1877_v53 }
0x129b   : > { %v1937_v62 = vld [vmem:[#allocation7] sm:$0xff] (%p1787_p13) }
0x129c   : > { %3196 = vrcp.f32 (%p1787_p13), %v1937_v62 }
0x12a6   : > { %v3197_v63 = vpop.eup (%p1787_p13), %3196 }
0x12a7   : > { %1941 = vperm.xlu0 (%p1787_p13), %3185, %v3197_v63  }
0x12d5   : > { %1790 = sbr.rel (!%p1787_p13) target bundleno = 3994 (0xf9a), region = 307 }
0x12d8   : >> { %v1927_v57 = vpop.f32.mrb[0].mxu1 }
0x12d9   : >> { %v1933_v58 = vadd.f32 %v1927_v57, %v1885_v56  ;;  %v2825_v59 = vpop.f32.mrb[1].mxu1  ;;  %v2683_v56 = vld [vmem:[#allocation33] ss:$0 sm:$0xff] (%p1787_p13) }
0x12da   : >> { %v1930_v60 = vpop.f32.mrb[2].mxu1 }
0x12db   : >> { %1934 = vst.msk [vmem:[#allocation8] sm:$0xff] %vm1147_vm1, %v1933_v58  ;;  %v2826_v61 = vpop.f32.mrb[3].mxu1 }
0x12e2   : > { %v1936_v32 = vld [vmem:[#allocation8] sm:$0xff] }
0x1326   : > { %v1942_v43 = vpop.permute.xlu0 %1941 }
0x1327   : > { %v1944_v21 = vmul.f32 %v1942_v43, %v1936_v32 }
0x1329   : > { %v1945_v3 = vpack.c.bf16 %v1944_v21, %v1944_v21 }
0x132b   : > { %2830 = vmatmul.mubr.msk.bf16.vlgmr.msra.gmra.mrb[0].mxu1 %vm1147_vm1, %v1945_v3  ;;  %v2684_v3 = vld [vmem:[#allocation35] ss:$0 sm:$0xff] }
0x132c   : > { %2837 = vmatprep.mubr.msk.bf16.mxu1 %vm3888_vm2, %v3886_v0  ;;  %2834 = vmatpush3.bf16.msra.mxu1 %v3186_v22 }
0x132d   : > { %2835 = vmatprep.subr.bf16.mxu1 %v3886_v0 }
0x1330   : > { %2836 = vmatpush3.bf16.msra.mxu1 %v3187_v23 }
0x13fe   : > { %v1988_v4 = vpop.f32.mrb[0].mxu1 }
0x13ff   : > { %v1994_v6 = vadd.f32 %v1988_v4, %v4714_v17  ;;  %v2831_v7 = vpop.f32.mrb[1].mxu1  ;;  %v3188_v17 = vld [vmem:[#allocation32] sm:$0xff]  }
0x1400   : > { %v1991_v8 = vpop.f32.mrb[2].mxu1  ;;  %2842 = vmatpush3.bf16.msra.mxu0 %v3188_v17 }
0x1401   : > { %v2002_v10 = vadd.f32 %v2668_v5, %v1994_v6  ;;  %v2832_v11 = vpop.f32.mrb[3].mxu1  ;;  %2843 = vmatprep.subr.bf16.mxu0 %v3886_v0  ;;  %v2685_v5 = vld [vmem:[#allocation36] ss:$0 sm:$0xff] }
0x1403   : > { %v2003_v13 = vadd.f32 %v2002_v10, %v4568_v9  ;;  %v3190_v9 = vld [vmem:[#allocation32 + $0x10] sm:$0xff]  }
0x1404   : > { %2844 = vmatpush3.bf16.msra.mxu0 %v3189_v24 }
0x1405   : > { %v2006_v14 = vsel %vm918_vm3, %v2003_v13, 0.0  ;;  %2845 = vmatprep.subr.bf16.mxu0 %v3886_v0 }
0x1406   : > { %2007 = vadd.xlane.f32.xlu0 %v2006_v14 }
0x1408   : > { %2846 = vmatpush3.bf16.msra.mxu0 %v3190_v9 }
0x1409   : > { %2847 = vmatprep.subr.bf16.mxu0 %v3886_v0 }
0x140c   : > { %2848 = vmatpush3.bf16.msra.mxu0 %v3191_v25 }
0x140d   : > { %2849 = vmatprep.subr.bf16.mxu0 %v3886_v0 }
0x1410   : > { %2850 = vmatpush3.bf16.msra.mxu0 %v3192_v12 }
0x1411   : > { %2851 = vmatprep.subr.bf16.mxu0 %v3886_v0 }
0x1414   : > { %2852 = vmatpush3.bf16.msra.mxu0 %v3193_v26 }
0x1415   : > { %2853 = vmatprep.subr.bf16.mxu0 %v3886_v0 }
0x1418   : > { %2854 = vmatpush3.bf16.msra.mxu0 %v3194_v39 }
0x1419   : > { %2855 = vmatprep.subr.bf16.mxu0 %v3886_v0 }
0x141c   : > { %2856 = vmatpush3.bf16.msra.mxu0 %v3195_v40 }
0x1493   : > { %v2008_v1 = vpop.xlane.xlu0 %2007 }
0x1494   : > { %v2010_v16 = vmul.f32 0.03125, %v2008_v1 }
0x1496   : > { %v2011_v18 = vsub.f32 %v2003_v13, %v2010_v16 }
0x1498   : > { %v2012_v19 = vmul.f32 %v2011_v18, %v2011_v18 }
0x149a   : > { %v2013_v20 = vsel %vm918_vm3, %v2012_v19, 0.0 }
0x149b   : > { %2014 = vadd.xlane.f32.xlu1 %v2013_v20 }
0x1528   : > { %v2015_v27 = vpop.xlane.xlu1 %2014 }
0x1529   : > { %v2016_v28 = vmul.f32 0.03125, %v2015_v27 }
0x152b   : > { %v2017_v29 = vadd.f32 1e-05, %v2016_v28 }
0x152d   : > { %3198 = vrsqrt.f32 %v2017_v29 }
0x1537   : > { %v3199_v30 = vpop.eup %3198 }
0x1538   : > { %v2019_v33 = vmul.f32 %v3199_v30, %v2011_v18 }
0x153a   : > { %v2026_v35 = vmul.f32 %v2669_v31, %v2019_v33 }
0x153c   : > { %v2033_v36 = vadd.f32 %v2670_v34, %v2026_v35 }
0x153e   : > { %2034 = vst.msk [vmem:[#allocation4] sm:$0xff] %vm918_vm3, %v2033_v36 }
0x1545   : > { %v2036_v37 = vld [vmem:[#allocation4] sm:$0xff] }
0x1546   : > { %v2037_v38 = vpack.c.bf16 %v2036_v37, %v2036_v37 }
0x1548   : > { %2838 = vmatmul.mubr.msk.bf16.vlgmr.msra.gmra.mrb[4].mxu1 %vm918_vm3, %v2037_v38 }
0x161b   : > { %v2099_v42 = vpop.f32.mrb[4].mxu1 }
0x161c   : > { %v2100_v44 = vadd.f32 %v2671_v41, %v2099_v42  ;;  %v2839_v45 = vpop.f32.mrb[5].mxu1 }
0x161d   : > { %v2102_v46 = vpop.f32.mrb[6].mxu1 }
0x161e   : > { %v2105_v47 = vmax.f32 %v2100_v44, 0.0  ;;  %v2840_v48 = vpop.f32.mrb[7].mxu1 }
0x1620   : > { %v2107_v49 = vpack.c.bf16 %v2105_v47, %v2105_v47 }
0x1622   : > { %2858 = vmatmul.mubr.bf16.vlgmr.msra.gmra.mrb[0].mxu0 %v2107_v49 }
0x16f5   : > { %v2206_v51 = vpop.f32.mrb[0].mxu0 }
0x16f6   : > { %v2212_v52 = vadd.f32 %v2206_v51, %v2106_v50  ;;  %v2859_v53 = vpop.f32.mrb[1].mxu0 }
0x16f7   : > { %v2209_v54 = vpop.f32.mrb[2].mxu0 }
0x16f8   : > { %2213 = vst.msk [vmem:[#allocation5] sm:$0xff] %vm918_vm3, %v2212_v52  ;;  %v2860_v55 = vpop.f32.mrb[3].mxu0 }
0x16ff   : > { %v2218_v0 = vld [vmem:[#allocation5] sm:$0xff] }
0x1700   : > { %v2219_v57 = vadd.f32 %v2218_v0, %v2036_v37 }
0x1702   : > { %v2227_v58 = vadd.f32 %v2683_v56, %v2219_v57 }
0x1704   : > { %v2230_v59 = vsel %vm918_vm3, %v2227_v58, 0.0 }
0x1705   : > { %2231 = vadd.xlane.f32.xlu1 %v2230_v59 }
0x1792   : > { %v2232_v60 = vpop.xlane.xlu1 %2231 }
0x1793   : > { %v2234_v61 = vmul.f32 0.03125, %v2232_v60 }
0x1795   : > { %v2235_v62 = vsub.f32 %v2227_v58, %v2234_v61 }
0x1797   : > { %v2236_v63 = vmul.f32 %v2235_v62, %v2235_v62 }
0x1799   : > { %v2237_v2 = vsel %vm918_vm3, %v2236_v63, 0.0 }
0x179a   : > { %2238 = vadd.xlane.f32.xlu1 %v2237_v2 }
0x1827   : > { %v2239_v15 = vpop.xlane.xlu1 %2238 }
0x1828   : > { %v2240_v32 = vmul.f32 0.03125, %v2239_v15 }
0x182a   : > { %v2241_v43 = vadd.f32 1e-05, %v2240_v32 }
0x182c   : > { %3200 = vrsqrt.f32 %v2241_v43 }
0x1836   : > { %v3201_v21 = vpop.eup %3200 }
0x1837   : > { %v2243_v4 = vmul.f32 %v3201_v21, %v2235_v62 }
0x1839   : > { %v2250_v6 = vmul.f32 %v2684_v3, %v2243_v4 }
0x183b   : > { %v2257_v7 = vadd.f32 %v2685_v5, %v2250_v6 }
0x183d   : > { %2258 = vst.msk [vmem:[%s4591_s0] sm:$0xff] %vm918_vm3, %v2257_v7 }
0x183e   : > { %3723 = shalt.err (!%p3720_p1)
}
0x183f   : > { %s3724_s21 = scalar_lea.hbm %s4776_s1, 128  ;;  %s3728_s6 = scalar_lea.hbm %s4944_s20, 256 }
0x1840   : > { %p3725_p5 = scmp.ne.s32.totalorder %s4776_s1, %s3724_s21  ;;  %p3729_p11 = scmp.lt.u32.totalorder %s4776_s1, %s4944_s20 }
0x1841   : > { %p3730_p6 = scmp.lt.u32.totalorder %s3728_s6, %s3724_s21  ;;  %p3732_p4 = scmp.lt.u32.totalorder %s3724_s21, %s4776_s1 }
0x1842   : > { %p3726_p8 = pnand %p3725_p5, %p4945_p9 }
0x1843   : > { %p3731_p13 = por %p3730_p6, %p3729_p11 }
0x1844   : > { %p3727_p3 = pneg %p3726_p8 }
0x1845   : > { %p3733_p0 = por %p3732_p4, %p3731_p13 }
0x1847   : > { %p3734_p7 = pnand %p3733_p0, %p3727_p3 }
0x1849   : > { %3737 = shalt.err (!%p3734_p7)
}
0x184a   : > { %2930 = dma.vmem_to_hbm [thread:$0]  (%p4945_p9), %s4778_s26, 128, %s4776_s1, %s2260_s24  }
0x184b PF: > { %s4946_s30 = sld [smem:[#allocation51_spill]]  ;;  %s4947_s22 = sld [smem:[#allocation56_spill]] }
0x184c   : > { %p4948_p12 = scmp.ne.s32.totalorder %s4915_s18, 0 }
0x1851   : > { %s2286_s3 = sand.u32 1, %s4946_s30   ;;  %p4949_p2 = scmp.ge.s32.totalorder %s4947_s22, 2 }
0x1852   : > { %s2287_s2 = scalar_lea.sflag [#allocation11], %s2286_s3 }
0x1853   : > { %p2989_p10 = pnand %p4949_p2, %p4948_p12 }
0x1855   : > { %3823 = dma.done.wait (!%p2989_p10), %s2287_s2, 128  }
0x1856   : > { %3825 = vsyncadd (!%p2989_p10), %s2287_s2, 4294967168  ;;  %s45_s19 = sadd.s32 1, %s4947_s22   ;;  %s4950_s10 = sld [smem:[#allocation52_spill]] }
0x1857   : > { %p42_p1 = scmp.ge.s32.totalorder %s45_s19, 4   ;;  %s4951_s28 = sld [smem:[#allocation53_spill]] }
0x1858   : > { %s4952_s23 = smov %s4410_s27  ;;  %s4953_s30 = sld [smem:[#allocation55_spill]] }
0x1859   : > { %s4954_s5 = smov %s4959_s29  ;;  %s4956_s29 = smov %s4952_s23 }
0x185a   : > { %s4957_s0 = smov %s4954_s5  ;;  %44 = sbr.rel (!%p42_p1) target bundleno = 30 (0x1e), region = 318 }
0x185c   : > { %s4955_s27 = smov %s4950_s10 }
0x1861   :  { %2292 = vsyncpa [#allocation10], 1 }
0x1862   :  { %2294 = vsyncpa [#allocation10 + $0x1], 1 }
0x1863   :  { %2295 = vsyncpa [#allocation13], 1 }
0x1864   :  { %2297 = vsyncpa [#allocation13 + $0x1], 1 }
0x1865   :  { %2298 = vsyncpa [#allocation16], 1 }
0x1866   :  { %2299 = vsyncpa [#allocation19], 1 }
0x1867   :  { %2300 = vsyncpa [#allocation22], 1 }
0x1868   :  { %2301 = vsyncpa [#allocation25], 1 }
0x1869   :  { %2302 = vsyncpa [#allocation28], 1 }
0x186a   :  { %2303 = vsyncpa [#allocation31], 1 }
0x186b   :  { %2304 = vsyncpa [#allocation34], 1 }
0x186c   :  { %2305 = vsyncpa [#allocation37], 1 }
0x186d   :  { %2306 = vsyncpa [#allocation11], 1 }
0x186e   :  { %2308 = vsyncpa [#allocation11 + $0x1], 1 }

</bundles_post_ra>
